<compile_context>
chip_gen: v7x
topology: tpu7x:2x2x1
jax: 0.10.0
libtpu: 0.0.40
codegen_flags: <defaults>
</compile_context>

<pallas_src>
import jax
import jax.numpy as jnp
from jax.experimental import pallas as pl
from jax.experimental.pallas import tpu as pltpu


def _round_up(x, m):
    return ((x + m - 1) // m) * m


def domain_classifier_kernel(x_ref, w1_ref, b1_ref, w2_ref, b2_ref, o_ref):
    # x_ref : (tm, F)    bf16 tile of input rows
    # w1_ref: (F, H)     bf16 first-layer weight (resident across the grid)
    # b1_ref: (1, H)     f32
    # w2_ref: (H, Np)    bf16 second-layer weight, output dim zero-padded to 128 lanes
    # b2_ref: (1, Np)    f32, zero-padded to 128 lanes
    # o_ref : (tm, Np)   f32, lane-dense output tile
    h = jnp.dot(x_ref[...], w1_ref[...], preferred_element_type=jnp.float32)
    h = jnp.maximum(h + b1_ref[...], 0.0)           # bias + ReLU in f32
    # Dropout(p=0.2): identity in eval/inference mode.
    h = h.astype(jnp.bfloat16)                      # bf16 into the second MXU pass
    out = jnp.dot(h, w2_ref[...], preferred_element_type=jnp.float32)
    o_ref[...] = (out + b2_ref[...]).astype(o_ref.dtype)


def domain_classifier(x, w1, b1, w2, b2, *, tm=256):
    """x:(N,F) f32, w1:(F,H), b1:(H,), w2:(H,nodes), b2:(nodes,). Returns (N,nodes) f32."""
    N, F = x.shape
    H = w1.shape[1]
    nodes = w2.shape[1]

    # Lane-dense output: pad the tiny `nodes` dim up to a multiple of 128.
    nodes_pad = _round_up(max(nodes, 128), 128)
    # Row tiling: pad N up to a multiple of tm; padded rows are sliced off below.
    n_pad = _round_up(N, tm)

    x_p = x.astype(jnp.bfloat16)
    if n_pad != N:
        x_p = jnp.pad(x_p, ((0, n_pad - N), (0, 0)))
    w1_b = w1.astype(jnp.bfloat16)
    w2_b = jnp.pad(w2, ((0, 0), (0, nodes_pad - nodes))).astype(jnp.bfloat16)
    b1_r = b1.reshape(1, H).astype(jnp.float32)
    b2_r = jnp.pad(b2.reshape(1, nodes), ((0, 0), (0, nodes_pad - nodes))).astype(jnp.float32)

    grid = (n_pad // tm,)

    flops = 2 * n_pad * F * H + 2 * n_pad * H * nodes_pad
    bytes_accessed = (x_p.size * 2 + w1_b.size * 2 + w2_b.size * 2
                      + b1_r.size * 4 + b2_r.size * 4 + n_pad * nodes_pad * 4)
    cost = pl.CostEstimate(flops=flops, transcendentals=0,
                           bytes_accessed=bytes_accessed)

    # VMEM budget: resident weights/biases + double-buffered x and out tiles.
    vmem_needed = (w1_b.size * 2 + w2_b.size * 2 + b1_r.size * 4 + b2_r.size * 4
                   + 2 * tm * F * 2 + 2 * tm * nodes_pad * 4)
    compiler_kwargs = dict(dimension_semantics=("parallel",))
    if vmem_needed > (32 << 20):
        # Raise the scoped limit toward physical VMEM (128 MiB v5e/v6e, 64 MiB v7x).
        compiler_kwargs["vmem_limit_bytes"] = min(vmem_needed + (8 << 20), 128 << 20)

    out = pl.pallas_call(
        domain_classifier_kernel,
        out_shape=jax.ShapeDtypeStruct((n_pad, nodes_pad), jnp.float32),
        grid_spec=pltpu.PrefetchScalarGridSpec(
            num_scalar_prefetch=0,
            grid=grid,
            in_specs=[
                pl.BlockSpec((tm, F), lambda i: (i, 0)),          # x row tile
                pl.BlockSpec((F, H), lambda i: (0, 0)),           # W1 (resident)
                pl.BlockSpec((1, H), lambda i: (0, 0)),           # b1
                pl.BlockSpec((H, nodes_pad), lambda i: (0, 0)),   # W2 (padded, resident)
                pl.BlockSpec((1, nodes_pad), lambda i: (0, 0)),   # b2 (padded)
            ],
            out_specs=pl.BlockSpec((tm, nodes_pad), lambda i: (i, 0)),
        ),
        compiler_params=pltpu.CompilerParams(**compiler_kwargs),
        cost_estimate=cost,
    )(x_p, w1_b, b1_r, w2_b, b2_r)

    return out[:N, :nodes]


def reference_bf16(x, w1, b1, w2, b2):
    """Mirrors the kernel's bf16-input / f32-accumulate numerics in plain JAX."""
    xb, w1b, w2b = (t.astype(jnp.bfloat16) for t in (x, w1, w2))
    h = jnp.dot(xb, w1b, preferred_element_type=jnp.float32) + b1[None, :]
    h = jnp.maximum(h, 0.0).astype(jnp.bfloat16)
    return jnp.dot(h, w2b, preferred_element_type=jnp.float32) + b2[None, :]


def reference_f32(x, w1, b1, w2, b2):
    h = jnp.maximum(x @ w1 + b1[None, :], 0.0)
    return h @ w2 + b2[None, :]


if __name__ == "__main__":
    # Module defaults: init_features (F)=2560, batch_size-hidden (H)=512, nodes=2.
    # N=512 rows -> grid of 2 parallel row tiles at tm=256.
    N, F, H, NODES = 512, 2560, 512, 2

    key = jax.random.PRNGKey(0)
    kx, kw1, kb1, kw2, kb2 = jax.random.split(key, 5)

    # PyTorch-style init: U(-1/sqrt(fan_in), 1/sqrt(fan_in)).
    lim1 = 1.0 / jnp.sqrt(jnp.float32(F))
    lim2 = 1.0 / jnp.sqrt(jnp.float32(H))
    x = jax.random.normal(kx, (N, F), dtype=jnp.float32)
    w1 = jax.random.uniform(kw1, (F, H), minval=-lim1, maxval=lim1, dtype=jnp.float32)
    b1 = jax.random.uniform(kb1, (H,), minval=-lim1, maxval=lim1, dtype=jnp.float32)
    w2 = jax.random.uniform(kw2, (H, NODES), minval=-lim2, maxval=lim2, dtype=jnp.float32)
    b2 = jax.random.uniform(kb2, (NODES,), minval=-lim2, maxval=lim2, dtype=jnp.float32)

    out = domain_classifier(x, w1, b1, w2, b2, tm=256)
    out = jax.block_until_ready(out)
    assert out.shape == (N, NODES)

    # Tight check vs a reference using the same bf16/f32 mixed precision.
    ref_b = reference_bf16(x, w1, b1, w2, b2)
    assert jnp.allclose(out, ref_b, atol=1e-2, rtol=1e-2), "mismatch vs bf16 reference"

    # Loose check vs the full-f32 PyTorch-equivalent forward.
    ref_f = reference_f32(x, w1, b1, w2, b2)
    assert jnp.allclose(out, ref_f, atol=1e-1, rtol=1e-1), "mismatch vs f32 reference"

    print("KERNEL_OK")
</pallas_src>

<mosaic_0001>
module attributes {stable_mosaic.version = 11 : i64} {
  func.func @domain_classifier_kernel(%arg0: i32, %arg1: memref<256x2560xbf16, #tpu.memory_space<vmem>>, %arg2: memref<2560x512xbf16, #tpu.memory_space<vmem>>, %arg3: memref<1x512xf32, #tpu.memory_space<vmem>>, %arg4: memref<512x128xbf16, #tpu.memory_space<vmem>>, %arg5: memref<1x128xf32, #tpu.memory_space<vmem>>, %arg6: memref<256x128xf32, #tpu.memory_space<vmem>>) attributes {dimension_semantics = [#tpu.dimension_semantics<parallel>], iteration_bounds = array<i64: 2>, scalar_prefetch = 0 : i64, scratch_operands = 0 : i64, tpu.core_type = #tpu.core_type<tc>, window_params = [{transform_indices = @transform_0, window_bounds = array<i64: 256, 2560>}, {pipeline_mode = #tpu.pipeline_mode<synchronous>, transform_indices = @transform_1, window_bounds = array<i64: 2560, 512>}, {pipeline_mode = #tpu.pipeline_mode<synchronous>, transform_indices = @transform_2, window_bounds = array<i64: 1, 512>}, {pipeline_mode = #tpu.pipeline_mode<synchronous>, transform_indices = @transform_3, window_bounds = array<i64: 512, 128>}, {pipeline_mode = #tpu.pipeline_mode<synchronous>, transform_indices = @transform_4, window_bounds = array<i64: 1, 128>}, {transform_indices = @transform_5, window_bounds = array<i64: 256, 128>}]} {
    %c0 = arith.constant 0 : index
    %c0_0 = arith.constant 0 : index
    %0 = vector.load %arg1[%c0, %c0_0] : memref<256x2560xbf16, #tpu.memory_space<vmem>>, vector<256x2560xbf16>
    %c0_1 = arith.constant 0 : index
    %c0_2 = arith.constant 0 : index
    %1 = vector.load %arg2[%c0_1, %c0_2] : memref<2560x512xbf16, #tpu.memory_space<vmem>>, vector<2560x512xbf16>
    %cst = arith.constant dense<0.000000e+00> : vector<256x512xf32>
    %2 = tpu.matmul %0, %1, %cst {dimension_numbers = #tpu.dot_dimension_numbers<[1], [0], [0], [1], [0, 0, 1, 1], [], []>} : vector<256x2560xbf16>, vector<2560x512xbf16>, vector<256x512xf32> -> vector<256x512xf32>
    %c0_3 = arith.constant 0 : index
    %c0_4 = arith.constant 0 : index
    %3 = vector.load %arg3[%c0_3, %c0_4] : memref<1x512xf32, #tpu.memory_space<vmem>>, vector<1x512xf32>
    %4 = vector.broadcast %3 : vector<1x512xf32> to vector<256x512xf32>
    %5 = arith.addf %2, %4 : vector<256x512xf32>
    %cst_5 = arith.constant 0.000000e+00 : f32
    %6 = vector.broadcast %cst_5 : f32 to vector<256x512xf32>
    %7 = arith.maximumf %5, %6 : vector<256x512xf32>
    %8 = arith.truncf %7 : vector<256x512xf32> to vector<256x512xbf16>
    %c0_6 = arith.constant 0 : index
    %c0_7 = arith.constant 0 : index
    %9 = vector.load %arg4[%c0_6, %c0_7] : memref<512x128xbf16, #tpu.memory_space<vmem>>, vector<512x128xbf16>
    %cst_8 = arith.constant dense<0.000000e+00> : vector<256x128xf32>
    %10 = tpu.matmul %8, %9, %cst_8 {dimension_numbers = #tpu.dot_dimension_numbers<[1], [0], [0], [1], [0, 0, 1, 1], [], []>} : vector<256x512xbf16>, vector<512x128xbf16>, vector<256x128xf32> -> vector<256x128xf32>
    %c0_9 = arith.constant 0 : index
    %c0_10 = arith.constant 0 : index
    %11 = vector.load %arg5[%c0_9, %c0_10] : memref<1x128xf32, #tpu.memory_space<vmem>>, vector<1x128xf32>
    %12 = vector.broadcast %11 : vector<1x128xf32> to vector<256x128xf32>
    %13 = arith.addf %10, %12 : vector<256x128xf32>
    %c0_11 = arith.constant 0 : index
    %c0_12 = arith.constant 0 : index
    %14 = vector.load %arg6[%c0_11, %c0_12] : memref<256x128xf32, #tpu.memory_space<vmem>>, vector<256x128xf32>
    tpu.vector_store %arg6[%c0_11, %c0_12], %13 {strides = array<i32>} : memref<256x128xf32, #tpu.memory_space<vmem>>, vector<256x128xf32>,
    return
  }
  func.func @transform_0(%arg0: i32) -> (i32, i32) {
    %c0_i32 = arith.constant 0 : i32
    %c0_i32_0 = arith.constant 0 : i32
    return %arg0, %c0_i32 : i32, i32
  }
  func.func @transform_1(%arg0: i32) -> (i32, i32) {
    %c0_i32 = arith.constant 0 : i32
    %c0_i32_0 = arith.constant 0 : i32
    %c0_i32_1 = arith.constant 0 : i32
    return %c0_i32, %c0_i32_0 : i32, i32
  }
  func.func @transform_2(%arg0: i32) -> (i32, i32) {
    %c0_i32 = arith.constant 0 : i32
    %c0_i32_0 = arith.constant 0 : i32
    %c0_i32_1 = arith.constant 0 : i32
    return %c0_i32, %c0_i32_0 : i32, i32
  }
  func.func @transform_3(%arg0: i32) -> (i32, i32) {
    %c0_i32 = arith.constant 0 : i32
    %c0_i32_0 = arith.constant 0 : i32
    %c0_i32_1 = arith.constant 0 : i32
    return %c0_i32, %c0_i32_0 : i32, i32
  }
  func.func @transform_4(%arg0: i32) -> (i32, i32) {
    %c0_i32 = arith.constant 0 : i32
    %c0_i32_0 = arith.constant 0 : i32
    %c0_i32_1 = arith.constant 0 : i32
    return %c0_i32, %c0_i32_0 : i32, i32
  }
  func.func @transform_5(%arg0: i32) -> (i32, i32) {
    %c0_i32 = arith.constant 0 : i32
    %c0_i32_0 = arith.constant 0 : i32
    return %arg0, %c0_i32 : i32, i32
  }
}

</mosaic_0001>

<bundles_post_ra>
// kernel: tpu_custom_call.1
= control target key start
LH: loop header
LB: loop body
LE: loop exit
PB: predicated region body
PF: predicated region fallthrough
CT: control target
= control target key end

     0   :  { %10 = vsyncpa [#allocation3], 0  ;;  %s16038_s0 = inlined_call_operand.hbm [shape: bf16[512,2560], index: 0, kind: input, shape index: {}]   ;;  %s16039_s1 = inlined_call_operand.hbm [shape: bf16[2560,512], index: 1, kind: input, shape index: {}]   ;;  %s16040_s2 = inlined_call_operand.hbm [shape: f32[1,512], index: 2, kind: input, shape index: {}]   ;;  %s16041_s3 = inlined_call_operand.hbm [shape: bf16[512,128], index: 3, kind: input, shape index: {}]   ;;  %s16042_s4 = inlined_call_operand.hbm [shape: f32[1,128], index: 4, kind: input, shape index: {}]   ;;  %s16043_s5 = inlined_call_operand.hbm [shape: f32[512,128], index: 5, kind: output, shape index: {}]  }
   0x1   :  { %12 = vsyncpa [#allocation3 + $0x1], 0 }
   0x2   :  { %13 = vsyncpa [#allocation6], 0 }
   0x3   :  { %14 = vsyncpa [#allocation9], 0 }
   0x4   :  { %15 = vsyncpa [#allocation4], 0 }
   0x5   :  { %17 = vsyncpa [#allocation4 + $0x1], 0  ;;  %s15228_s18 = smov 0   ;;  %s15230_s19 = smov 0  }
   0x6   :  { %s15232_s20 = smov 0   ;;  %s15234_s21 = smov 0  }
   0x7 LB: > { %s15249_s22 = sadd.s32 4294967295, %s15182_s21   ;;  %s10877_s23 = sadd.s32 4294967294, %s15182_s21   ;;  %s15182_s21 = sphi %s15234_s21, %s16066_s21   ;;  %s15178_s20 = sphi %s15232_s20, %s16065_s20   ;;  %s15174_s19 = sphi %s15230_s19, %s16064_s19   ;;  %s15170_s18 = sphi %s15228_s18, %s16063_s18  }
   0x8   : > { %p43_p0 = scmp.ne.s32.totalorder %s15174_s19, %s15170_s18  ;;  %p16044_p1 = scmp.eq.s32.totalorder %s15249_s22, 0 }
   0x9   : > { %p157_p3 = scmp.eq.s32.totalorder %s10877_s23, 1  ;;  %p10878_p5 = scmp.ge.s32.totalorder %s15182_s21, 1 }
   0xa   : > { %p15258_p4 = por %p16044_p1, %p43_p0  ;;  %p164_p7 = scmp.lt.s32.totalorder %s15182_s21, 3 }
   0xb   : > { %p15263_p6 = por %p157_p3, %p43_p0  ;;  %s15184_s27 = smov [#allocation5]  }
   0xc   : > { %s16047_s24 = scalar_select %p15258_p4, 1, 0 }
   0xd   : > { %s16048_s25 = scalar_select %p15263_p6, 1, 0 }
   0xe   : > { %p15268_p8 = pnand %p10878_p5, %p164_p7  ;;  %s176_s28 = sshll.u32 %s15184_s27, 4  ;;  %s15272_s28 = int_to_ptr.vmem [resolvable:$true] %s176_s28 }
   0xf   : > { %s15185_s30 = smov [#allocation8]   ;;  %s14966_s9 = scalar_lea.hbm %s16039_s1, 81920 }
  0x10   : > { %s16049_s26 = scalar_select %p15268_p8, 1, 0 }
  0x11   : > { %p13419_p9 = pneg %p15268_p8  ;;  %s200_s6 = sshll.u32 %s15185_s30, 4  ;;  %s15283_s6 = int_to_ptr.vmem [resolvable:$true] %s200_s6 }
  0x12   : > { %p14967_p12 = scmp.ne.s32.totalorder %s16039_s1, %s14966_s9  ;;  %p14973_p5 = scmp.lt.u32.totalorder %s14966_s9, %s16039_s1 }
  0x13   : > { %p15279_p11 = pnand %p13419_p9, %p16044_p1 }
  0x15   : > { %p15293_p13 = pneg %p15279_p11 }
  0x17   : > { %p14969_p0 = pnand %p15293_p13, %p14967_p12 }
  0x19   : > { %p14970_p3 = pneg %p14969_p0 }
  0x1b   : > { %p14975_p7 = pnand %p14973_p5, %p14970_p3 }
  0x1d   : > { %14978 = shalt.err (!%p14975_p7)
}
  0x1e   : > { %s14979_s15 = scalar_lea.vmem %s15272_s28, 81920  ;;  %p14987_p2 = scmp.lt.s32.totalorder %s15272_s28, %s15272_s28 }
  0x1f   : > { %p14980_p9 = scmp.ne.s32.totalorder %s15272_s28, %s14979_s15  ;;  %p14988_p6 = scmp.lt.s32.totalorder %s14979_s15, %s14979_s15 }
  0x21   : > { %p14982_p10 = pnand %p14980_p9, %p15293_p13  ;;  %p14989_p12 = por %p14988_p6, %p14987_p2 }
  0x23   : > { %p14983_p1 = pneg %p14982_p10 }
  0x25   : > { %p14990_p0 = pnand %p14989_p12, %p14983_p1 }
  0x27   : > { %14993 = shalt.err (!%p14990_p0)
}
  0x28   : > { %s15186_s16 = smov 256   ;;  %s15187_s17 = smov 16  }
  0x29   : > { %13422 = dma.hbm_to_vmem [thread:$0]  (!%p15279_p11), %s16039_s1, 81920, %s15272_s28, [#allocation6], %s15186_s16, %s15186_s16, %s15187_s17  }
  0x2a   : > { %s14994_s8 = scalar_lea.hbm %s16041_s3, 4096 }
  0x2b   : > { %p14995_p2 = scmp.ne.s32.totalorder %s16041_s3, %s14994_s8  ;;  %p15001_p10 = scmp.lt.u32.totalorder %s14994_s8, %s16041_s3 }
  0x2d   : > { %p14997_p1 = pnand %p14995_p2, %p15293_p13 }
  0x2f   : > { %p14998_p6 = pneg %p14997_p1 }
  0x31   : > { %p15003_p3 = pnand %p15001_p10, %p14998_p6 }
  0x33   : > { %15006 = shalt.err (!%p15003_p3)
}
  0x34   : > { %s15007_s28 = scalar_lea.vmem %s15283_s6, 4096  ;;  %p15015_p12 = scmp.lt.s32.totalorder %s15283_s6, %s15283_s6 }
  0x35   : > { %p15008_p5 = scmp.ne.s32.totalorder %s15283_s6, %s15007_s28  ;;  %p15016_p0 = scmp.lt.s32.totalorder %s15007_s28, %s15007_s28 }
  0x37   : > { %p15010_p7 = pnand %p15008_p5, %p15293_p13  ;;  %p15017_p2 = por %p15016_p0, %p15015_p12 }
  0x39   : > { %p15011_p9 = pneg %p15010_p7 }
  0x3b   : > { %p15018_p1 = pnand %p15017_p2, %p15011_p9 }
  0x3d   : > { %15021 = shalt.err (!%p15018_p1)
}
  0x3e   : > { %s15188_s14 = smov 64   ;;  %s15189_s15 = smov 4  }
  0x3f   : > { %13428 = dma.hbm_to_vmem [thread:$0]  (!%p15279_p11), %s16041_s3, 4096, %s15283_s6, [#allocation9], %s15188_s14, %s15188_s14, %s15189_s15  }
  0x40   : > { %s15190_s23 = smov [#allocation7]   ;;  %s15191_s30 = smov [#allocation10]  }
  0x41   : > { %s190_s27 = sshll.u32 %s15190_s23, 4  ;;  %s214_s7 = sshll.u32 %s15191_s30, 4  ;;  %s191_s27 = int_to_ptr.vmem [resolvable:$true] %s190_s27  ;;  %s15337_s7 = int_to_ptr.vmem [resolvable:$true] %s214_s7 }
  0x42   : > { %s15022_s10 = scalar_lea.hbm %s16040_s2, 64 }
  0x43   : > { %p15023_p6 = scmp.ne.s32.totalorder %s16040_s2, %s15022_s10  ;;  %p15029_p5 = scmp.lt.u32.totalorder %s15022_s10, %s16040_s2 }
  0x45   : > { %p15025_p10 = pnand %p15023_p6, %p15293_p13 }
  0x47   : > { %p15026_p3 = pneg %p15025_p10 }
  0x49   : > { %p15031_p7 = pnand %p15029_p5, %p15026_p3 }
  0x4b   : > { %15034 = shalt.err (!%p15031_p7)
}
  0x4c   : > { %s15035_s14 = scalar_lea.vmem %s191_s27, 64  ;;  %p15043_p2 = scmp.lt.s32.totalorder %s191_s27, %s191_s27 }
  0x4d   : > { %p15036_p9 = scmp.ne.s32.totalorder %s191_s27, %s15035_s14  ;;  %p15044_p1 = scmp.lt.s32.totalorder %s15035_s14, %s15035_s14 }
  0x4f   : > { %p15038_p12 = pnand %p15036_p9, %p15293_p13  ;;  %p15045_p4 = por %p15044_p1, %p15043_p2 }
  0x51   : > { %p15039_p0 = pneg %p15038_p12 }
  0x53   : > { %p15046_p8 = pnand %p15045_p4, %p15039_p0 }
  0x55   : > { %15049 = shalt.err (!%p15046_p8)
}
  0x56   : > { %13425 = dma.hbm_to_vmem [thread:$0]  (!%p15279_p11), %s16040_s2, 64, %s191_s27, [#allocation6]  }
  0x57   : > { %s15050_s30 = scalar_lea.hbm %s16042_s4, 16 }
  0x58   : > { %p15051_p6 = scmp.ne.s32.totalorder %s16042_s4, %s15050_s30  ;;  %p15057_p4 = scmp.lt.u32.totalorder %s15050_s30, %s16042_s4 }
  0x5a   : > { %p15053_p10 = pnand %p15051_p6, %p15293_p13 }
  0x5c   : > { %p15054_p3 = pneg %p15053_p10 }
  0x5e   : > { %p15059_p8 = pnand %p15057_p4, %p15054_p3 }
  0x60   : > { %15062 = shalt.err (!%p15059_p8)
}
  0x61   : > { %s15063_s27 = scalar_lea.vmem %s15337_s7, 16  ;;  %s15070_s13 = scalar_lea.vmem %s15337_s7, 32 }
  0x62   : > { %p15064_p5 = scmp.ne.s32.totalorder %s15337_s7, %s15063_s27  ;;  %p15071_p12 = scmp.lt.s32.totalorder %s15337_s7, %s15337_s7 }
  0x63   : > { %p15072_p0 = scmp.lt.s32.totalorder %s15070_s13, %s15063_s27 }
  0x64   : > { %p15066_p7 = pnand %p15064_p5, %p15293_p13 }
  0x65   : > { %p15073_p2 = por %p15072_p0, %p15071_p12 }
  0x66   : > { %p15067_p9 = pneg %p15066_p7 }
  0x68   : > { %p15074_p1 = pnand %p15073_p2, %p15067_p9 }
  0x6a   : > { %15077 = shalt.err (!%p15074_p1)
}
  0x6b   : > { %13431 = dma.hbm_to_vmem [thread:$0]  (!%p15279_p11), %s16042_s4, 16, %s15337_s7, [#allocation9]  }
  0x6c   : > { %s15382_s12 = sadd.s32 1, %s15182_s21   ;;  %s30_s14 = sadd.s32 1, %s15178_s20 }
  0x6d   : > { %s27_s29 = ssub.s32 %s15182_s21, %s15382_s12  ;;  %p37_p6 = scmp.ne.s32.totalorder %s15178_s20, %s15174_s19 }
  0x6e   : > { %p28_p13 = scmp.eq.s32.totalorder %s27_s29, 0  ;;  %p38_p10 = scmp.eq.s32.totalorder %s15182_s21, 0 }
  0x6f   : > { %p16052_p4 = scmp.eq.s32.totalorder %s15249_s22, 1  ;;  %p13444_p5 = scmp.lt.s32.totalorder %s15182_s21, 2 }
  0x70   : > { %s15391_s15 = scalar_select %p28_p13, %s15178_s20, %s30_s14  }
  0x71   : > { %p39_p3 = por %p38_p10, %p37_p6  ;;  %p15395_p8 = por %p16052_p4, %p37_p6 }
  0x72   : > { %s225_s17 = sand.u32 1, %s15178_s20   ;;  %s13397_s7 = smul.u32 40960, %s15182_s21 }
  0x73   : > { %s13396_s23 = smul.u32 2560, %s225_s17  ;;  %p15402_p11 = pnand %p13444_p5, %p39_p3 }
  0x74   : > { %s15409_s10 = scalar_lea.hbm %s16038_s0, %s13397_s7  ;;  %s15413_s13 = scalar_lea.sflag [#allocation3], %s225_s17 }
  0x75   : > { %s229_s11 = scalar_lea.vmem [#allocation2], %s13396_s23  ;;  %s15078_s28 = scalar_lea.hbm %s15409_s10, 40960 }
  0x76   : > { %s237_s27 = sshll.u32 %s229_s11, 4  ;;  %p15079_p7 = scmp.ne.s32.totalorder %s15409_s10, %s15078_s28  ;;  %s15411_s27 = int_to_ptr.vmem [resolvable:$true] %s237_s27 }
  0x77   : > { %p15080_p9 = pneg %p15402_p11  ;;  %s15083_s14 = scalar_lea.hbm %s16038_s0, 81920 }
  0x78   : > { %p15084_p2 = scmp.lt.u32.totalorder %s15409_s10, %s16038_s0  ;;  %p15085_p1 = scmp.lt.u32.totalorder %s15083_s14, %s15078_s28 }
  0x79   : > { %p15081_p12 = pnand %p15080_p9, %p15079_p7  ;;  %p15087_p6 = scmp.lt.u32.totalorder %s15078_s28, %s15409_s10 }
  0x7a   : > { %p15086_p13 = por %p15085_p1, %p15084_p2 }
  0x7b   : > { %p15082_p0 = pneg %p15081_p12 }
  0x7c   : > { %p15088_p10 = por %p15087_p6, %p15086_p13 }
  0x7e   : > { %p15089_p3 = pnand %p15088_p10, %p15082_p0 }
  0x80   : > { %15092 = shalt.err (!%p15089_p3)
}
  0x81   : > { %s15093_s17 = scalar_lea.vmem %s15411_s27, 40960  ;;  %s15192_s23 = smov [#allocation2]  }
  0x82   : > { %p15094_p4 = scmp.ne.s32.totalorder %s15411_s27, %s15093_s17  ;;  %s15098_s9 = sshll.u32 %s15192_s23, 4  ;;  %s15099_s9 = int_to_ptr.vmem [resolvable:$false] %s15098_s9 }
  0x83   : > { %s15100_s11 = scalar_lea.vmem %s15099_s9, 81920  ;;  %p15101_p12 = scmp.lt.s32.totalorder %s15411_s27, %s15099_s9 }
  0x84   : > { %p15096_p5 = pnand %p15094_p4, %p15080_p9  ;;  %p15102_p2 = scmp.lt.s32.totalorder %s15100_s11, %s15093_s17 }
  0x86   : > { %p15097_p7 = pneg %p15096_p5  ;;  %p15103_p1 = por %p15102_p2, %p15101_p12 }
  0x88   : > { %p15104_p13 = pnand %p15103_p1, %p15097_p7 }
  0x8a   : > { %15107 = shalt.err (!%p15104_p13)
}
  0x8b   : > { %s15193_s28 = smov 1280   ;;  %s15194_s6 = smov 80  }
  0x8c   : > { %13435 = dma.hbm_to_vmem [thread:$0]  (!%p15402_p11), %s15409_s10, 40960, %s15411_s27, %s15413_s13, %s15193_s28, %s15193_s28, %s15194_s6  }
  0x8d   : > { %p16055_p9 = scmp.ne.s32.totalorder %s16049_s26, 0 }
  0x8e   : > { %s15444_s29 = sand.u32 (!%p16055_p9), 1, %s15174_s19   ;;  %p16056_p0 = scmp.ne.s32.totalorder (!%p16055_p9), %s16047_s24, 0 }
  0x8f   : > { %249 = sbr.rel (%p16055_p9) target bundleno = 1953 (0x7a1), region = 40  ;;  %s252_s7 = scalar_lea.sflag (!%p16055_p9), [#allocation3], %s15444_s29 }
  0x90   : > { %s13398_s14 = smul.u32 (!%p16055_p9), 2560, %s15444_s29 }
  0x92   : > { %s15448_s8 = scalar_lea.vmem (!%p16055_p9), [#allocation2], %s13398_s14 }
  0x96   : > { %15153 = dma.done.wait (%p16056_p0), %s252_s7, 40960  }
  0x97   : > { %15155 = vsyncadd (%p16056_p0), %s252_s7, 4294926336  ;;  %p16057_p11 = scmp.eq.s32.totalorder %s15249_s22, 0 }
  0x99   : > { %15157 = dma.done.wait (%p16057_p11), [#allocation6], 81984   ;;  %p16058_p6 = pmov %p16057_p11 }
  0x9b   : > { %15159 = vsyncadd (%p16058_p6), [#allocation6], 4294885312  ;;  %p16059_p10 = pmov %p16058_p6 }
  0x9c   : > { %p16060_p3 = pmov %p16058_p6 }
  0x9d   : > { %15161 = dma.done.wait (%p16059_p10), [#allocation9], 4112  }
  0x9e   : > { %15163 = vsyncadd (%p16060_p3), [#allocation9], 4294963184  ;;  %v13494_v0 = vld [vmem:[#allocation5 + $0x4] ss:$16 sps:$4 sm:$0xff]   ;;  %v13496_v1 = vld [vmem:[#allocation5 + $0xc] ss:$16 sps:$4 sm:$0xff]  }
  0x9f   : > { %6083 = vmatprep.subr.bf16.mxu0 %v13494_v0  ;;  %v13498_v2 = vld [vmem:[#allocation5] ss:$16 sps:$4 sm:$0xff]   ;;  %v13499_v3 = vld [vmem:[#allocation5 + $0x8] ss:$16 sps:$4 sm:$0xff]   ;;  %8013 = vmatprep.subr.bf16.mxu1 %v13496_v1  ;;  %v13500_v4 = vld [vmem:[#allocation5 + $0x24] ss:$16 sps:$4 sm:$0xff]  }
  0xa0   : > { %6084 = vmatpush1.bf16.msra.mxu0 %v13498_v2  ;;  %8014 = vmatpush1.bf16.msra.mxu1 %v13499_v3  ;;  %v13502_v5 = vld [vmem:[#allocation5 + $0x2c] ss:$16 sps:$4 sm:$0xff]   ;;  %v13504_v6 = vld [vmem:[#allocation5 + $0x20] ss:$16 sps:$4 sm:$0xff]   ;;  %v13505_v7 = vld [vmem:[#allocation5 + $0x28] ss:$16 sps:$4 sm:$0xff]  }
  0xa1   : > { %6085 = vmatprep.subr.bf16.mxu0 %v13500_v4  ;;  %8015 = vmatprep.subr.bf16.mxu1 %v13502_v5  ;;  %v13506_v8 = vld [vmem:[#allocation5 + $0x44] ss:$16 sps:$4 sm:$0xff]   ;;  %v13508_v9 = vld [vmem:[#allocation5 + $0x4c] ss:$16 sps:$4 sm:$0xff]   ;;  %v13510_v10 = vld [vmem:[#allocation5 + $0x40] ss:$16 sps:$4 sm:$0xff]  }
  0xa2   : > { %v13511_v11 = vld [vmem:[#allocation5 + $0x48] ss:$16 sps:$4 sm:$0xff]   ;;  %v13512_v12 = vld [vmem:[#allocation5 + $0x64] ss:$16 sps:$4 sm:$0xff]   ;;  %v13514_v13 = vld [vmem:[#allocation5 + $0x6c] ss:$16 sps:$4 sm:$0xff]  }
  0xa3   : > { %v13516_v14 = vld [vmem:[#allocation5 + $0x60] ss:$16 sps:$4 sm:$0xff]   ;;  %v13517_v15 = vld [vmem:[#allocation5 + $0x68] ss:$16 sps:$4 sm:$0xff]   ;;  %v13518_v16 = vld [vmem:[#allocation5 + $0x84] ss:$16 sps:$4 sm:$0xff]  }
  0xa4   : > { %6086 = vmatpush1.bf16.msra.mxu0 %v13504_v6  ;;  %8016 = vmatpush1.bf16.msra.mxu1 %v13505_v7  ;;  %v13520_v17 = vld [vmem:[#allocation5 + $0x8c] ss:$16 sps:$4 sm:$0xff]   ;;  %v13522_v18 = vld [vmem:[#allocation5 + $0x80] ss:$16 sps:$4 sm:$0xff]   ;;  %v13523_v19 = vld [vmem:[#allocation5 + $0x88] ss:$16 sps:$4 sm:$0xff]  }
  0xa5   : > { %6087 = vmatprep.subr.bf16.mxu0 %v13506_v8  ;;  %8017 = vmatprep.subr.bf16.mxu1 %v13508_v9  ;;  %v13524_v20 = vld [vmem:[#allocation5 + $0xa4] ss:$16 sps:$4 sm:$0xff]   ;;  %v13526_v21 = vld [vmem:[#allocation5 + $0xac] ss:$16 sps:$4 sm:$0xff]   ;;  %v13528_v22 = vld [vmem:[#allocation5 + $0xa0] ss:$16 sps:$4 sm:$0xff]  }
  0xa6   : > { %v13529_v23 = vld [vmem:[#allocation5 + $0xa8] ss:$16 sps:$4 sm:$0xff]   ;;  %v13530_v24 = vld [vmem:[#allocation5 + $0xc4] ss:$16 sps:$4 sm:$0xff]   ;;  %v13532_v25 = vld [vmem:[#allocation5 + $0xcc] ss:$16 sps:$4 sm:$0xff]  }
  0xa7   : > { %v13534_v26 = vld [vmem:[#allocation5 + $0xc0] ss:$16 sps:$4 sm:$0xff]   ;;  %v13535_v27 = vld [vmem:[#allocation5 + $0xc8] ss:$16 sps:$4 sm:$0xff]   ;;  %v13536_v28 = vld [vmem:[#allocation5 + $0xe4] ss:$16 sps:$4 sm:$0xff]  }
  0xa8   : > { %6088 = vmatpush1.bf16.msra.mxu0 %v13510_v10  ;;  %8018 = vmatpush1.bf16.msra.mxu1 %v13511_v11  ;;  %v13538_v29 = vld [vmem:[#allocation5 + $0xec] ss:$16 sps:$4 sm:$0xff]   ;;  %v13540_v30 = vld [vmem:[#allocation5 + $0xe0] ss:$16 sps:$4 sm:$0xff]   ;;  %v13541_v31 = vld [vmem:[#allocation5 + $0xe8] ss:$16 sps:$4 sm:$0xff]  }
  0xa9   : > { %6089 = vmatprep.subr.bf16.mxu0 %v13512_v12  ;;  %8019 = vmatprep.subr.bf16.mxu1 %v13514_v13  ;;  %v13542_v32 = vld [vmem:[#allocation5 + $0x104] ss:$16 sps:$4 sm:$0xff]   ;;  %v13544_v33 = vld [vmem:[#allocation5 + $0x10c] ss:$16 sps:$4 sm:$0xff]   ;;  %v13546_v34 = vld [vmem:[#allocation5 + $0x100] ss:$16 sps:$4 sm:$0xff]  }
  0xaa   : > { %v13547_v35 = vld [vmem:[#allocation5 + $0x108] ss:$16 sps:$4 sm:$0xff]   ;;  %v13548_v36 = vld [vmem:[#allocation5 + $0x124] ss:$16 sps:$4 sm:$0xff]   ;;  %v13550_v37 = vld [vmem:[#allocation5 + $0x12c] ss:$16 sps:$4 sm:$0xff]  }
  0xab   : > { %v13552_v38 = vld [vmem:[#allocation5 + $0x120] ss:$16 sps:$4 sm:$0xff]   ;;  %v13553_v39 = vld [vmem:[#allocation5 + $0x128] ss:$16 sps:$4 sm:$0xff]   ;;  %v13554_v40 = vld [vmem:[#allocation5 + $0x144] ss:$16 sps:$4 sm:$0xff]  }
  0xac   : > { %6090 = vmatpush1.bf16.msra.mxu0 %v13516_v14  ;;  %8020 = vmatpush1.bf16.msra.mxu1 %v13517_v15  ;;  %v13556_v41 = vld [vmem:[#allocation5 + $0x14c] ss:$16 sps:$4 sm:$0xff]   ;;  %v13558_v42 = vld [vmem:[#allocation5 + $0x140] ss:$16 sps:$4 sm:$0xff]   ;;  %v13559_v43 = vld [vmem:[#allocation5 + $0x148] ss:$16 sps:$4 sm:$0xff]  }
  0xad   : > { %6091 = vmatprep.subr.bf16.mxu0 %v13518_v16  ;;  %8021 = vmatprep.subr.bf16.mxu1 %v13520_v17  ;;  %v13560_v44 = vld [vmem:[#allocation5 + $0x164] ss:$16 sps:$4 sm:$0xff]   ;;  %v13562_v45 = vld [vmem:[#allocation5 + $0x16c] ss:$16 sps:$4 sm:$0xff]   ;;  %v13564_v46 = vld [vmem:[#allocation5 + $0x160] ss:$16 sps:$4 sm:$0xff]  }
  0xae   : > { %v13565_v47 = vld [vmem:[#allocation5 + $0x168] ss:$16 sps:$4 sm:$0xff]   ;;  %v13592_v48 = vld [vmem:[%s15448_s8 + $0x4] ss:$80 sps:$4 sm:$0xff]   ;;  %v13568_v50 = vld [vmem:[#allocation5 + $0x18c] ss:$16 sps:$4 sm:$0xff]  }
  0xaf   : > { %v13566_v49 = vld [vmem:[#allocation5 + $0x184] ss:$16 sps:$4 sm:$0xff]   ;;  %6115 = vmatprep.mubr.bf16.mxu0 %v13592_v48  ;;  %8045 = vmatprep.mubr.bf16.mxu1 %v13592_v48  ;;  %v13570_v51 = vld [vmem:[#allocation5 + $0x180] ss:$16 sps:$4 sm:$0xff]   ;;  %v13571_v52 = vld [vmem:[#allocation5 + $0x188] ss:$16 sps:$4 sm:$0xff]  }
  0xb0   : > { %6092 = vmatpush1.bf16.msra.mxu0 %v13522_v18  ;;  %8022 = vmatpush1.bf16.msra.mxu1 %v13523_v19  ;;  %v13572_v53 = vld [vmem:[#allocation5 + $0x1a4] ss:$16 sps:$4 sm:$0xff]   ;;  %v13574_v54 = vld [vmem:[#allocation5 + $0x1ac] ss:$16 sps:$4 sm:$0xff]   ;;  %v13576_v55 = vld [vmem:[#allocation5 + $0x1a0] ss:$16 sps:$4 sm:$0xff]  }
  0xb1   : > { %6093 = vmatprep.subr.bf16.mxu0 %v13524_v20  ;;  %8023 = vmatprep.subr.bf16.mxu1 %v13526_v21  ;;  %v13577_v56 = vld [vmem:[#allocation5 + $0x1a8] ss:$16 sps:$4 sm:$0xff]   ;;  %v13578_v57 = vld [vmem:[#allocation5 + $0x1c4] ss:$16 sps:$4 sm:$0xff]   ;;  %v13580_v58 = vld [vmem:[#allocation5 + $0x1cc] ss:$16 sps:$4 sm:$0xff]  }
  0xb2   : > { %v13582_v59 = vld [vmem:[#allocation5 + $0x1c0] ss:$16 sps:$4 sm:$0xff]   ;;  %v13583_v60 = vld [vmem:[#allocation5 + $0x1c8] ss:$16 sps:$4 sm:$0xff]   ;;  %v13584_v61 = vld [vmem:[#allocation5 + $0x1e4] ss:$16 sps:$4 sm:$0xff]  }
  0xb3   : > { %v13586_v62 = vld [vmem:[#allocation5 + $0x1ec] ss:$16 sps:$4 sm:$0xff]   ;;  %v13588_v63 = vld [vmem:[#allocation5 + $0x1e0] ss:$16 sps:$4 sm:$0xff]   ;;  %v13589_v0 = vld [vmem:[#allocation5 + $0x1e8] ss:$16 sps:$4 sm:$0xff]  }
  0xb4   : > { %6094 = vmatpush1.bf16.msra.mxu0 %v13528_v22  ;;  %8024 = vmatpush1.bf16.msra.mxu1 %v13529_v23  ;;  %v13595_v1 = vld [vmem:[#allocation5 + $0x204] ss:$16 sps:$4 sm:$0xff]   ;;  %v13598_v2 = vld [vmem:[#allocation5 + $0x20c] ss:$16 sps:$4 sm:$0xff]   ;;  %v13590_v3 = vld [vmem:[%s15448_s8] ss:$80 sps:$4 sm:$0xff]  }
  0xb5   : > { %6095 = vmatprep.subr.bf16.mxu0 %v13530_v24  ;;  %8025 = vmatprep.subr.bf16.mxu1 %v13532_v25  ;;  %v13593_v4 = vld [vmem:[#allocation5 + $0x200] ss:$16 sps:$4 sm:$0xff]   ;;  %v13596_v5 = vld [vmem:[#allocation5 + $0x208] ss:$16 sps:$4 sm:$0xff]   ;;  %v13599_v6 = vld [vmem:[%s15448_s8 + $0xa4] ss:$80 sps:$4 sm:$0xff]  }
  0xb6   : > { %v13604_v7 = vld [vmem:[#allocation5 + $0x224] ss:$16 sps:$4 sm:$0xff]   ;;  %v13607_v8 = vld [vmem:[#allocation5 + $0x22c] ss:$16 sps:$4 sm:$0xff]   ;;  %v13602_v9 = vld [vmem:[#allocation5 + $0x220] ss:$16 sps:$4 sm:$0xff]  }
  0xb7   : > { %v13605_v10 = vld [vmem:[#allocation5 + $0x228] ss:$16 sps:$4 sm:$0xff]   ;;  %v13613_v11 = vld [vmem:[#allocation5 + $0x244] ss:$16 sps:$4 sm:$0xff]   ;;  %v13616_v12 = vld [vmem:[#allocation5 + $0x24c] ss:$16 sps:$4 sm:$0xff]  }
  0xb8   : > { %6096 = vmatpush1.bf16.msra.mxu0 %v13534_v26  ;;  %8026 = vmatpush1.bf16.msra.mxu1 %v13535_v27  ;;  %v13601_v13 = vld [vmem:[%s15448_s8 + $0xa0] ss:$80 sps:$4 sm:$0xff]   ;;  %v13608_v14 = vld [vmem:[%s15448_s8 + $0x144] ss:$80 sps:$4 sm:$0xff]   ;;  %v13614_v16 = vld [vmem:[#allocation5 + $0x248] ss:$16 sps:$4 sm:$0xff]  }
  0xb9   : > { %6097 = vmatprep.subr.bf16.mxu0 %v13536_v28  ;;  %8027 = vmatprep.subr.bf16.mxu1 %v13538_v29  ;;  %v13611_v15 = vld [vmem:[#allocation5 + $0x240] ss:$16 sps:$4 sm:$0xff]   ;;  %v13622_v17 = vld [vmem:[#allocation5 + $0x264] ss:$16 sps:$4 sm:$0xff]   ;;  %v13625_v18 = vld [vmem:[#allocation5 + $0x26c] ss:$16 sps:$4 sm:$0xff]  }
  0xba   : > { %v13620_v19 = vld [vmem:[#allocation5 + $0x260] ss:$16 sps:$4 sm:$0xff]   ;;  %v13623_v20 = vld [vmem:[#allocation5 + $0x268] ss:$16 sps:$4 sm:$0xff]   ;;  %v13631_v21 = vld [vmem:[#allocation5 + $0x284] ss:$16 sps:$4 sm:$0xff]  }
  0xbb   : > { %v13634_v22 = vld [vmem:[#allocation5 + $0x28c] ss:$16 sps:$4 sm:$0xff]   ;;  %v13610_v23 = vld [vmem:[%s15448_s8 + $0x140] ss:$80 sps:$4 sm:$0xff]   ;;  %v13617_v24 = vld [vmem:[%s15448_s8 + $0x1e4] ss:$80 sps:$4 sm:$0xff]  }
  0xbc   : > { %6098 = vmatpush1.bf16.msra.mxu0 %v13540_v30  ;;  %8028 = vmatpush1.bf16.msra.mxu1 %v13541_v31  ;;  %v13629_v25 = vld [vmem:[#allocation5 + $0x280] ss:$16 sps:$4 sm:$0xff]   ;;  %v13632_v26 = vld [vmem:[#allocation5 + $0x288] ss:$16 sps:$4 sm:$0xff]   ;;  %v13640_v27 = vld [vmem:[#allocation5 + $0x2a4] ss:$16 sps:$4 sm:$0xff]  }
  0xbd   : > { %6099 = vmatprep.subr.bf16.mxu0 %v13542_v32  ;;  %8029 = vmatprep.subr.bf16.mxu1 %v13544_v33  ;;  %v13643_v28 = vld [vmem:[#allocation5 + $0x2ac] ss:$16 sps:$4 sm:$0xff]   ;;  %v13638_v29 = vld [vmem:[#allocation5 + $0x2a0] ss:$16 sps:$4 sm:$0xff]   ;;  %v13641_v30 = vld [vmem:[#allocation5 + $0x2a8] ss:$16 sps:$4 sm:$0xff]  }
  0xbe   : > { %v13649_v31 = vld [vmem:[#allocation5 + $0x2c4] ss:$16 sps:$4 sm:$0xff]   ;;  %v13652_v32 = vld [vmem:[#allocation5 + $0x2cc] ss:$16 sps:$4 sm:$0xff]   ;;  %v13619_v33 = vld [vmem:[%s15448_s8 + $0x1e0] ss:$80 sps:$4 sm:$0xff]  }
  0xbf   : > { %v13679_v48 = vld [vmem:[#allocation5 + $0x32c] ss:$16 sps:$4 sm:$0xff]   ;;  %s10892_s24 = sshll.u32 %s15444_s29, 8  ;;  %s11891_s30 = sshll.u32 %s15249_s22, 12 }
  0xc0   : > { %6100 = vmatpush1.bf16.msra.mxu0 %v13546_v34  ;;  %8030 = vmatpush1.bf16.msra.mxu1 %v13547_v35  ;;  %v13626_v34 = vld [vmem:[%s15448_s8 + $0x284] ss:$80 sps:$4 sm:$0xff]   ;;  %v13647_v35 = vld [vmem:[#allocation5 + $0x2c0] ss:$16 sps:$4 sm:$0xff]   ;;  %s15923_s26 = scalar_lea.vmem [#allocation11], %s10892_s24  ;;  %s15990_s17 = scalar_lea.hbm %s16043_s5, %s11891_s30 }
  0xc1   : > { %6101 = vmatprep.subr.bf16.mxu0 %v13548_v36  ;;  %8031 = vmatprep.subr.bf16.mxu1 %v13550_v37  ;;  %v13650_v36 = vld [vmem:[#allocation5 + $0x2c8] ss:$16 sps:$4 sm:$0xff]   ;;  %v13658_v37 = vld [vmem:[#allocation5 + $0x2e4] ss:$16 sps:$4 sm:$0xff]   ;;  %s10766_s10 = sshll.u32 %s15923_s26, 4  ;;  %s10753_s23 = scalar_lea.sflag [#allocation4], %s15444_s29  ;;  %s15992_s10 = int_to_ptr.vmem [resolvable:$true] %s10766_s10 }
  0xc2   : > { %s15108_s9 = scalar_lea.vmem %s15992_s10, 4096  ;;  %s15195_s22 = smov [#allocation11]  }
  0xc3   : > { %p15109_p4 = scmp.ne.s32.totalorder %s15992_s10, %s15108_s9  ;;  %s15112_s11 = sshll.u32 %s15195_s22, 4  ;;  %s15113_s11 = int_to_ptr.vmem [resolvable:$false] %s15112_s11 }
  0xc4   : > { %6102 = vmatpush1.bf16.msra.mxu0 %v13552_v38  ;;  %8032 = vmatpush1.bf16.msra.mxu1 %v13553_v39  ;;  %v13661_v38 = vld [vmem:[#allocation5 + $0x2ec] ss:$16 sps:$4 sm:$0xff]   ;;  %v13656_v39 = vld [vmem:[#allocation5 + $0x2e0] ss:$16 sps:$4 sm:$0xff]   ;;  %s15114_s28 = scalar_lea.vmem %s15113_s11, 8192  ;;  %p15115_p12 = scmp.lt.s32.totalorder %s15992_s10, %s15113_s11 }
  0xc5   : > { %6103 = vmatprep.subr.bf16.mxu0 %v13554_v40  ;;  %8033 = vmatprep.subr.bf16.mxu1 %v13556_v41  ;;  %v13659_v40 = vld [vmem:[#allocation5 + $0x2e8] ss:$16 sps:$4 sm:$0xff]   ;;  %v13667_v41 = vld [vmem:[#allocation5 + $0x304] ss:$16 sps:$4 sm:$0xff]   ;;  %p15110_p5 = pnand %p15109_p4, %p15395_p8  ;;  %p15116_p2 = scmp.lt.s32.totalorder %s15114_s28, %s15108_s9 }
  0xc7   : > { %p15111_p7 = pneg %p15110_p5  ;;  %p15117_p1 = por %p15116_p2, %p15115_p12 }
  0xc8   : > { %6104 = vmatpush1.bf16.msra.mxu0 %v13558_v42  ;;  %8034 = vmatpush1.bf16.msra.mxu1 %v13559_v43  ;;  %v13670_v42 = vld [vmem:[#allocation5 + $0x30c] ss:$16 sps:$4 sm:$0xff]   ;;  %v13628_v43 = vld [vmem:[%s15448_s8 + $0x280] ss:$80 sps:$4 sm:$0xff]  }
  0xc9   : > { %6105 = vmatprep.subr.bf16.mxu0 %v13560_v44  ;;  %8035 = vmatprep.subr.bf16.mxu1 %v13562_v45  ;;  %v13635_v44 = vld [vmem:[%s15448_s8 + $0x324] ss:$80 sps:$4 sm:$0xff]   ;;  %v13665_v45 = vld [vmem:[#allocation5 + $0x300] ss:$16 sps:$4 sm:$0xff]   ;;  %p15118_p13 = pnand %p15117_p1, %p15111_p7 }
  0xcc   : > { %6106 = vmatpush1.bf16.msra.mxu0 %v13564_v46  ;;  %8036 = vmatpush1.bf16.msra.mxu1 %v13565_v47  ;;  %v13668_v46 = vld [vmem:[#allocation5 + $0x308] ss:$16 sps:$4 sm:$0xff]   ;;  %v13676_v47 = vld [vmem:[#allocation5 + $0x324] ss:$16 sps:$4 sm:$0xff]  }
  0xcd   : > { %6107 = vmatprep.subr.bf16.mxu0 %v13566_v49  ;;  %8037 = vmatprep.subr.bf16.mxu1 %v13568_v50  ;;  %v13674_v49 = vld [vmem:[#allocation5 + $0x320] ss:$16 sps:$4 sm:$0xff]   ;;  %v13677_v50 = vld [vmem:[#allocation5 + $0x328] ss:$16 sps:$4 sm:$0xff]  }
  0xd0   : > { %6108 = vmatpush1.bf16.msra.mxu0 %v13570_v51  ;;  %8038 = vmatpush1.bf16.msra.mxu1 %v13571_v52  ;;  %v13685_v51 = vld [vmem:[#allocation5 + $0x344] ss:$16 sps:$4 sm:$0xff]   ;;  %v13688_v52 = vld [vmem:[#allocation5 + $0x34c] ss:$16 sps:$4 sm:$0xff]  }
  0xd1   : > { %6109 = vmatprep.subr.bf16.mxu0 %v13572_v53  ;;  %8039 = vmatprep.subr.bf16.mxu1 %v13574_v54  ;;  %v13637_v53 = vld [vmem:[%s15448_s8 + $0x320] ss:$80 sps:$4 sm:$0xff]   ;;  %v13644_v54 = vld [vmem:[%s15448_s8 + $0x3c4] ss:$80 sps:$4 sm:$0xff]  }
  0xd4   : > { %6110 = vmatpush1.bf16.msra.mxu0 %v13576_v55  ;;  %8040 = vmatpush1.bf16.msra.mxu1 %v13577_v56  ;;  %v13683_v55 = vld [vmem:[#allocation5 + $0x340] ss:$16 sps:$4 sm:$0xff]   ;;  %v13686_v56 = vld [vmem:[#allocation5 + $0x348] ss:$16 sps:$4 sm:$0xff]  }
  0xd5   : > { %6111 = vmatprep.subr.bf16.mxu0 %v13578_v57  ;;  %8041 = vmatprep.subr.bf16.mxu1 %v13580_v58  ;;  %v13694_v57 = vld [vmem:[#allocation5 + $0x364] ss:$16 sps:$4 sm:$0xff]   ;;  %v13697_v58 = vld [vmem:[#allocation5 + $0x36c] ss:$16 sps:$4 sm:$0xff]  }
  0xd8   : > { %6112 = vmatpush1.bf16.msra.mxu0 %v13582_v59  ;;  %8042 = vmatpush1.bf16.msra.mxu1 %v13583_v60  ;;  %v13692_v59 = vld [vmem:[#allocation5 + $0x360] ss:$16 sps:$4 sm:$0xff]   ;;  %v13695_v60 = vld [vmem:[#allocation5 + $0x368] ss:$16 sps:$4 sm:$0xff]  }
  0xd9   : > { %6113 = vmatprep.subr.bf16.mxu0 %v13584_v61  ;;  %8043 = vmatprep.subr.bf16.mxu1 %v13586_v62  ;;  %v13703_v61 = vld [vmem:[#allocation5 + $0x384] ss:$16 sps:$4 sm:$0xff]   ;;  %v13706_v62 = vld [vmem:[#allocation5 + $0x38c] ss:$16 sps:$4 sm:$0xff]  }
  0xdc   : > { %6114 = vmatpush1.bf16.msra.mxu0 %v13588_v63  ;;  %8044 = vmatpush1.bf16.msra.mxu1 %v13589_v0  ;;  %v13646_v63 = vld [vmem:[%s15448_s8 + $0x3c0] ss:$80 sps:$4 sm:$0xff]   ;;  %v13653_v0 = vld [vmem:[%s15448_s8 + $0x464] ss:$80 sps:$4 sm:$0xff]  }
  0xdd   : > { %6276 = vmatprep.subr.bf16.mxu0 %v13595_v1  ;;  %8206 = vmatprep.subr.bf16.mxu1 %v13598_v2  ;;  %v13701_v1 = vld [vmem:[#allocation5 + $0x380] ss:$16 sps:$4 sm:$0xff]   ;;  %v13704_v2 = vld [vmem:[#allocation5 + $0x388] ss:$16 sps:$4 sm:$0xff]  }
  0xdf   : > { %6116 = vmatmul.mubr.bf16.vlgmr.msra.gmra.mrb[0].mxu0 %v13590_v3  ;;  %8046 = vmatmul.mubr.bf16.vlgmr.msra.gmra.mrb[0].mxu1 %v13590_v3  ;;  %v13712_v3 = vld [vmem:[#allocation5 + $0x3a4] ss:$16 sps:$4 sm:$0xff]  }
  0xe0   : > { %6277 = vmatpush1.bf16.msra.mxu0 %v13593_v4  ;;  %8207 = vmatpush1.bf16.msra.mxu1 %v13596_v5  ;;  %v13715_v4 = vld [vmem:[#allocation5 + $0x3ac] ss:$16 sps:$4 sm:$0xff]   ;;  %v13710_v5 = vld [vmem:[#allocation5 + $0x3a0] ss:$16 sps:$4 sm:$0xff]  }
  0xe1   : > { %6125 = vmatprep.mubr.bf16.mxu0 %v13599_v6  ;;  %8055 = vmatprep.mubr.bf16.mxu1 %v13599_v6  ;;  %v13713_v6 = vld [vmem:[#allocation5 + $0x3a8] ss:$16 sps:$4 sm:$0xff]  }
  0xe2   : > { %6278 = vmatprep.subr.bf16.mxu0 %v13604_v7  ;;  %8208 = vmatprep.subr.bf16.mxu1 %v13607_v8  ;;  %v13721_v7 = vld [vmem:[#allocation5 + $0x3c4] ss:$16 sps:$4 sm:$0xff]   ;;  %v13724_v8 = vld [vmem:[#allocation5 + $0x3cc] ss:$16 sps:$4 sm:$0xff]  }
  0xe4   : > { %6279 = vmatpush1.bf16.msra.mxu0 %v13602_v9  ;;  %8209 = vmatpush1.bf16.msra.mxu1 %v13605_v10  ;;  %v13655_v9 = vld [vmem:[%s15448_s8 + $0x460] ss:$80 sps:$4 sm:$0xff]   ;;  %v13662_v10 = vld [vmem:[%s15448_s8 + $0x504] ss:$80 sps:$4 sm:$0xff]  }
  0xe5   : > { %6280 = vmatprep.subr.bf16.mxu0 %v13613_v11  ;;  %8210 = vmatprep.subr.bf16.mxu1 %v13616_v12  ;;  %v13719_v11 = vld [vmem:[#allocation5 + $0x3c0] ss:$16 sps:$4 sm:$0xff]   ;;  %v13722_v12 = vld [vmem:[#allocation5 + $0x3c8] ss:$16 sps:$4 sm:$0xff]  }
  0xe7   : > { %6126 = vmatmul.mubr.bf16.gmra.mrb[4].mxu0 %v13601_v13  ;;  %8056 = vmatmul.mubr.bf16.gmra.mrb[4].mxu1 %v13601_v13  ;;  %v13730_v13 = vld [vmem:[#allocation5 + $0x3e4] ss:$16 sps:$4 sm:$0xff]  }
  0xe8   : > { %6135 = vmatprep.mubr.bf16.mxu0 %v13608_v14  ;;  %8065 = vmatprep.mubr.bf16.mxu1 %v13608_v14  ;;  %v13733_v14 = vld [vmem:[#allocation5 + $0x3ec] ss:$16 sps:$4 sm:$0xff]  }
  0xe9   : > { %6281 = vmatpush1.bf16.msra.mxu0 %v13611_v15  ;;  %8211 = vmatpush1.bf16.msra.mxu1 %v13614_v16  ;;  %v13728_v15 = vld [vmem:[#allocation5 + $0x3e0] ss:$16 sps:$4 sm:$0xff]   ;;  %v13731_v16 = vld [vmem:[#allocation5 + $0x3e8] ss:$16 sps:$4 sm:$0xff]  }
  0xea   : > { %6282 = vmatprep.subr.bf16.mxu0 %v13622_v17  ;;  %8212 = vmatprep.subr.bf16.mxu1 %v13625_v18  ;;  %v13739_v17 = vld [vmem:[#allocation5 + $0x404] ss:$16 sps:$4 sm:$0xff]   ;;  %v13742_v18 = vld [vmem:[#allocation5 + $0x40c] ss:$16 sps:$4 sm:$0xff]  }
  0xed   : > { %6283 = vmatpush1.bf16.msra.mxu0 %v13620_v19  ;;  %8213 = vmatpush1.bf16.msra.mxu1 %v13623_v20  ;;  %v13664_v19 = vld [vmem:[%s15448_s8 + $0x500] ss:$80 sps:$4 sm:$0xff]   ;;  %v13671_v20 = vld [vmem:[%s15448_s8 + $0x5a4] ss:$80 sps:$4 sm:$0xff]  }
  0xee   : > { %6284 = vmatprep.subr.bf16.mxu0 %v13631_v21  ;;  %8214 = vmatprep.subr.bf16.mxu1 %v13634_v22  ;;  %v13673_v21 = vld [vmem:[%s15448_s8 + $0x5a0] ss:$80 sps:$4 sm:$0xff]   ;;  %v13680_v22 = vld [vmem:[%s15448_s8 + $0x644] ss:$80 sps:$4 sm:$0xff]  }
  0xef   : > { %6136 = vmatmul.mubr.bf16.gmra.mrb[8].mxu0 %v13610_v23  ;;  %8066 = vmatmul.mubr.bf16.gmra.mrb[8].mxu1 %v13610_v23  ;;  %v13682_v23 = vld [vmem:[%s15448_s8 + $0x640] ss:$80 sps:$4 sm:$0xff]  }
  0xf0   : > { %6145 = vmatprep.mubr.bf16.mxu0 %v13617_v24  ;;  %8075 = vmatprep.mubr.bf16.mxu1 %v13617_v24  ;;  %v13689_v24 = vld [vmem:[%s15448_s8 + $0x6e4] ss:$80 sps:$4 sm:$0xff]  }
  0xf1   : > { %6285 = vmatpush1.bf16.msra.mxu0 %v13629_v25  ;;  %8215 = vmatpush1.bf16.msra.mxu1 %v13632_v26  ;;  %v13691_v25 = vld [vmem:[%s15448_s8 + $0x6e0] ss:$80 sps:$4 sm:$0xff]   ;;  %v13698_v26 = vld [vmem:[%s15448_s8 + $0x784] ss:$80 sps:$4 sm:$0xff]  }
  0xf2   : > { %6286 = vmatprep.subr.bf16.mxu0 %v13640_v27  ;;  %8216 = vmatprep.subr.bf16.mxu1 %v13643_v28  ;;  %v13700_v27 = vld [vmem:[%s15448_s8 + $0x780] ss:$80 sps:$4 sm:$0xff]   ;;  %v13707_v28 = vld [vmem:[%s15448_s8 + $0x824] ss:$80 sps:$4 sm:$0xff]  }
  0xf5   : > { %6287 = vmatpush1.bf16.msra.mxu0 %v13638_v29  ;;  %8217 = vmatpush1.bf16.msra.mxu1 %v13641_v30  ;;  %v13709_v29 = vld [vmem:[%s15448_s8 + $0x820] ss:$80 sps:$4 sm:$0xff]   ;;  %v13716_v30 = vld [vmem:[%s15448_s8 + $0x8c4] ss:$80 sps:$4 sm:$0xff]  }
  0xf6   : > { %6288 = vmatprep.subr.bf16.mxu0 %v13649_v31  ;;  %8218 = vmatprep.subr.bf16.mxu1 %v13652_v32  ;;  %v13718_v31 = vld [vmem:[%s15448_s8 + $0x8c0] ss:$80 sps:$4 sm:$0xff]   ;;  %v13725_v32 = vld [vmem:[%s15448_s8 + $0x964] ss:$80 sps:$4 sm:$0xff]  }
  0xf7   : > { %6146 = vmatmul.mubr.bf16.gmra.mrb[12].mxu0 %v13619_v33  ;;  %8076 = vmatmul.mubr.bf16.gmra.mrb[12].mxu1 %v13619_v33  ;;  %v13727_v33 = vld [vmem:[%s15448_s8 + $0x960] ss:$80 sps:$4 sm:$0xff]  }
  0xf8   : > { %6155 = vmatprep.mubr.bf16.mxu0 %v13626_v34  ;;  %8085 = vmatprep.mubr.bf16.mxu1 %v13626_v34  ;;  %v13736_v34 = vld [vmem:[%s15448_s8 + $0xc] ss:$80 sps:$4 sm:$0xff]  }
  0xf9   : > { %6289 = vmatpush1.bf16.msra.mxu0 %v13647_v35  ;;  %8219 = vmatpush1.bf16.msra.mxu1 %v13650_v36  ;;  %v13734_v35 = vld [vmem:[%s15448_s8 + $0x8] ss:$80 sps:$4 sm:$0xff]   ;;  %v13737_v36 = vld [vmem:[#allocation5 + $0x400] ss:$16 sps:$4 sm:$0xff]  }
  0xfa   : > { %6290 = vmatprep.subr.bf16.mxu0 %v13658_v37  ;;  %8220 = vmatprep.subr.bf16.mxu1 %v13661_v38  ;;  %v13740_v37 = vld [vmem:[#allocation5 + $0x408] ss:$16 sps:$4 sm:$0xff]   ;;  %v13743_v38 = vld [vmem:[%s15448_s8 + $0xac] ss:$80 sps:$4 sm:$0xff]  }
  0xfd   : > { %6291 = vmatpush1.bf16.msra.mxu0 %v13656_v39  ;;  %8221 = vmatpush1.bf16.msra.mxu1 %v13659_v40  ;;  %v13748_v39 = vld [vmem:[#allocation5 + $0x424] ss:$16 sps:$4 sm:$0xff]   ;;  %v13751_v40 = vld [vmem:[#allocation5 + $0x42c] ss:$16 sps:$4 sm:$0xff]  }
  0xfe   : > { %6292 = vmatprep.subr.bf16.mxu0 %v13667_v41  ;;  %8222 = vmatprep.subr.bf16.mxu1 %v13670_v42  ;;  %v13746_v41 = vld [vmem:[#allocation5 + $0x420] ss:$16 sps:$4 sm:$0xff]   ;;  %v13749_v42 = vld [vmem:[#allocation5 + $0x428] ss:$16 sps:$4 sm:$0xff]  }
  0xff   : > { %6156 = vmatmul.mubr.bf16.gmra.mrb[16].mxu0 %v13628_v43  ;;  %8086 = vmatmul.mubr.bf16.gmra.mrb[16].mxu1 %v13628_v43  ;;  %v13757_v43 = vld [vmem:[#allocation5 + $0x444] ss:$16 sps:$4 sm:$0xff]  }
 0x100   : > { %6165 = vmatprep.mubr.bf16.mxu0 %v13635_v44  ;;  %8095 = vmatprep.mubr.bf16.mxu1 %v13635_v44  ;;  %v13745_v44 = vld [vmem:[%s15448_s8 + $0xa8] ss:$80 sps:$4 sm:$0xff]  }
 0x101   : > { %6293 = vmatpush1.bf16.msra.mxu0 %v13665_v45  ;;  %8223 = vmatpush1.bf16.msra.mxu1 %v13668_v46  ;;  %v13760_v45 = vld [vmem:[#allocation5 + $0x44c] ss:$16 sps:$4 sm:$0xff]  }
 0x102   : > { %6294 = vmatprep.subr.bf16.mxu0 %v13676_v47  ;;  %8224 = vmatprep.subr.bf16.mxu1 %v13679_v48  ;;  %v13752_v46 = vld [vmem:[%s15448_s8 + $0x14c] ss:$80 sps:$4 sm:$0xff]   ;;  %v13755_v47 = vld [vmem:[#allocation5 + $0x440] ss:$16 sps:$4 sm:$0xff]   ;;  %v13758_v48 = vld [vmem:[#allocation5 + $0x448] ss:$16 sps:$4 sm:$0xff]  }
 0x105   : > { %6295 = vmatpush1.bf16.msra.mxu0 %v13674_v49  ;;  %8225 = vmatpush1.bf16.msra.mxu1 %v13677_v50  ;;  %v13766_v49 = vld [vmem:[#allocation5 + $0x464] ss:$16 sps:$4 sm:$0xff]   ;;  %v13769_v50 = vld [vmem:[#allocation5 + $0x46c] ss:$16 sps:$4 sm:$0xff]  }
 0x106   : > { %6296 = vmatprep.subr.bf16.mxu0 %v13685_v51  ;;  %8226 = vmatprep.subr.bf16.mxu1 %v13688_v52  ;;  %v13764_v51 = vld [vmem:[#allocation5 + $0x460] ss:$16 sps:$4 sm:$0xff]   ;;  %v13767_v52 = vld [vmem:[#allocation5 + $0x468] ss:$16 sps:$4 sm:$0xff]  }
 0x107   : > { %6166 = vmatmul.mubr.bf16.gmra.mrb[20].mxu0 %v13637_v53  ;;  %8096 = vmatmul.mubr.bf16.gmra.mrb[20].mxu1 %v13637_v53  ;;  %v13775_v53 = vld [vmem:[#allocation5 + $0x484] ss:$16 sps:$4 sm:$0xff]  }
 0x108   : > { %6175 = vmatprep.mubr.bf16.mxu0 %v13644_v54  ;;  %8105 = vmatprep.mubr.bf16.mxu1 %v13644_v54  ;;  %v13778_v54 = vld [vmem:[#allocation5 + $0x48c] ss:$16 sps:$4 sm:$0xff]  }
 0x109   : > { %6297 = vmatpush1.bf16.msra.mxu0 %v13683_v55  ;;  %8227 = vmatpush1.bf16.msra.mxu1 %v13686_v56  ;;  %v13754_v55 = vld [vmem:[%s15448_s8 + $0x148] ss:$80 sps:$4 sm:$0xff]   ;;  %v13761_v56 = vld [vmem:[%s15448_s8 + $0x1ec] ss:$80 sps:$4 sm:$0xff]  }
 0x10a   : > { %6298 = vmatprep.subr.bf16.mxu0 %v13694_v57  ;;  %8228 = vmatprep.subr.bf16.mxu1 %v13697_v58  ;;  %v13773_v57 = vld [vmem:[#allocation5 + $0x480] ss:$16 sps:$4 sm:$0xff]   ;;  %v13776_v58 = vld [vmem:[#allocation5 + $0x488] ss:$16 sps:$4 sm:$0xff]  }
 0x10d   : > { %6299 = vmatpush1.bf16.msra.mxu0 %v13692_v59  ;;  %8229 = vmatpush1.bf16.msra.mxu1 %v13695_v60  ;;  %v13784_v59 = vld [vmem:[#allocation5 + $0x4a4] ss:$16 sps:$4 sm:$0xff]   ;;  %v13787_v60 = vld [vmem:[#allocation5 + $0x4ac] ss:$16 sps:$4 sm:$0xff]  }
 0x10e   : > { %6300 = vmatprep.subr.bf16.mxu0 %v13703_v61  ;;  %8230 = vmatprep.subr.bf16.mxu1 %v13706_v62  ;;  %v13782_v61 = vld [vmem:[#allocation5 + $0x4a0] ss:$16 sps:$4 sm:$0xff]   ;;  %v13785_v62 = vld [vmem:[#allocation5 + $0x4a8] ss:$16 sps:$4 sm:$0xff]  }
 0x10f   : > { %6176 = vmatmul.mubr.bf16.gmra.mrb[24].mxu0 %v13646_v63  ;;  %8106 = vmatmul.mubr.bf16.gmra.mrb[24].mxu1 %v13646_v63  ;;  %v13793_v63 = vld [vmem:[#allocation5 + $0x4c4] ss:$16 sps:$4 sm:$0xff]  }
 0x110   : > { %6185 = vmatprep.mubr.bf16.mxu0 %v13653_v0  ;;  %8115 = vmatprep.mubr.bf16.mxu1 %v13653_v0  ;;  %v13796_v0 = vld [vmem:[#allocation5 + $0x4cc] ss:$16 sps:$4 sm:$0xff]  }
 0x111   : > { %6301 = vmatpush1.bf16.msra.mxu0 %v13701_v1  ;;  %8231 = vmatpush1.bf16.msra.mxu1 %v13704_v2  ;;  %v13763_v1 = vld [vmem:[%s15448_s8 + $0x1e8] ss:$80 sps:$4 sm:$0xff]   ;;  %v13770_v2 = vld [vmem:[%s15448_s8 + $0x28c] ss:$80 sps:$4 sm:$0xff]  }
 0x112   : > { %6302 = vmatprep.subr.bf16.mxu0 %v13712_v3  ;;  %8232 = vmatprep.subr.bf16.mxu1 %v13715_v4  ;;  %v13791_v3 = vld [vmem:[#allocation5 + $0x4c0] ss:$16 sps:$4 sm:$0xff]   ;;  %v13794_v4 = vld [vmem:[#allocation5 + $0x4c8] ss:$16 sps:$4 sm:$0xff]  }
 0x115   : > { %6303 = vmatpush1.bf16.msra.mxu0 %v13710_v5  ;;  %8233 = vmatpush1.bf16.msra.mxu1 %v13713_v6  ;;  %v13802_v5 = vld [vmem:[#allocation5 + $0x4e4] ss:$16 sps:$4 sm:$0xff]   ;;  %v13805_v6 = vld [vmem:[#allocation5 + $0x4ec] ss:$16 sps:$4 sm:$0xff]  }
 0x116   : > { %6304 = vmatprep.subr.bf16.mxu0 %v13721_v7  ;;  %8234 = vmatprep.subr.bf16.mxu1 %v13724_v8  ;;  %v13800_v7 = vld [vmem:[#allocation5 + $0x4e0] ss:$16 sps:$4 sm:$0xff]   ;;  %v13803_v8 = vld [vmem:[#allocation5 + $0x4e8] ss:$16 sps:$4 sm:$0xff]  }
 0x117   : > { %6186 = vmatmul.mubr.bf16.gmra.mrb[28].mxu0 %v13655_v9  ;;  %8116 = vmatmul.mubr.bf16.gmra.mrb[28].mxu1 %v13655_v9  ;;  %v13811_v9 = vld [vmem:[#allocation5 + $0x504] ss:$16 sps:$4 sm:$0xff]  }
 0x118   : > { %6195 = vmatprep.mubr.bf16.mxu0 %v13662_v10  ;;  %8125 = vmatprep.mubr.bf16.mxu1 %v13662_v10  ;;  %v13814_v10 = vld [vmem:[#allocation5 + $0x50c] ss:$16 sps:$4 sm:$0xff]  }
 0x119   : > { %6305 = vmatpush1.bf16.msra.mxu0 %v13719_v11  ;;  %8235 = vmatpush1.bf16.msra.mxu1 %v13722_v12  ;;  %v13772_v11 = vld [vmem:[%s15448_s8 + $0x288] ss:$80 sps:$4 sm:$0xff]   ;;  %v13779_v12 = vld [vmem:[%s15448_s8 + $0x32c] ss:$80 sps:$4 sm:$0xff]  }
 0x11a   : > { %6306 = vmatprep.subr.bf16.mxu0 %v13730_v13  ;;  %8236 = vmatprep.subr.bf16.mxu1 %v13733_v14  ;;  %v13809_v13 = vld [vmem:[#allocation5 + $0x500] ss:$16 sps:$4 sm:$0xff]   ;;  %v13812_v14 = vld [vmem:[#allocation5 + $0x508] ss:$16 sps:$4 sm:$0xff]  }
 0x11d   : > { %6307 = vmatpush1.bf16.msra.mxu0 %v13728_v15  ;;  %8237 = vmatpush1.bf16.msra.mxu1 %v13731_v16  ;;  %v13820_v15 = vld [vmem:[#allocation5 + $0x524] ss:$16 sps:$4 sm:$0xff]   ;;  %v13823_v16 = vld [vmem:[#allocation5 + $0x52c] ss:$16 sps:$4 sm:$0xff]  }
 0x11e   : > { %6469 = vmatprep.subr.bf16.mxu0 %v13739_v17  ;;  %8399 = vmatprep.subr.bf16.mxu1 %v13742_v18  ;;  %v13818_v17 = vld [vmem:[#allocation5 + $0x520] ss:$16 sps:$4 sm:$0xff]   ;;  %v13821_v18 = vld [vmem:[#allocation5 + $0x528] ss:$16 sps:$4 sm:$0xff]  }
 0x11f   : > { %6196 = vmatmul.mubr.bf16.gmra.mrb[32].mxu0 %v13664_v19  ;;  %8126 = vmatmul.mubr.bf16.gmra.mrb[32].mxu1 %v13664_v19  ;;  %v13829_v19 = vld [vmem:[#allocation5 + $0x544] ss:$16 sps:$4 sm:$0xff]  }
 0x120   : > { %6205 = vmatprep.mubr.bf16.mxu0 %v13671_v20  ;;  %8135 = vmatprep.mubr.bf16.mxu1 %v13671_v20  ;;  %v13832_v20 = vld [vmem:[#allocation5 + $0x54c] ss:$16 sps:$4 sm:$0xff]  }
 0x127   : > { %6206 = vmatmul.mubr.bf16.gmra.mrb[36].mxu0 %v13673_v21  ;;  %8136 = vmatmul.mubr.bf16.gmra.mrb[36].mxu1 %v13673_v21  ;;  %v13781_v21 = vld [vmem:[%s15448_s8 + $0x328] ss:$80 sps:$4 sm:$0xff]  }
 0x128   : > { %6215 = vmatprep.mubr.bf16.mxu0 %v13680_v22  ;;  %8145 = vmatprep.mubr.bf16.mxu1 %v13680_v22  ;;  %v13788_v22 = vld [vmem:[%s15448_s8 + $0x3cc] ss:$80 sps:$4 sm:$0xff]  }
 0x12f   : > { %6216 = vmatmul.mubr.bf16.gmra.mrb[40].mxu0 %v13682_v23  ;;  %8146 = vmatmul.mubr.bf16.gmra.mrb[40].mxu1 %v13682_v23  ;;  %v13827_v23 = vld [vmem:[#allocation5 + $0x540] ss:$16 sps:$4 sm:$0xff]  }
 0x130   : > { %6225 = vmatprep.mubr.bf16.mxu0 %v13689_v24  ;;  %8155 = vmatprep.mubr.bf16.mxu1 %v13689_v24  ;;  %v13830_v24 = vld [vmem:[#allocation5 + $0x548] ss:$16 sps:$4 sm:$0xff]  }
 0x137   : > { %6226 = vmatmul.mubr.bf16.gmra.mrb[44].mxu0 %v13691_v25  ;;  %8156 = vmatmul.mubr.bf16.gmra.mrb[44].mxu1 %v13691_v25  ;;  %v13838_v25 = vld [vmem:[#allocation5 + $0x564] ss:$16 sps:$4 sm:$0xff]  }
 0x138   : > { %6235 = vmatprep.mubr.bf16.mxu0 %v13698_v26  ;;  %8165 = vmatprep.mubr.bf16.mxu1 %v13698_v26  ;;  %v13841_v26 = vld [vmem:[#allocation5 + $0x56c] ss:$16 sps:$4 sm:$0xff]  }
 0x13f   : > { %6236 = vmatmul.mubr.bf16.gmra.mrb[48].mxu0 %v13700_v27  ;;  %8166 = vmatmul.mubr.bf16.gmra.mrb[48].mxu1 %v13700_v27  ;;  %v13836_v27 = vld [vmem:[#allocation5 + $0x560] ss:$16 sps:$4 sm:$0xff]  }
 0x140   : > { %6245 = vmatprep.mubr.bf16.mxu0 %v13707_v28  ;;  %8175 = vmatprep.mubr.bf16.mxu1 %v13707_v28  ;;  %v13839_v28 = vld [vmem:[#allocation5 + $0x568] ss:$16 sps:$4 sm:$0xff]  }
 0x147   : > { %6246 = vmatmul.mubr.bf16.gmra.mrb[52].mxu0 %v13709_v29  ;;  %8176 = vmatmul.mubr.bf16.gmra.mrb[52].mxu1 %v13709_v29  ;;  %v13847_v29 = vld [vmem:[#allocation5 + $0x584] ss:$16 sps:$4 sm:$0xff]  }
 0x148   : > { %6255 = vmatprep.mubr.bf16.mxu0 %v13716_v30  ;;  %8185 = vmatprep.mubr.bf16.mxu1 %v13716_v30  ;;  %v13850_v30 = vld [vmem:[#allocation5 + $0x58c] ss:$16 sps:$4 sm:$0xff]  }
 0x14f   : > { %6256 = vmatmul.mubr.bf16.gmra.mrb[56].mxu0 %v13718_v31  ;;  %8186 = vmatmul.mubr.bf16.gmra.mrb[56].mxu1 %v13718_v31  ;;  %v13790_v31 = vld [vmem:[%s15448_s8 + $0x3c8] ss:$80 sps:$4 sm:$0xff]  }
 0x150   : > { %6265 = vmatprep.mubr.bf16.mxu0 %v13725_v32  ;;  %8195 = vmatprep.mubr.bf16.mxu1 %v13725_v32  ;;  %v13797_v32 = vld [vmem:[%s15448_s8 + $0x46c] ss:$80 sps:$4 sm:$0xff]  }
 0x157   : > { %6266 = vmatmul.mubr.bf16.gmra.mrb[60].mxu0 %v13727_v33  ;;  %8196 = vmatmul.mubr.bf16.gmra.mrb[60].mxu1 %v13727_v33  ;;  %v13845_v33 = vld [vmem:[#allocation5 + $0x580] ss:$16 sps:$4 sm:$0xff]  }
 0x158   : > { %6308 = vmatprep.mubr.bf16.mxu0 %v13736_v34  ;;  %8238 = vmatprep.mubr.bf16.mxu1 %v13736_v34  ;;  %v13848_v34 = vld [vmem:[#allocation5 + $0x588] ss:$16 sps:$4 sm:$0xff]  }
 0x15f   : > { %6309 = vmatmul.mubr.bf16.vlgmr.msra.gmra.mrb[0].mxu0 %v13734_v35  ;;  %8239 = vmatmul.mubr.bf16.vlgmr.msra.gmra.mrb[0].mxu1 %v13734_v35  ;;  %v13856_v35 = vld [vmem:[#allocation5 + $0x5a4] ss:$16 sps:$4 sm:$0xff]  }
 0x160   : > { %6470 = vmatpush1.bf16.msra.mxu0 %v13737_v36  ;;  %8400 = vmatpush1.bf16.msra.mxu1 %v13740_v37  ;;  %v13859_v36 = vld [vmem:[#allocation5 + $0x5ac] ss:$16 sps:$4 sm:$0xff]   ;;  %v13854_v37 = vld [vmem:[#allocation5 + $0x5a0] ss:$16 sps:$4 sm:$0xff]  }
 0x161   : > { %6318 = vmatprep.mubr.bf16.mxu0 %v13743_v38  ;;  %8248 = vmatprep.mubr.bf16.mxu1 %v13743_v38  ;;  %v13857_v38 = vld [vmem:[#allocation5 + $0x5a8] ss:$16 sps:$4 sm:$0xff]  }
 0x162   : > { %6471 = vmatprep.subr.bf16.mxu0 %v13748_v39  ;;  %8401 = vmatprep.subr.bf16.mxu1 %v13751_v40  ;;  %v13865_v39 = vld [vmem:[#allocation5 + $0x5c4] ss:$16 sps:$4 sm:$0xff]   ;;  %v13868_v40 = vld [vmem:[#allocation5 + $0x5cc] ss:$16 sps:$4 sm:$0xff]  }
 0x164   : > { %6472 = vmatpush1.bf16.msra.mxu0 %v13746_v41  ;;  %8402 = vmatpush1.bf16.msra.mxu1 %v13749_v42  ;;  %v13799_v41 = vld [vmem:[%s15448_s8 + $0x468] ss:$80 sps:$4 sm:$0xff]   ;;  %v13806_v42 = vld [vmem:[%s15448_s8 + $0x50c] ss:$80 sps:$4 sm:$0xff]  }
 0x165   : > { %6473 = vmatprep.subr.bf16.mxu0 %v13757_v43  ;;  %8403 = vmatprep.subr.bf16.mxu1 %v13760_v45  ;;  %v13863_v43 = vld [vmem:[#allocation5 + $0x5c0] ss:$16 sps:$4 sm:$0xff]   ;;  %v13874_v45 = vld [vmem:[#allocation5 + $0x5e4] ss:$16 sps:$4 sm:$0xff]  }
 0x167   : > { %6319 = vmatmul.mubr.bf16.gmra.mrb[4].mxu0 %v13745_v44  ;;  %8249 = vmatmul.mubr.bf16.gmra.mrb[4].mxu1 %v13745_v44  ;;  %v13866_v44 = vld [vmem:[#allocation5 + $0x5c8] ss:$16 sps:$4 sm:$0xff]  }
 0x168   : > { %6328 = vmatprep.mubr.bf16.mxu0 %v13752_v46  ;;  %8258 = vmatprep.mubr.bf16.mxu1 %v13752_v46  ;;  %v13877_v46 = vld [vmem:[#allocation5 + $0x5ec] ss:$16 sps:$4 sm:$0xff]  }
 0x169   : > { %6474 = vmatpush1.bf16.msra.mxu0 %v13755_v47  ;;  %8404 = vmatpush1.bf16.msra.mxu1 %v13758_v48  ;;  %v13872_v47 = vld [vmem:[#allocation5 + $0x5e0] ss:$16 sps:$4 sm:$0xff]   ;;  %v13875_v48 = vld [vmem:[#allocation5 + $0x5e8] ss:$16 sps:$4 sm:$0xff]  }
 0x16a   : > { %6475 = vmatprep.subr.bf16.mxu0 %v13766_v49  ;;  %8405 = vmatprep.subr.bf16.mxu1 %v13769_v50  ;;  %v13883_v49 = vld [vmem:[#allocation5 + $0x604] ss:$16 sps:$4 sm:$0xff]   ;;  %v13886_v50 = vld [vmem:[#allocation5 + $0x60c] ss:$16 sps:$4 sm:$0xff]  }
 0x16d   : > { %6476 = vmatpush1.bf16.msra.mxu0 %v13764_v51  ;;  %8406 = vmatpush1.bf16.msra.mxu1 %v13767_v52  ;;  %v13808_v51 = vld [vmem:[%s15448_s8 + $0x508] ss:$80 sps:$4 sm:$0xff]   ;;  %v13815_v52 = vld [vmem:[%s15448_s8 + $0x5ac] ss:$80 sps:$4 sm:$0xff]  }
 0x16e   : > { %6477 = vmatprep.subr.bf16.mxu0 %v13775_v53  ;;  %8407 = vmatprep.subr.bf16.mxu1 %v13778_v54  ;;  %v13817_v53 = vld [vmem:[%s15448_s8 + $0x5a8] ss:$80 sps:$4 sm:$0xff]   ;;  %v13824_v54 = vld [vmem:[%s15448_s8 + $0x64c] ss:$80 sps:$4 sm:$0xff]  }
 0x16f   : > { %6329 = vmatmul.mubr.bf16.gmra.mrb[8].mxu0 %v13754_v55  ;;  %8259 = vmatmul.mubr.bf16.gmra.mrb[8].mxu1 %v13754_v55  ;;  %v13826_v55 = vld [vmem:[%s15448_s8 + $0x648] ss:$80 sps:$4 sm:$0xff]  }
 0x170   : > { %6338 = vmatprep.mubr.bf16.mxu0 %v13761_v56  ;;  %8268 = vmatprep.mubr.bf16.mxu1 %v13761_v56  ;;  %v13833_v56 = vld [vmem:[%s15448_s8 + $0x6ec] ss:$80 sps:$4 sm:$0xff]  }
 0x171   : > { %6478 = vmatpush1.bf16.msra.mxu0 %v13773_v57  ;;  %8408 = vmatpush1.bf16.msra.mxu1 %v13776_v58  ;;  %v13835_v57 = vld [vmem:[%s15448_s8 + $0x6e8] ss:$80 sps:$4 sm:$0xff]   ;;  %v13842_v58 = vld [vmem:[%s15448_s8 + $0x78c] ss:$80 sps:$4 sm:$0xff]  }
 0x172   : > { %6479 = vmatprep.subr.bf16.mxu0 %v13784_v59  ;;  %8409 = vmatprep.subr.bf16.mxu1 %v13787_v60  ;;  %v13844_v59 = vld [vmem:[%s15448_s8 + $0x788] ss:$80 sps:$4 sm:$0xff]   ;;  %v13851_v60 = vld [vmem:[%s15448_s8 + $0x82c] ss:$80 sps:$4 sm:$0xff]  }
 0x175   : > { %6480 = vmatpush1.bf16.msra.mxu0 %v13782_v61  ;;  %8410 = vmatpush1.bf16.msra.mxu1 %v13785_v62  ;;  %v13853_v61 = vld [vmem:[%s15448_s8 + $0x828] ss:$80 sps:$4 sm:$0xff]   ;;  %v13860_v62 = vld [vmem:[%s15448_s8 + $0x8cc] ss:$80 sps:$4 sm:$0xff]  }
 0x176   : > { %6481 = vmatprep.subr.bf16.mxu0 %v13793_v63  ;;  %8411 = vmatprep.subr.bf16.mxu1 %v13796_v0  ;;  %v13862_v63 = vld [vmem:[%s15448_s8 + $0x8c8] ss:$80 sps:$4 sm:$0xff]   ;;  %v13869_v0 = vld [vmem:[%s15448_s8 + $0x96c] ss:$80 sps:$4 sm:$0xff]  }
 0x177   : > { %6339 = vmatmul.mubr.bf16.gmra.mrb[12].mxu0 %v13763_v1  ;;  %8269 = vmatmul.mubr.bf16.gmra.mrb[12].mxu1 %v13763_v1  ;;  %v13871_v1 = vld [vmem:[%s15448_s8 + $0x968] ss:$80 sps:$4 sm:$0xff]  }
 0x178   : > { %6348 = vmatprep.mubr.bf16.mxu0 %v13770_v2  ;;  %8278 = vmatprep.mubr.bf16.mxu1 %v13770_v2  ;;  %v13880_v2 = vld [vmem:[%s15448_s8 + $0x14] ss:$80 sps:$4 sm:$0xff]  }
 0x179   : > { %6482 = vmatpush1.bf16.msra.mxu0 %v13791_v3  ;;  %8412 = vmatpush1.bf16.msra.mxu1 %v13794_v4  ;;  %v13878_v3 = vld [vmem:[%s15448_s8 + $0x10] ss:$80 sps:$4 sm:$0xff]  }
 0x17a   : > { %6483 = vmatprep.subr.bf16.mxu0 %v13802_v5  ;;  %8413 = vmatprep.subr.bf16.mxu1 %v13805_v6  ;;  %v13881_v4 = vld [vmem:[#allocation5 + $0x600] ss:$16 sps:$4 sm:$0xff]   ;;  %v13884_v5 = vld [vmem:[#allocation5 + $0x608] ss:$16 sps:$4 sm:$0xff]   ;;  %v13887_v6 = vld [vmem:[%s15448_s8 + $0xb4] ss:$80 sps:$4 sm:$0xff]  }
 0x17d   : > { %6484 = vmatpush1.bf16.msra.mxu0 %v13800_v7  ;;  %8414 = vmatpush1.bf16.msra.mxu1 %v13803_v8  ;;  %v13892_v7 = vld [vmem:[#allocation5 + $0x624] ss:$16 sps:$4 sm:$0xff]   ;;  %v13895_v8 = vld [vmem:[#allocation5 + $0x62c] ss:$16 sps:$4 sm:$0xff]  }
 0x17e   : > { %6485 = vmatprep.subr.bf16.mxu0 %v13811_v9  ;;  %8415 = vmatprep.subr.bf16.mxu1 %v13814_v10  ;;  %v13890_v9 = vld [vmem:[#allocation5 + $0x620] ss:$16 sps:$4 sm:$0xff]   ;;  %v13893_v10 = vld [vmem:[#allocation5 + $0x628] ss:$16 sps:$4 sm:$0xff]  }
 0x17f   : > { %6349 = vmatmul.mubr.bf16.gmra.mrb[16].mxu0 %v13772_v11  ;;  %8279 = vmatmul.mubr.bf16.gmra.mrb[16].mxu1 %v13772_v11  ;;  %v13901_v11 = vld [vmem:[#allocation5 + $0x644] ss:$16 sps:$4 sm:$0xff]  }
 0x180   : > { %6358 = vmatprep.mubr.bf16.mxu0 %v13779_v12  ;;  %8288 = vmatprep.mubr.bf16.mxu1 %v13779_v12  ;;  %v13889_v12 = vld [vmem:[%s15448_s8 + $0xb0] ss:$80 sps:$4 sm:$0xff]  }
 0x181   : > { %6486 = vmatpush1.bf16.msra.mxu0 %v13809_v13  ;;  %8416 = vmatpush1.bf16.msra.mxu1 %v13812_v14  ;;  %v13904_v13 = vld [vmem:[#allocation5 + $0x64c] ss:$16 sps:$4 sm:$0xff]   ;;  %v13896_v14 = vld [vmem:[%s15448_s8 + $0x154] ss:$80 sps:$4 sm:$0xff]  }
 0x182   : > { %6487 = vmatprep.subr.bf16.mxu0 %v13820_v15  ;;  %8417 = vmatprep.subr.bf16.mxu1 %v13823_v16  ;;  %v13899_v15 = vld [vmem:[#allocation5 + $0x640] ss:$16 sps:$4 sm:$0xff]   ;;  %v13902_v16 = vld [vmem:[#allocation5 + $0x648] ss:$16 sps:$4 sm:$0xff]  }
 0x185   : > { %6488 = vmatpush1.bf16.msra.mxu0 %v13818_v17  ;;  %8418 = vmatpush1.bf16.msra.mxu1 %v13821_v18  ;;  %v13910_v17 = vld [vmem:[#allocation5 + $0x664] ss:$16 sps:$4 sm:$0xff]   ;;  %v13913_v18 = vld [vmem:[#allocation5 + $0x66c] ss:$16 sps:$4 sm:$0xff]  }
 0x186   : > { %6489 = vmatprep.subr.bf16.mxu0 %v13829_v19  ;;  %8419 = vmatprep.subr.bf16.mxu1 %v13832_v20  ;;  %v13908_v19 = vld [vmem:[#allocation5 + $0x660] ss:$16 sps:$4 sm:$0xff]   ;;  %v13911_v20 = vld [vmem:[#allocation5 + $0x668] ss:$16 sps:$4 sm:$0xff]  }
 0x187   : > { %6359 = vmatmul.mubr.bf16.gmra.mrb[20].mxu0 %v13781_v21  ;;  %8289 = vmatmul.mubr.bf16.gmra.mrb[20].mxu1 %v13781_v21  ;;  %v13919_v21 = vld [vmem:[#allocation5 + $0x684] ss:$16 sps:$4 sm:$0xff]  }
 0x188   : > { %6368 = vmatprep.mubr.bf16.mxu0 %v13788_v22  ;;  %8298 = vmatprep.mubr.bf16.mxu1 %v13788_v22  ;;  %v13922_v22 = vld [vmem:[#allocation5 + $0x68c] ss:$16 sps:$4 sm:$0xff]  }
 0x189   : > { %6490 = vmatpush1.bf16.msra.mxu0 %v13827_v23  ;;  %8420 = vmatpush1.bf16.msra.mxu1 %v13830_v24  ;;  %v13898_v23 = vld [vmem:[%s15448_s8 + $0x150] ss:$80 sps:$4 sm:$0xff]   ;;  %v13905_v24 = vld [vmem:[%s15448_s8 + $0x1f4] ss:$80 sps:$4 sm:$0xff]  }
 0x18a   : > { %6491 = vmatprep.subr.bf16.mxu0 %v13838_v25  ;;  %8421 = vmatprep.subr.bf16.mxu1 %v13841_v26  ;;  %v13917_v25 = vld [vmem:[#allocation5 + $0x680] ss:$16 sps:$4 sm:$0xff]   ;;  %v13920_v26 = vld [vmem:[#allocation5 + $0x688] ss:$16 sps:$4 sm:$0xff]  }
 0x18d   : > { %6492 = vmatpush1.bf16.msra.mxu0 %v13836_v27  ;;  %8422 = vmatpush1.bf16.msra.mxu1 %v13839_v28  ;;  %v13928_v27 = vld [vmem:[#allocation5 + $0x6a4] ss:$16 sps:$4 sm:$0xff]   ;;  %v13931_v28 = vld [vmem:[#allocation5 + $0x6ac] ss:$16 sps:$4 sm:$0xff]  }
 0x18e   : > { %6493 = vmatprep.subr.bf16.mxu0 %v13847_v29  ;;  %8423 = vmatprep.subr.bf16.mxu1 %v13850_v30  ;;  %v13926_v29 = vld [vmem:[#allocation5 + $0x6a0] ss:$16 sps:$4 sm:$0xff]   ;;  %v13929_v30 = vld [vmem:[#allocation5 + $0x6a8] ss:$16 sps:$4 sm:$0xff]  }
 0x18f   : > { %6369 = vmatmul.mubr.bf16.gmra.mrb[24].mxu0 %v13790_v31  ;;  %8299 = vmatmul.mubr.bf16.gmra.mrb[24].mxu1 %v13790_v31  ;;  %v13937_v31 = vld [vmem:[#allocation5 + $0x6c4] ss:$16 sps:$4 sm:$0xff]  }
 0x190   : > { %6378 = vmatprep.mubr.bf16.mxu0 %v13797_v32  ;;  %8308 = vmatprep.mubr.bf16.mxu1 %v13797_v32  ;;  %v13940_v32 = vld [vmem:[#allocation5 + $0x6cc] ss:$16 sps:$4 sm:$0xff]  }
 0x191   : > { %6494 = vmatpush1.bf16.msra.mxu0 %v13845_v33  ;;  %8424 = vmatpush1.bf16.msra.mxu1 %v13848_v34  ;;  %v13907_v33 = vld [vmem:[%s15448_s8 + $0x1f0] ss:$80 sps:$4 sm:$0xff]   ;;  %v13914_v34 = vld [vmem:[%s15448_s8 + $0x294] ss:$80 sps:$4 sm:$0xff]  }
 0x192   : > { %6495 = vmatprep.subr.bf16.mxu0 %v13856_v35  ;;  %8425 = vmatprep.subr.bf16.mxu1 %v13859_v36  ;;  %v13935_v35 = vld [vmem:[#allocation5 + $0x6c0] ss:$16 sps:$4 sm:$0xff]   ;;  %v13938_v36 = vld [vmem:[#allocation5 + $0x6c8] ss:$16 sps:$4 sm:$0xff]  }
 0x195   : > { %6496 = vmatpush1.bf16.msra.mxu0 %v13854_v37  ;;  %8426 = vmatpush1.bf16.msra.mxu1 %v13857_v38  ;;  %v13946_v37 = vld [vmem:[#allocation5 + $0x6e4] ss:$16 sps:$4 sm:$0xff]   ;;  %v13949_v38 = vld [vmem:[#allocation5 + $0x6ec] ss:$16 sps:$4 sm:$0xff]  }
 0x196   : > { %6497 = vmatprep.subr.bf16.mxu0 %v13865_v39  ;;  %8427 = vmatprep.subr.bf16.mxu1 %v13868_v40  ;;  %v13944_v39 = vld [vmem:[#allocation5 + $0x6e0] ss:$16 sps:$4 sm:$0xff]   ;;  %v13947_v40 = vld [vmem:[#allocation5 + $0x6e8] ss:$16 sps:$4 sm:$0xff]  }
 0x197   : > { %6379 = vmatmul.mubr.bf16.gmra.mrb[28].mxu0 %v13799_v41  ;;  %8309 = vmatmul.mubr.bf16.gmra.mrb[28].mxu1 %v13799_v41  ;;  %v13955_v41 = vld [vmem:[#allocation5 + $0x704] ss:$16 sps:$4 sm:$0xff]  }
 0x198   : > { %6388 = vmatprep.mubr.bf16.mxu0 %v13806_v42  ;;  %8318 = vmatprep.mubr.bf16.mxu1 %v13806_v42  ;;  %v13958_v42 = vld [vmem:[#allocation5 + $0x70c] ss:$16 sps:$4 sm:$0xff]  }
 0x199   : > { %6498 = vmatpush1.bf16.msra.mxu0 %v13863_v43  ;;  %8428 = vmatpush1.bf16.msra.mxu1 %v13866_v44  ;;  %v13916_v43 = vld [vmem:[%s15448_s8 + $0x290] ss:$80 sps:$4 sm:$0xff]   ;;  %v13923_v44 = vld [vmem:[%s15448_s8 + $0x334] ss:$80 sps:$4 sm:$0xff]  }
 0x19a   : > { %6499 = vmatprep.subr.bf16.mxu0 %v13874_v45  ;;  %8429 = vmatprep.subr.bf16.mxu1 %v13877_v46  ;;  %v13953_v45 = vld [vmem:[#allocation5 + $0x700] ss:$16 sps:$4 sm:$0xff]   ;;  %v13956_v46 = vld [vmem:[#allocation5 + $0x708] ss:$16 sps:$4 sm:$0xff]  }
 0x19d   : > { %6500 = vmatpush1.bf16.msra.mxu0 %v13872_v47  ;;  %8430 = vmatpush1.bf16.msra.mxu1 %v13875_v48  ;;  %v13964_v47 = vld [vmem:[#allocation5 + $0x724] ss:$16 sps:$4 sm:$0xff]   ;;  %v13967_v48 = vld [vmem:[#allocation5 + $0x72c] ss:$16 sps:$4 sm:$0xff]  }
 0x19e   : > { %6662 = vmatprep.subr.bf16.mxu0 %v13883_v49  ;;  %8592 = vmatprep.subr.bf16.mxu1 %v13886_v50  ;;  %v13962_v49 = vld [vmem:[#allocation5 + $0x720] ss:$16 sps:$4 sm:$0xff]   ;;  %v13965_v50 = vld [vmem:[#allocation5 + $0x728] ss:$16 sps:$4 sm:$0xff]  }
 0x19f   : > { %6389 = vmatmul.mubr.bf16.gmra.mrb[32].mxu0 %v13808_v51  ;;  %8319 = vmatmul.mubr.bf16.gmra.mrb[32].mxu1 %v13808_v51  ;;  %v13973_v51 = vld [vmem:[#allocation5 + $0x744] ss:$16 sps:$4 sm:$0xff]  }
 0x1a0   : > { %6398 = vmatprep.mubr.bf16.mxu0 %v13815_v52  ;;  %8328 = vmatprep.mubr.bf16.mxu1 %v13815_v52  ;;  %v13976_v52 = vld [vmem:[#allocation5 + $0x74c] ss:$16 sps:$4 sm:$0xff]  }
 0x1a7   : > { %6399 = vmatmul.mubr.bf16.gmra.mrb[36].mxu0 %v13817_v53  ;;  %8329 = vmatmul.mubr.bf16.gmra.mrb[36].mxu1 %v13817_v53  ;;  %v13925_v53 = vld [vmem:[%s15448_s8 + $0x330] ss:$80 sps:$4 sm:$0xff]  }
 0x1a8   : > { %6408 = vmatprep.mubr.bf16.mxu0 %v13824_v54  ;;  %8338 = vmatprep.mubr.bf16.mxu1 %v13824_v54  ;;  %v13932_v54 = vld [vmem:[%s15448_s8 + $0x3d4] ss:$80 sps:$4 sm:$0xff]  }
 0x1af   : > { %6409 = vmatmul.mubr.bf16.gmra.mrb[40].mxu0 %v13826_v55  ;;  %8339 = vmatmul.mubr.bf16.gmra.mrb[40].mxu1 %v13826_v55  ;;  %v13971_v55 = vld [vmem:[#allocation5 + $0x740] ss:$16 sps:$4 sm:$0xff]  }
 0x1b0   : > { %6418 = vmatprep.mubr.bf16.mxu0 %v13833_v56  ;;  %8348 = vmatprep.mubr.bf16.mxu1 %v13833_v56  ;;  %v13974_v56 = vld [vmem:[#allocation5 + $0x748] ss:$16 sps:$4 sm:$0xff]  }
 0x1b7   : > { %6419 = vmatmul.mubr.bf16.gmra.mrb[44].mxu0 %v13835_v57  ;;  %8349 = vmatmul.mubr.bf16.gmra.mrb[44].mxu1 %v13835_v57  ;;  %v13982_v57 = vld [vmem:[#allocation5 + $0x764] ss:$16 sps:$4 sm:$0xff]  }
 0x1b8   : > { %6428 = vmatprep.mubr.bf16.mxu0 %v13842_v58  ;;  %8358 = vmatprep.mubr.bf16.mxu1 %v13842_v58  ;;  %v13985_v58 = vld [vmem:[#allocation5 + $0x76c] ss:$16 sps:$4 sm:$0xff]  }
 0x1bf   : > { %6429 = vmatmul.mubr.bf16.gmra.mrb[48].mxu0 %v13844_v59  ;;  %8359 = vmatmul.mubr.bf16.gmra.mrb[48].mxu1 %v13844_v59  ;;  %v13980_v59 = vld [vmem:[#allocation5 + $0x760] ss:$16 sps:$4 sm:$0xff]  }
 0x1c0   : > { %6438 = vmatprep.mubr.bf16.mxu0 %v13851_v60  ;;  %8368 = vmatprep.mubr.bf16.mxu1 %v13851_v60  ;;  %v13983_v60 = vld [vmem:[#allocation5 + $0x768] ss:$16 sps:$4 sm:$0xff]  }
 0x1c7   : > { %6439 = vmatmul.mubr.bf16.gmra.mrb[52].mxu0 %v13853_v61  ;;  %8369 = vmatmul.mubr.bf16.gmra.mrb[52].mxu1 %v13853_v61  ;;  %v13991_v61 = vld [vmem:[#allocation5 + $0x784] ss:$16 sps:$4 sm:$0xff]  }
 0x1c8   : > { %6448 = vmatprep.mubr.bf16.mxu0 %v13860_v62  ;;  %8378 = vmatprep.mubr.bf16.mxu1 %v13860_v62  ;;  %v13994_v62 = vld [vmem:[#allocation5 + $0x78c] ss:$16 sps:$4 sm:$0xff]  }
 0x1cf   : > { %6449 = vmatmul.mubr.bf16.gmra.mrb[56].mxu0 %v13862_v63  ;;  %8379 = vmatmul.mubr.bf16.gmra.mrb[56].mxu1 %v13862_v63  ;;  %v13934_v63 = vld [vmem:[%s15448_s8 + $0x3d0] ss:$80 sps:$4 sm:$0xff]  }
 0x1d0   : > { %6458 = vmatprep.mubr.bf16.mxu0 %v13869_v0  ;;  %8388 = vmatprep.mubr.bf16.mxu1 %v13869_v0  ;;  %v13941_v0 = vld [vmem:[%s15448_s8 + $0x474] ss:$80 sps:$4 sm:$0xff]  }
 0x1d7   : > { %6459 = vmatmul.mubr.bf16.gmra.mrb[60].mxu0 %v13871_v1  ;;  %8389 = vmatmul.mubr.bf16.gmra.mrb[60].mxu1 %v13871_v1  ;;  %v13989_v1 = vld [vmem:[#allocation5 + $0x780] ss:$16 sps:$4 sm:$0xff]  }
 0x1d8   : > { %6501 = vmatprep.mubr.bf16.mxu0 %v13880_v2  ;;  %8431 = vmatprep.mubr.bf16.mxu1 %v13880_v2  ;;  %v13992_v2 = vld [vmem:[#allocation5 + $0x788] ss:$16 sps:$4 sm:$0xff]  }
 0x1df   : > { %6502 = vmatmul.mubr.bf16.vlgmr.msra.gmra.mrb[0].mxu0 %v13878_v3  ;;  %8432 = vmatmul.mubr.bf16.vlgmr.msra.gmra.mrb[0].mxu1 %v13878_v3  ;;  %v14000_v3 = vld [vmem:[#allocation5 + $0x7a4] ss:$16 sps:$4 sm:$0xff]  }
 0x1e0   : > { %6663 = vmatpush1.bf16.msra.mxu0 %v13881_v4  ;;  %8593 = vmatpush1.bf16.msra.mxu1 %v13884_v5  ;;  %v14003_v4 = vld [vmem:[#allocation5 + $0x7ac] ss:$16 sps:$4 sm:$0xff]   ;;  %v13998_v5 = vld [vmem:[#allocation5 + $0x7a0] ss:$16 sps:$4 sm:$0xff]  }
 0x1e1   : > { %6511 = vmatprep.mubr.bf16.mxu0 %v13887_v6  ;;  %8441 = vmatprep.mubr.bf16.mxu1 %v13887_v6  ;;  %v14001_v6 = vld [vmem:[#allocation5 + $0x7a8] ss:$16 sps:$4 sm:$0xff]  }
 0x1e2   : > { %6664 = vmatprep.subr.bf16.mxu0 %v13892_v7  ;;  %8594 = vmatprep.subr.bf16.mxu1 %v13895_v8  ;;  %v14009_v7 = vld [vmem:[#allocation5 + $0x7c4] ss:$16 sps:$4 sm:$0xff]   ;;  %v14012_v8 = vld [vmem:[#allocation5 + $0x7cc] ss:$16 sps:$4 sm:$0xff]  }
 0x1e4   : > { %6665 = vmatpush1.bf16.msra.mxu0 %v13890_v9  ;;  %8595 = vmatpush1.bf16.msra.mxu1 %v13893_v10  ;;  %v13943_v9 = vld [vmem:[%s15448_s8 + $0x470] ss:$80 sps:$4 sm:$0xff]   ;;  %v13950_v10 = vld [vmem:[%s15448_s8 + $0x514] ss:$80 sps:$4 sm:$0xff]  }
 0x1e5   : > { %6666 = vmatprep.subr.bf16.mxu0 %v13901_v11  ;;  %8596 = vmatprep.subr.bf16.mxu1 %v13904_v13  ;;  %v14007_v11 = vld [vmem:[#allocation5 + $0x7c0] ss:$16 sps:$4 sm:$0xff]   ;;  %v14018_v13 = vld [vmem:[#allocation5 + $0x7e4] ss:$16 sps:$4 sm:$0xff]  }
 0x1e7   : > { %6512 = vmatmul.mubr.bf16.gmra.mrb[4].mxu0 %v13889_v12  ;;  %8442 = vmatmul.mubr.bf16.gmra.mrb[4].mxu1 %v13889_v12  ;;  %v14010_v12 = vld [vmem:[#allocation5 + $0x7c8] ss:$16 sps:$4 sm:$0xff]  }
 0x1e8   : > { %6521 = vmatprep.mubr.bf16.mxu0 %v13896_v14  ;;  %8451 = vmatprep.mubr.bf16.mxu1 %v13896_v14  ;;  %v14021_v14 = vld [vmem:[#allocation5 + $0x7ec] ss:$16 sps:$4 sm:$0xff]  }
 0x1e9   : > { %6667 = vmatpush1.bf16.msra.mxu0 %v13899_v15  ;;  %8597 = vmatpush1.bf16.msra.mxu1 %v13902_v16  ;;  %v14016_v15 = vld [vmem:[#allocation5 + $0x7e0] ss:$16 sps:$4 sm:$0xff]   ;;  %v14019_v16 = vld [vmem:[#allocation5 + $0x7e8] ss:$16 sps:$4 sm:$0xff]  }
 0x1ea   : > { %6668 = vmatprep.subr.bf16.mxu0 %v13910_v17  ;;  %8598 = vmatprep.subr.bf16.mxu1 %v13913_v18  ;;  %v14027_v17 = vld [vmem:[#allocation5 + $0x804] ss:$16 sps:$4 sm:$0xff]   ;;  %v14030_v18 = vld [vmem:[#allocation5 + $0x80c] ss:$16 sps:$4 sm:$0xff]  }
 0x1ed   : > { %6669 = vmatpush1.bf16.msra.mxu0 %v13908_v19  ;;  %8599 = vmatpush1.bf16.msra.mxu1 %v13911_v20  ;;  %v13952_v19 = vld [vmem:[%s15448_s8 + $0x510] ss:$80 sps:$4 sm:$0xff]   ;;  %v13959_v20 = vld [vmem:[%s15448_s8 + $0x5b4] ss:$80 sps:$4 sm:$0xff]  }
 0x1ee   : > { %6670 = vmatprep.subr.bf16.mxu0 %v13919_v21  ;;  %8600 = vmatprep.subr.bf16.mxu1 %v13922_v22  ;;  %v13961_v21 = vld [vmem:[%s15448_s8 + $0x5b0] ss:$80 sps:$4 sm:$0xff]   ;;  %v13968_v22 = vld [vmem:[%s15448_s8 + $0x654] ss:$80 sps:$4 sm:$0xff]  }
 0x1ef   : > { %6522 = vmatmul.mubr.bf16.gmra.mrb[8].mxu0 %v13898_v23  ;;  %8452 = vmatmul.mubr.bf16.gmra.mrb[8].mxu1 %v13898_v23  ;;  %v13970_v23 = vld [vmem:[%s15448_s8 + $0x650] ss:$80 sps:$4 sm:$0xff]  }
 0x1f0   : > { %6531 = vmatprep.mubr.bf16.mxu0 %v13905_v24  ;;  %8461 = vmatprep.mubr.bf16.mxu1 %v13905_v24  ;;  %v13977_v24 = vld [vmem:[%s15448_s8 + $0x6f4] ss:$80 sps:$4 sm:$0xff]  }
 0x1f1   : > { %6671 = vmatpush1.bf16.msra.mxu0 %v13917_v25  ;;  %8601 = vmatpush1.bf16.msra.mxu1 %v13920_v26  ;;  %v13979_v25 = vld [vmem:[%s15448_s8 + $0x6f0] ss:$80 sps:$4 sm:$0xff]   ;;  %v13986_v26 = vld [vmem:[%s15448_s8 + $0x794] ss:$80 sps:$4 sm:$0xff]  }
 0x1f2   : > { %6672 = vmatprep.subr.bf16.mxu0 %v13928_v27  ;;  %8602 = vmatprep.subr.bf16.mxu1 %v13931_v28  ;;  %v13988_v27 = vld [vmem:[%s15448_s8 + $0x790] ss:$80 sps:$4 sm:$0xff]   ;;  %v13995_v28 = vld [vmem:[%s15448_s8 + $0x834] ss:$80 sps:$4 sm:$0xff]  }
 0x1f5   : > { %6673 = vmatpush1.bf16.msra.mxu0 %v13926_v29  ;;  %8603 = vmatpush1.bf16.msra.mxu1 %v13929_v30  ;;  %v13997_v29 = vld [vmem:[%s15448_s8 + $0x830] ss:$80 sps:$4 sm:$0xff]   ;;  %v14004_v30 = vld [vmem:[%s15448_s8 + $0x8d4] ss:$80 sps:$4 sm:$0xff]  }
 0x1f6   : > { %6674 = vmatprep.subr.bf16.mxu0 %v13937_v31  ;;  %8604 = vmatprep.subr.bf16.mxu1 %v13940_v32  ;;  %v14006_v31 = vld [vmem:[%s15448_s8 + $0x8d0] ss:$80 sps:$4 sm:$0xff]   ;;  %v14013_v32 = vld [vmem:[%s15448_s8 + $0x974] ss:$80 sps:$4 sm:$0xff]  }
 0x1f7   : > { %6532 = vmatmul.mubr.bf16.gmra.mrb[12].mxu0 %v13907_v33  ;;  %8462 = vmatmul.mubr.bf16.gmra.mrb[12].mxu1 %v13907_v33  ;;  %v14015_v33 = vld [vmem:[%s15448_s8 + $0x970] ss:$80 sps:$4 sm:$0xff]  }
 0x1f8   : > { %6541 = vmatprep.mubr.bf16.mxu0 %v13914_v34  ;;  %8471 = vmatprep.mubr.bf16.mxu1 %v13914_v34  ;;  %v14024_v34 = vld [vmem:[%s15448_s8 + $0x1c] ss:$80 sps:$4 sm:$0xff]  }
 0x1f9   : > { %6675 = vmatpush1.bf16.msra.mxu0 %v13935_v35  ;;  %8605 = vmatpush1.bf16.msra.mxu1 %v13938_v36  ;;  %v14022_v35 = vld [vmem:[%s15448_s8 + $0x18] ss:$80 sps:$4 sm:$0xff]   ;;  %v14025_v36 = vld [vmem:[#allocation5 + $0x800] ss:$16 sps:$4 sm:$0xff]  }
 0x1fa   : > { %6676 = vmatprep.subr.bf16.mxu0 %v13946_v37  ;;  %8606 = vmatprep.subr.bf16.mxu1 %v13949_v38  ;;  %v14028_v37 = vld [vmem:[#allocation5 + $0x808] ss:$16 sps:$4 sm:$0xff]   ;;  %v14031_v38 = vld [vmem:[%s15448_s8 + $0xbc] ss:$80 sps:$4 sm:$0xff]  }
 0x1fd   : > { %6677 = vmatpush1.bf16.msra.mxu0 %v13944_v39  ;;  %8607 = vmatpush1.bf16.msra.mxu1 %v13947_v40  ;;  %v14036_v39 = vld [vmem:[#allocation5 + $0x824] ss:$16 sps:$4 sm:$0xff]   ;;  %v14039_v40 = vld [vmem:[#allocation5 + $0x82c] ss:$16 sps:$4 sm:$0xff]  }
 0x1fe   : > { %6678 = vmatprep.subr.bf16.mxu0 %v13955_v41  ;;  %8608 = vmatprep.subr.bf16.mxu1 %v13958_v42  ;;  %v14034_v41 = vld [vmem:[#allocation5 + $0x820] ss:$16 sps:$4 sm:$0xff]   ;;  %v14037_v42 = vld [vmem:[#allocation5 + $0x828] ss:$16 sps:$4 sm:$0xff]  }
 0x1ff   : > { %6542 = vmatmul.mubr.bf16.gmra.mrb[16].mxu0 %v13916_v43  ;;  %8472 = vmatmul.mubr.bf16.gmra.mrb[16].mxu1 %v13916_v43  ;;  %v14045_v43 = vld [vmem:[#allocation5 + $0x844] ss:$16 sps:$4 sm:$0xff]  }
 0x200   : > { %6551 = vmatprep.mubr.bf16.mxu0 %v13923_v44  ;;  %8481 = vmatprep.mubr.bf16.mxu1 %v13923_v44  ;;  %v14033_v44 = vld [vmem:[%s15448_s8 + $0xb8] ss:$80 sps:$4 sm:$0xff]  }
 0x201   : > { %6679 = vmatpush1.bf16.msra.mxu0 %v13953_v45  ;;  %8609 = vmatpush1.bf16.msra.mxu1 %v13956_v46  ;;  %v14048_v45 = vld [vmem:[#allocation5 + $0x84c] ss:$16 sps:$4 sm:$0xff]  }
 0x202   : > { %6680 = vmatprep.subr.bf16.mxu0 %v13964_v47  ;;  %8610 = vmatprep.subr.bf16.mxu1 %v13967_v48  ;;  %v14040_v46 = vld [vmem:[%s15448_s8 + $0x15c] ss:$80 sps:$4 sm:$0xff]   ;;  %v14043_v47 = vld [vmem:[#allocation5 + $0x840] ss:$16 sps:$4 sm:$0xff]   ;;  %v14046_v48 = vld [vmem:[#allocation5 + $0x848] ss:$16 sps:$4 sm:$0xff]  }
 0x205   : > { %6681 = vmatpush1.bf16.msra.mxu0 %v13962_v49  ;;  %8611 = vmatpush1.bf16.msra.mxu1 %v13965_v50  ;;  %v14054_v49 = vld [vmem:[#allocation5 + $0x864] ss:$16 sps:$4 sm:$0xff]   ;;  %v14057_v50 = vld [vmem:[#allocation5 + $0x86c] ss:$16 sps:$4 sm:$0xff]  }
 0x206   : > { %6682 = vmatprep.subr.bf16.mxu0 %v13973_v51  ;;  %8612 = vmatprep.subr.bf16.mxu1 %v13976_v52  ;;  %v14052_v51 = vld [vmem:[#allocation5 + $0x860] ss:$16 sps:$4 sm:$0xff]   ;;  %v14055_v52 = vld [vmem:[#allocation5 + $0x868] ss:$16 sps:$4 sm:$0xff]  }
 0x207   : > { %6552 = vmatmul.mubr.bf16.gmra.mrb[20].mxu0 %v13925_v53  ;;  %8482 = vmatmul.mubr.bf16.gmra.mrb[20].mxu1 %v13925_v53  ;;  %v14063_v53 = vld [vmem:[#allocation5 + $0x884] ss:$16 sps:$4 sm:$0xff]  }
 0x208   : > { %6561 = vmatprep.mubr.bf16.mxu0 %v13932_v54  ;;  %8491 = vmatprep.mubr.bf16.mxu1 %v13932_v54  ;;  %v14066_v54 = vld [vmem:[#allocation5 + $0x88c] ss:$16 sps:$4 sm:$0xff]  }
 0x209   : > { %6683 = vmatpush1.bf16.msra.mxu0 %v13971_v55  ;;  %8613 = vmatpush1.bf16.msra.mxu1 %v13974_v56  ;;  %v14042_v55 = vld [vmem:[%s15448_s8 + $0x158] ss:$80 sps:$4 sm:$0xff]   ;;  %v14049_v56 = vld [vmem:[%s15448_s8 + $0x1fc] ss:$80 sps:$4 sm:$0xff]  }
 0x20a   : > { %6684 = vmatprep.subr.bf16.mxu0 %v13982_v57  ;;  %8614 = vmatprep.subr.bf16.mxu1 %v13985_v58  ;;  %v14061_v57 = vld [vmem:[#allocation5 + $0x880] ss:$16 sps:$4 sm:$0xff]   ;;  %v14064_v58 = vld [vmem:[#allocation5 + $0x888] ss:$16 sps:$4 sm:$0xff]  }
 0x20d   : > { %6685 = vmatpush1.bf16.msra.mxu0 %v13980_v59  ;;  %8615 = vmatpush1.bf16.msra.mxu1 %v13983_v60  ;;  %v14072_v59 = vld [vmem:[#allocation5 + $0x8a4] ss:$16 sps:$4 sm:$0xff]   ;;  %v14075_v60 = vld [vmem:[#allocation5 + $0x8ac] ss:$16 sps:$4 sm:$0xff]  }
 0x20e   : > { %6686 = vmatprep.subr.bf16.mxu0 %v13991_v61  ;;  %8616 = vmatprep.subr.bf16.mxu1 %v13994_v62  ;;  %v14070_v61 = vld [vmem:[#allocation5 + $0x8a0] ss:$16 sps:$4 sm:$0xff]   ;;  %v14073_v62 = vld [vmem:[#allocation5 + $0x8a8] ss:$16 sps:$4 sm:$0xff]  }
 0x20f   : > { %6562 = vmatmul.mubr.bf16.gmra.mrb[24].mxu0 %v13934_v63  ;;  %8492 = vmatmul.mubr.bf16.gmra.mrb[24].mxu1 %v13934_v63  ;;  %v14081_v63 = vld [vmem:[#allocation5 + $0x8c4] ss:$16 sps:$4 sm:$0xff]  }
 0x210   : > { %6571 = vmatprep.mubr.bf16.mxu0 %v13941_v0  ;;  %8501 = vmatprep.mubr.bf16.mxu1 %v13941_v0  ;;  %v14084_v0 = vld [vmem:[#allocation5 + $0x8cc] ss:$16 sps:$4 sm:$0xff]  }
 0x211   : > { %6687 = vmatpush1.bf16.msra.mxu0 %v13989_v1  ;;  %8617 = vmatpush1.bf16.msra.mxu1 %v13992_v2  ;;  %v14051_v1 = vld [vmem:[%s15448_s8 + $0x1f8] ss:$80 sps:$4 sm:$0xff]   ;;  %v14058_v2 = vld [vmem:[%s15448_s8 + $0x29c] ss:$80 sps:$4 sm:$0xff]  }
 0x212   : > { %6688 = vmatprep.subr.bf16.mxu0 %v14000_v3  ;;  %8618 = vmatprep.subr.bf16.mxu1 %v14003_v4  ;;  %v14079_v3 = vld [vmem:[#allocation5 + $0x8c0] ss:$16 sps:$4 sm:$0xff]   ;;  %v14082_v4 = vld [vmem:[#allocation5 + $0x8c8] ss:$16 sps:$4 sm:$0xff]  }
 0x215   : > { %6689 = vmatpush1.bf16.msra.mxu0 %v13998_v5  ;;  %8619 = vmatpush1.bf16.msra.mxu1 %v14001_v6  ;;  %v14090_v5 = vld [vmem:[#allocation5 + $0x8e4] ss:$16 sps:$4 sm:$0xff]   ;;  %v14093_v6 = vld [vmem:[#allocation5 + $0x8ec] ss:$16 sps:$4 sm:$0xff]  }
 0x216   : > { %6690 = vmatprep.subr.bf16.mxu0 %v14009_v7  ;;  %8620 = vmatprep.subr.bf16.mxu1 %v14012_v8  ;;  %v14088_v7 = vld [vmem:[#allocation5 + $0x8e0] ss:$16 sps:$4 sm:$0xff]   ;;  %v14091_v8 = vld [vmem:[#allocation5 + $0x8e8] ss:$16 sps:$4 sm:$0xff]  }
 0x217   : > { %6572 = vmatmul.mubr.bf16.gmra.mrb[28].mxu0 %v13943_v9  ;;  %8502 = vmatmul.mubr.bf16.gmra.mrb[28].mxu1 %v13943_v9  ;;  %v14099_v9 = vld [vmem:[#allocation5 + $0x904] ss:$16 sps:$4 sm:$0xff]  }
 0x218   : > { %6581 = vmatprep.mubr.bf16.mxu0 %v13950_v10  ;;  %8511 = vmatprep.mubr.bf16.mxu1 %v13950_v10  ;;  %v14102_v10 = vld [vmem:[#allocation5 + $0x90c] ss:$16 sps:$4 sm:$0xff]  }
 0x219   : > { %6691 = vmatpush1.bf16.msra.mxu0 %v14007_v11  ;;  %8621 = vmatpush1.bf16.msra.mxu1 %v14010_v12  ;;  %v14060_v11 = vld [vmem:[%s15448_s8 + $0x298] ss:$80 sps:$4 sm:$0xff]   ;;  %v14067_v12 = vld [vmem:[%s15448_s8 + $0x33c] ss:$80 sps:$4 sm:$0xff]  }
 0x21a   : > { %6692 = vmatprep.subr.bf16.mxu0 %v14018_v13  ;;  %8622 = vmatprep.subr.bf16.mxu1 %v14021_v14  ;;  %v14097_v13 = vld [vmem:[#allocation5 + $0x900] ss:$16 sps:$4 sm:$0xff]   ;;  %v14100_v14 = vld [vmem:[#allocation5 + $0x908] ss:$16 sps:$4 sm:$0xff]  }
 0x21d   : > { %6693 = vmatpush1.bf16.msra.mxu0 %v14016_v15  ;;  %8623 = vmatpush1.bf16.msra.mxu1 %v14019_v16  ;;  %v14108_v15 = vld [vmem:[#allocation5 + $0x924] ss:$16 sps:$4 sm:$0xff]   ;;  %v14111_v16 = vld [vmem:[#allocation5 + $0x92c] ss:$16 sps:$4 sm:$0xff]  }
 0x21e   : > { %6855 = vmatprep.subr.bf16.mxu0 %v14027_v17  ;;  %8785 = vmatprep.subr.bf16.mxu1 %v14030_v18  ;;  %v14106_v17 = vld [vmem:[#allocation5 + $0x920] ss:$16 sps:$4 sm:$0xff]   ;;  %v14109_v18 = vld [vmem:[#allocation5 + $0x928] ss:$16 sps:$4 sm:$0xff]  }
 0x21f   : > { %6582 = vmatmul.mubr.bf16.gmra.mrb[32].mxu0 %v13952_v19  ;;  %8512 = vmatmul.mubr.bf16.gmra.mrb[32].mxu1 %v13952_v19  ;;  %v14117_v19 = vld [vmem:[#allocation5 + $0x944] ss:$16 sps:$4 sm:$0xff]  }
 0x220   : > { %6591 = vmatprep.mubr.bf16.mxu0 %v13959_v20  ;;  %8521 = vmatprep.mubr.bf16.mxu1 %v13959_v20  ;;  %v14120_v20 = vld [vmem:[#allocation5 + $0x94c] ss:$16 sps:$4 sm:$0xff]  }
 0x227   : > { %6592 = vmatmul.mubr.bf16.gmra.mrb[36].mxu0 %v13961_v21  ;;  %8522 = vmatmul.mubr.bf16.gmra.mrb[36].mxu1 %v13961_v21  ;;  %v14069_v21 = vld [vmem:[%s15448_s8 + $0x338] ss:$80 sps:$4 sm:$0xff]  }
 0x228   : > { %6601 = vmatprep.mubr.bf16.mxu0 %v13968_v22  ;;  %8531 = vmatprep.mubr.bf16.mxu1 %v13968_v22  ;;  %v14076_v22 = vld [vmem:[%s15448_s8 + $0x3dc] ss:$80 sps:$4 sm:$0xff]  }
 0x22f   : > { %6602 = vmatmul.mubr.bf16.gmra.mrb[40].mxu0 %v13970_v23  ;;  %8532 = vmatmul.mubr.bf16.gmra.mrb[40].mxu1 %v13970_v23  ;;  %v14115_v23 = vld [vmem:[#allocation5 + $0x940] ss:$16 sps:$4 sm:$0xff]  }
 0x230   : > { %6611 = vmatprep.mubr.bf16.mxu0 %v13977_v24  ;;  %8541 = vmatprep.mubr.bf16.mxu1 %v13977_v24  ;;  %v14118_v24 = vld [vmem:[#allocation5 + $0x948] ss:$16 sps:$4 sm:$0xff]  }
 0x237   : > { %6612 = vmatmul.mubr.bf16.gmra.mrb[44].mxu0 %v13979_v25  ;;  %8542 = vmatmul.mubr.bf16.gmra.mrb[44].mxu1 %v13979_v25  ;;  %v14126_v25 = vld [vmem:[#allocation5 + $0x964] ss:$16 sps:$4 sm:$0xff]  }
 0x238   : > { %6621 = vmatprep.mubr.bf16.mxu0 %v13986_v26  ;;  %8551 = vmatprep.mubr.bf16.mxu1 %v13986_v26  ;;  %v14129_v26 = vld [vmem:[#allocation5 + $0x96c] ss:$16 sps:$4 sm:$0xff]  }
 0x23f   : > { %6622 = vmatmul.mubr.bf16.gmra.mrb[48].mxu0 %v13988_v27  ;;  %8552 = vmatmul.mubr.bf16.gmra.mrb[48].mxu1 %v13988_v27  ;;  %v14124_v27 = vld [vmem:[#allocation5 + $0x960] ss:$16 sps:$4 sm:$0xff]  }
 0x240   : > { %6631 = vmatprep.mubr.bf16.mxu0 %v13995_v28  ;;  %8561 = vmatprep.mubr.bf16.mxu1 %v13995_v28  ;;  %v14127_v28 = vld [vmem:[#allocation5 + $0x968] ss:$16 sps:$4 sm:$0xff]  }
 0x247   : > { %6632 = vmatmul.mubr.bf16.gmra.mrb[52].mxu0 %v13997_v29  ;;  %8562 = vmatmul.mubr.bf16.gmra.mrb[52].mxu1 %v13997_v29  ;;  %v14135_v29 = vld [vmem:[#allocation5 + $0x984] ss:$16 sps:$4 sm:$0xff]  }
 0x248   : > { %6641 = vmatprep.mubr.bf16.mxu0 %v14004_v30  ;;  %8571 = vmatprep.mubr.bf16.mxu1 %v14004_v30  ;;  %v14138_v30 = vld [vmem:[#allocation5 + $0x98c] ss:$16 sps:$4 sm:$0xff]  }
 0x24f   : > { %6642 = vmatmul.mubr.bf16.gmra.mrb[56].mxu0 %v14006_v31  ;;  %8572 = vmatmul.mubr.bf16.gmra.mrb[56].mxu1 %v14006_v31  ;;  %v14078_v31 = vld [vmem:[%s15448_s8 + $0x3d8] ss:$80 sps:$4 sm:$0xff]  }
 0x250   : > { %6651 = vmatprep.mubr.bf16.mxu0 %v14013_v32  ;;  %8581 = vmatprep.mubr.bf16.mxu1 %v14013_v32  ;;  %v14085_v32 = vld [vmem:[%s15448_s8 + $0x47c] ss:$80 sps:$4 sm:$0xff]  }
 0x257   : > { %6652 = vmatmul.mubr.bf16.gmra.mrb[60].mxu0 %v14015_v33  ;;  %8582 = vmatmul.mubr.bf16.gmra.mrb[60].mxu1 %v14015_v33  ;;  %v14133_v33 = vld [vmem:[#allocation5 + $0x980] ss:$16 sps:$4 sm:$0xff]  }
 0x258   : > { %6694 = vmatprep.mubr.bf16.mxu0 %v14024_v34  ;;  %8624 = vmatprep.mubr.bf16.mxu1 %v14024_v34  ;;  %v14136_v34 = vld [vmem:[#allocation5 + $0x988] ss:$16 sps:$4 sm:$0xff]  }
 0x25f   : > { %6695 = vmatmul.mubr.bf16.vlgmr.msra.gmra.mrb[0].mxu0 %v14022_v35  ;;  %8625 = vmatmul.mubr.bf16.vlgmr.msra.gmra.mrb[0].mxu1 %v14022_v35  ;;  %v14144_v35 = vld [vmem:[#allocation5 + $0x9a4] ss:$16 sps:$4 sm:$0xff]  }
 0x260   : > { %6856 = vmatpush1.bf16.msra.mxu0 %v14025_v36  ;;  %8786 = vmatpush1.bf16.msra.mxu1 %v14028_v37  ;;  %v14147_v36 = vld [vmem:[#allocation5 + $0x9ac] ss:$16 sps:$4 sm:$0xff]   ;;  %v14142_v37 = vld [vmem:[#allocation5 + $0x9a0] ss:$16 sps:$4 sm:$0xff]  }
 0x261   : > { %6704 = vmatprep.mubr.bf16.mxu0 %v14031_v38  ;;  %8634 = vmatprep.mubr.bf16.mxu1 %v14031_v38  ;;  %v14145_v38 = vld [vmem:[#allocation5 + $0x9a8] ss:$16 sps:$4 sm:$0xff]  }
 0x262   : > { %6857 = vmatprep.subr.bf16.mxu0 %v14036_v39  ;;  %8787 = vmatprep.subr.bf16.mxu1 %v14039_v40  ;;  %v14153_v39 = vld [vmem:[#allocation5 + $0x9c4] ss:$16 sps:$4 sm:$0xff]   ;;  %v14156_v40 = vld [vmem:[#allocation5 + $0x9cc] ss:$16 sps:$4 sm:$0xff]  }
 0x264   : > { %6858 = vmatpush1.bf16.msra.mxu0 %v14034_v41  ;;  %8788 = vmatpush1.bf16.msra.mxu1 %v14037_v42  ;;  %v14087_v41 = vld [vmem:[%s15448_s8 + $0x478] ss:$80 sps:$4 sm:$0xff]   ;;  %v14094_v42 = vld [vmem:[%s15448_s8 + $0x51c] ss:$80 sps:$4 sm:$0xff]  }
 0x265   : > { %6859 = vmatprep.subr.bf16.mxu0 %v14045_v43  ;;  %8789 = vmatprep.subr.bf16.mxu1 %v14048_v45  ;;  %v14151_v43 = vld [vmem:[#allocation5 + $0x9c0] ss:$16 sps:$4 sm:$0xff]   ;;  %v14162_v45 = vld [vmem:[#allocation5 + $0x9e4] ss:$16 sps:$4 sm:$0xff]  }
 0x267   : > { %6705 = vmatmul.mubr.bf16.gmra.mrb[4].mxu0 %v14033_v44  ;;  %8635 = vmatmul.mubr.bf16.gmra.mrb[4].mxu1 %v14033_v44  ;;  %v14154_v44 = vld [vmem:[#allocation5 + $0x9c8] ss:$16 sps:$4 sm:$0xff]  }
 0x268   : > { %6714 = vmatprep.mubr.bf16.mxu0 %v14040_v46  ;;  %8644 = vmatprep.mubr.bf16.mxu1 %v14040_v46  ;;  %v14165_v46 = vld [vmem:[#allocation5 + $0x9ec] ss:$16 sps:$4 sm:$0xff]  }
 0x269   : > { %6860 = vmatpush1.bf16.msra.mxu0 %v14043_v47  ;;  %8790 = vmatpush1.bf16.msra.mxu1 %v14046_v48  ;;  %v14160_v47 = vld [vmem:[#allocation5 + $0x9e0] ss:$16 sps:$4 sm:$0xff]   ;;  %v14163_v48 = vld [vmem:[#allocation5 + $0x9e8] ss:$16 sps:$4 sm:$0xff]  }
 0x26a   : > { %6861 = vmatprep.subr.bf16.mxu0 %v14054_v49  ;;  %8791 = vmatprep.subr.bf16.mxu1 %v14057_v50  ;;  %v14171_v49 = vld [vmem:[#allocation5 + $0xa04] ss:$16 sps:$4 sm:$0xff]   ;;  %v14174_v50 = vld [vmem:[#allocation5 + $0xa0c] ss:$16 sps:$4 sm:$0xff]  }
 0x26d   : > { %6862 = vmatpush1.bf16.msra.mxu0 %v14052_v51  ;;  %8792 = vmatpush1.bf16.msra.mxu1 %v14055_v52  ;;  %v14096_v51 = vld [vmem:[%s15448_s8 + $0x518] ss:$80 sps:$4 sm:$0xff]   ;;  %v14103_v52 = vld [vmem:[%s15448_s8 + $0x5bc] ss:$80 sps:$4 sm:$0xff]  }
 0x26e   : > { %6863 = vmatprep.subr.bf16.mxu0 %v14063_v53  ;;  %8793 = vmatprep.subr.bf16.mxu1 %v14066_v54  ;;  %v14105_v53 = vld [vmem:[%s15448_s8 + $0x5b8] ss:$80 sps:$4 sm:$0xff]   ;;  %v14112_v54 = vld [vmem:[%s15448_s8 + $0x65c] ss:$80 sps:$4 sm:$0xff]  }
 0x26f   : > { %6715 = vmatmul.mubr.bf16.gmra.mrb[8].mxu0 %v14042_v55  ;;  %8645 = vmatmul.mubr.bf16.gmra.mrb[8].mxu1 %v14042_v55  ;;  %v14114_v55 = vld [vmem:[%s15448_s8 + $0x658] ss:$80 sps:$4 sm:$0xff]  }
 0x270   : > { %6724 = vmatprep.mubr.bf16.mxu0 %v14049_v56  ;;  %8654 = vmatprep.mubr.bf16.mxu1 %v14049_v56  ;;  %v14121_v56 = vld [vmem:[%s15448_s8 + $0x6fc] ss:$80 sps:$4 sm:$0xff]  }
 0x271   : > { %6864 = vmatpush1.bf16.msra.mxu0 %v14061_v57  ;;  %8794 = vmatpush1.bf16.msra.mxu1 %v14064_v58  ;;  %v14123_v57 = vld [vmem:[%s15448_s8 + $0x6f8] ss:$80 sps:$4 sm:$0xff]   ;;  %v14130_v58 = vld [vmem:[%s15448_s8 + $0x79c] ss:$80 sps:$4 sm:$0xff]  }
 0x272   : > { %6865 = vmatprep.subr.bf16.mxu0 %v14072_v59  ;;  %8795 = vmatprep.subr.bf16.mxu1 %v14075_v60  ;;  %v14132_v59 = vld [vmem:[%s15448_s8 + $0x798] ss:$80 sps:$4 sm:$0xff]   ;;  %v14139_v60 = vld [vmem:[%s15448_s8 + $0x83c] ss:$80 sps:$4 sm:$0xff]  }
 0x275   : > { %6866 = vmatpush1.bf16.msra.mxu0 %v14070_v61  ;;  %8796 = vmatpush1.bf16.msra.mxu1 %v14073_v62  ;;  %v14141_v61 = vld [vmem:[%s15448_s8 + $0x838] ss:$80 sps:$4 sm:$0xff]   ;;  %v14148_v62 = vld [vmem:[%s15448_s8 + $0x8dc] ss:$80 sps:$4 sm:$0xff]  }
 0x276   : > { %6867 = vmatprep.subr.bf16.mxu0 %v14081_v63  ;;  %8797 = vmatprep.subr.bf16.mxu1 %v14084_v0  ;;  %v14150_v63 = vld [vmem:[%s15448_s8 + $0x8d8] ss:$80 sps:$4 sm:$0xff]   ;;  %v14157_v0 = vld [vmem:[%s15448_s8 + $0x97c] ss:$80 sps:$4 sm:$0xff]  }
 0x277   : > { %6725 = vmatmul.mubr.bf16.gmra.mrb[12].mxu0 %v14051_v1  ;;  %8655 = vmatmul.mubr.bf16.gmra.mrb[12].mxu1 %v14051_v1  ;;  %v14159_v1 = vld [vmem:[%s15448_s8 + $0x978] ss:$80 sps:$4 sm:$0xff]  }
 0x278   : > { %6734 = vmatprep.mubr.bf16.mxu0 %v14058_v2  ;;  %8664 = vmatprep.mubr.bf16.mxu1 %v14058_v2  ;;  %v14168_v2 = vld [vmem:[%s15448_s8 + $0x24] ss:$80 sps:$4 sm:$0xff]  }
 0x279   : > { %6868 = vmatpush1.bf16.msra.mxu0 %v14079_v3  ;;  %8798 = vmatpush1.bf16.msra.mxu1 %v14082_v4  ;;  %v14166_v3 = vld [vmem:[%s15448_s8 + $0x20] ss:$80 sps:$4 sm:$0xff]  }
 0x27a   : > { %6869 = vmatprep.subr.bf16.mxu0 %v14090_v5  ;;  %8799 = vmatprep.subr.bf16.mxu1 %v14093_v6  ;;  %v14169_v4 = vld [vmem:[#allocation5 + $0xa00] ss:$16 sps:$4 sm:$0xff]   ;;  %v14172_v5 = vld [vmem:[#allocation5 + $0xa08] ss:$16 sps:$4 sm:$0xff]   ;;  %v14175_v6 = vld [vmem:[%s15448_s8 + $0xc4] ss:$80 sps:$4 sm:$0xff]  }
 0x27d   : > { %6870 = vmatpush1.bf16.msra.mxu0 %v14088_v7  ;;  %8800 = vmatpush1.bf16.msra.mxu1 %v14091_v8  ;;  %v14180_v7 = vld [vmem:[#allocation5 + $0xa24] ss:$16 sps:$4 sm:$0xff]   ;;  %v14183_v8 = vld [vmem:[#allocation5 + $0xa2c] ss:$16 sps:$4 sm:$0xff]  }
 0x27e   : > { %6871 = vmatprep.subr.bf16.mxu0 %v14099_v9  ;;  %8801 = vmatprep.subr.bf16.mxu1 %v14102_v10  ;;  %v14178_v9 = vld [vmem:[#allocation5 + $0xa20] ss:$16 sps:$4 sm:$0xff]   ;;  %v14181_v10 = vld [vmem:[#allocation5 + $0xa28] ss:$16 sps:$4 sm:$0xff]  }
 0x27f   : > { %6735 = vmatmul.mubr.bf16.gmra.mrb[16].mxu0 %v14060_v11  ;;  %8665 = vmatmul.mubr.bf16.gmra.mrb[16].mxu1 %v14060_v11  ;;  %v14189_v11 = vld [vmem:[#allocation5 + $0xa44] ss:$16 sps:$4 sm:$0xff]  }
 0x280   : > { %6744 = vmatprep.mubr.bf16.mxu0 %v14067_v12  ;;  %8674 = vmatprep.mubr.bf16.mxu1 %v14067_v12  ;;  %v14192_v12 = vld [vmem:[#allocation5 + $0xa4c] ss:$16 sps:$4 sm:$0xff]  }
 0x281   : > { %6872 = vmatpush1.bf16.msra.mxu0 %v14097_v13  ;;  %8802 = vmatpush1.bf16.msra.mxu1 %v14100_v14  ;;  %v14177_v13 = vld [vmem:[%s15448_s8 + $0xc0] ss:$80 sps:$4 sm:$0xff]   ;;  %v14184_v14 = vld [vmem:[%s15448_s8 + $0x164] ss:$80 sps:$4 sm:$0xff]  }
 0x282   : > { %6873 = vmatprep.subr.bf16.mxu0 %v14108_v15  ;;  %8803 = vmatprep.subr.bf16.mxu1 %v14111_v16  ;;  %v14187_v15 = vld [vmem:[#allocation5 + $0xa40] ss:$16 sps:$4 sm:$0xff]   ;;  %v14190_v16 = vld [vmem:[#allocation5 + $0xa48] ss:$16 sps:$4 sm:$0xff]  }
 0x285   : > { %6874 = vmatpush1.bf16.msra.mxu0 %v14106_v17  ;;  %8804 = vmatpush1.bf16.msra.mxu1 %v14109_v18  ;;  %v14198_v17 = vld [vmem:[#allocation5 + $0xa64] ss:$16 sps:$4 sm:$0xff]   ;;  %v14201_v18 = vld [vmem:[#allocation5 + $0xa6c] ss:$16 sps:$4 sm:$0xff]  }
 0x286   : > { %6875 = vmatprep.subr.bf16.mxu0 %v14117_v19  ;;  %8805 = vmatprep.subr.bf16.mxu1 %v14120_v20  ;;  %v14196_v19 = vld [vmem:[#allocation5 + $0xa60] ss:$16 sps:$4 sm:$0xff]   ;;  %v14199_v20 = vld [vmem:[#allocation5 + $0xa68] ss:$16 sps:$4 sm:$0xff]  }
 0x287   : > { %6745 = vmatmul.mubr.bf16.gmra.mrb[20].mxu0 %v14069_v21  ;;  %8675 = vmatmul.mubr.bf16.gmra.mrb[20].mxu1 %v14069_v21  ;;  %v14207_v21 = vld [vmem:[#allocation5 + $0xa84] ss:$16 sps:$4 sm:$0xff]  }
 0x288   : > { %6754 = vmatprep.mubr.bf16.mxu0 %v14076_v22  ;;  %8684 = vmatprep.mubr.bf16.mxu1 %v14076_v22  ;;  %v14210_v22 = vld [vmem:[#allocation5 + $0xa8c] ss:$16 sps:$4 sm:$0xff]  }
 0x289   : > { %6876 = vmatpush1.bf16.msra.mxu0 %v14115_v23  ;;  %8806 = vmatpush1.bf16.msra.mxu1 %v14118_v24  ;;  %v14186_v23 = vld [vmem:[%s15448_s8 + $0x160] ss:$80 sps:$4 sm:$0xff]   ;;  %v14193_v24 = vld [vmem:[%s15448_s8 + $0x204] ss:$80 sps:$4 sm:$0xff]  }
 0x28a   : > { %6877 = vmatprep.subr.bf16.mxu0 %v14126_v25  ;;  %8807 = vmatprep.subr.bf16.mxu1 %v14129_v26  ;;  %v14205_v25 = vld [vmem:[#allocation5 + $0xa80] ss:$16 sps:$4 sm:$0xff]   ;;  %v14208_v26 = vld [vmem:[#allocation5 + $0xa88] ss:$16 sps:$4 sm:$0xff]  }
 0x28d   : > { %6878 = vmatpush1.bf16.msra.mxu0 %v14124_v27  ;;  %8808 = vmatpush1.bf16.msra.mxu1 %v14127_v28  ;;  %v14216_v27 = vld [vmem:[#allocation5 + $0xaa4] ss:$16 sps:$4 sm:$0xff]   ;;  %v14219_v28 = vld [vmem:[#allocation5 + $0xaac] ss:$16 sps:$4 sm:$0xff]  }
 0x28e   : > { %6879 = vmatprep.subr.bf16.mxu0 %v14135_v29  ;;  %8809 = vmatprep.subr.bf16.mxu1 %v14138_v30  ;;  %v14214_v29 = vld [vmem:[#allocation5 + $0xaa0] ss:$16 sps:$4 sm:$0xff]   ;;  %v14217_v30 = vld [vmem:[#allocation5 + $0xaa8] ss:$16 sps:$4 sm:$0xff]  }
 0x28f   : > { %6755 = vmatmul.mubr.bf16.gmra.mrb[24].mxu0 %v14078_v31  ;;  %8685 = vmatmul.mubr.bf16.gmra.mrb[24].mxu1 %v14078_v31  ;;  %v14225_v31 = vld [vmem:[#allocation5 + $0xac4] ss:$16 sps:$4 sm:$0xff]  }
 0x290   : > { %6764 = vmatprep.mubr.bf16.mxu0 %v14085_v32  ;;  %8694 = vmatprep.mubr.bf16.mxu1 %v14085_v32  ;;  %v14228_v32 = vld [vmem:[#allocation5 + $0xacc] ss:$16 sps:$4 sm:$0xff]  }
 0x291   : > { %6880 = vmatpush1.bf16.msra.mxu0 %v14133_v33  ;;  %8810 = vmatpush1.bf16.msra.mxu1 %v14136_v34  ;;  %v14195_v33 = vld [vmem:[%s15448_s8 + $0x200] ss:$80 sps:$4 sm:$0xff]   ;;  %v14202_v34 = vld [vmem:[%s15448_s8 + $0x2a4] ss:$80 sps:$4 sm:$0xff]  }
 0x292   : > { %6881 = vmatprep.subr.bf16.mxu0 %v14144_v35  ;;  %8811 = vmatprep.subr.bf16.mxu1 %v14147_v36  ;;  %v14223_v35 = vld [vmem:[#allocation5 + $0xac0] ss:$16 sps:$4 sm:$0xff]   ;;  %v14226_v36 = vld [vmem:[#allocation5 + $0xac8] ss:$16 sps:$4 sm:$0xff]  }
 0x295   : > { %6882 = vmatpush1.bf16.msra.mxu0 %v14142_v37  ;;  %8812 = vmatpush1.bf16.msra.mxu1 %v14145_v38  ;;  %v14234_v37 = vld [vmem:[#allocation5 + $0xae4] ss:$16 sps:$4 sm:$0xff]   ;;  %v14237_v38 = vld [vmem:[#allocation5 + $0xaec] ss:$16 sps:$4 sm:$0xff]  }
 0x296   : > { %6883 = vmatprep.subr.bf16.mxu0 %v14153_v39  ;;  %8813 = vmatprep.subr.bf16.mxu1 %v14156_v40  ;;  %v14232_v39 = vld [vmem:[#allocation5 + $0xae0] ss:$16 sps:$4 sm:$0xff]   ;;  %v14235_v40 = vld [vmem:[#allocation5 + $0xae8] ss:$16 sps:$4 sm:$0xff]  }
 0x297   : > { %6765 = vmatmul.mubr.bf16.gmra.mrb[28].mxu0 %v14087_v41  ;;  %8695 = vmatmul.mubr.bf16.gmra.mrb[28].mxu1 %v14087_v41  ;;  %v14243_v41 = vld [vmem:[#allocation5 + $0xb04] ss:$16 sps:$4 sm:$0xff]  }
 0x298   : > { %6774 = vmatprep.mubr.bf16.mxu0 %v14094_v42  ;;  %8704 = vmatprep.mubr.bf16.mxu1 %v14094_v42  ;;  %v14246_v42 = vld [vmem:[#allocation5 + $0xb0c] ss:$16 sps:$4 sm:$0xff]  }
 0x299   : > { %6884 = vmatpush1.bf16.msra.mxu0 %v14151_v43  ;;  %8814 = vmatpush1.bf16.msra.mxu1 %v14154_v44  ;;  %v14204_v43 = vld [vmem:[%s15448_s8 + $0x2a0] ss:$80 sps:$4 sm:$0xff]   ;;  %v14211_v44 = vld [vmem:[%s15448_s8 + $0x344] ss:$80 sps:$4 sm:$0xff]  }
 0x29a   : > { %6885 = vmatprep.subr.bf16.mxu0 %v14162_v45  ;;  %8815 = vmatprep.subr.bf16.mxu1 %v14165_v46  ;;  %v14241_v45 = vld [vmem:[#allocation5 + $0xb00] ss:$16 sps:$4 sm:$0xff]   ;;  %v14244_v46 = vld [vmem:[#allocation5 + $0xb08] ss:$16 sps:$4 sm:$0xff]  }
 0x29d   : > { %6886 = vmatpush1.bf16.msra.mxu0 %v14160_v47  ;;  %8816 = vmatpush1.bf16.msra.mxu1 %v14163_v48  ;;  %v14252_v47 = vld [vmem:[#allocation5 + $0xb24] ss:$16 sps:$4 sm:$0xff]   ;;  %v14255_v48 = vld [vmem:[#allocation5 + $0xb2c] ss:$16 sps:$4 sm:$0xff]  }
 0x29e   : > { %7048 = vmatprep.subr.bf16.mxu0 %v14171_v49  ;;  %8978 = vmatprep.subr.bf16.mxu1 %v14174_v50  ;;  %v14250_v49 = vld [vmem:[#allocation5 + $0xb20] ss:$16 sps:$4 sm:$0xff]   ;;  %v14253_v50 = vld [vmem:[#allocation5 + $0xb28] ss:$16 sps:$4 sm:$0xff]  }
 0x29f   : > { %6775 = vmatmul.mubr.bf16.gmra.mrb[32].mxu0 %v14096_v51  ;;  %8705 = vmatmul.mubr.bf16.gmra.mrb[32].mxu1 %v14096_v51  ;;  %v14261_v51 = vld [vmem:[#allocation5 + $0xb44] ss:$16 sps:$4 sm:$0xff]  }
 0x2a0   : > { %6784 = vmatprep.mubr.bf16.mxu0 %v14103_v52  ;;  %8714 = vmatprep.mubr.bf16.mxu1 %v14103_v52  ;;  %v14264_v52 = vld [vmem:[#allocation5 + $0xb4c] ss:$16 sps:$4 sm:$0xff]  }
 0x2a7   : > { %6785 = vmatmul.mubr.bf16.gmra.mrb[36].mxu0 %v14105_v53  ;;  %8715 = vmatmul.mubr.bf16.gmra.mrb[36].mxu1 %v14105_v53  ;;  %v14213_v53 = vld [vmem:[%s15448_s8 + $0x340] ss:$80 sps:$4 sm:$0xff]  }
 0x2a8   : > { %6794 = vmatprep.mubr.bf16.mxu0 %v14112_v54  ;;  %8724 = vmatprep.mubr.bf16.mxu1 %v14112_v54  ;;  %v14220_v54 = vld [vmem:[%s15448_s8 + $0x3e4] ss:$80 sps:$4 sm:$0xff]  }
 0x2af   : > { %6795 = vmatmul.mubr.bf16.gmra.mrb[40].mxu0 %v14114_v55  ;;  %8725 = vmatmul.mubr.bf16.gmra.mrb[40].mxu1 %v14114_v55  ;;  %v14259_v55 = vld [vmem:[#allocation5 + $0xb40] ss:$16 sps:$4 sm:$0xff]  }
 0x2b0   : > { %6804 = vmatprep.mubr.bf16.mxu0 %v14121_v56  ;;  %8734 = vmatprep.mubr.bf16.mxu1 %v14121_v56  ;;  %v14262_v56 = vld [vmem:[#allocation5 + $0xb48] ss:$16 sps:$4 sm:$0xff]  }
 0x2b7   : > { %6805 = vmatmul.mubr.bf16.gmra.mrb[44].mxu0 %v14123_v57  ;;  %8735 = vmatmul.mubr.bf16.gmra.mrb[44].mxu1 %v14123_v57  ;;  %v14270_v57 = vld [vmem:[#allocation5 + $0xb64] ss:$16 sps:$4 sm:$0xff]  }
 0x2b8   : > { %6814 = vmatprep.mubr.bf16.mxu0 %v14130_v58  ;;  %8744 = vmatprep.mubr.bf16.mxu1 %v14130_v58  ;;  %v14273_v58 = vld [vmem:[#allocation5 + $0xb6c] ss:$16 sps:$4 sm:$0xff]  }
 0x2bf   : > { %6815 = vmatmul.mubr.bf16.gmra.mrb[48].mxu0 %v14132_v59  ;;  %8745 = vmatmul.mubr.bf16.gmra.mrb[48].mxu1 %v14132_v59  ;;  %v14268_v59 = vld [vmem:[#allocation5 + $0xb60] ss:$16 sps:$4 sm:$0xff]  }
 0x2c0   : > { %6824 = vmatprep.mubr.bf16.mxu0 %v14139_v60  ;;  %8754 = vmatprep.mubr.bf16.mxu1 %v14139_v60  ;;  %v14271_v60 = vld [vmem:[#allocation5 + $0xb68] ss:$16 sps:$4 sm:$0xff]  }
 0x2c7   : > { %6825 = vmatmul.mubr.bf16.gmra.mrb[52].mxu0 %v14141_v61  ;;  %8755 = vmatmul.mubr.bf16.gmra.mrb[52].mxu1 %v14141_v61  ;;  %v14279_v61 = vld [vmem:[#allocation5 + $0xb84] ss:$16 sps:$4 sm:$0xff]  }
 0x2c8   : > { %6834 = vmatprep.mubr.bf16.mxu0 %v14148_v62  ;;  %8764 = vmatprep.mubr.bf16.mxu1 %v14148_v62  ;;  %v14282_v62 = vld [vmem:[#allocation5 + $0xb8c] ss:$16 sps:$4 sm:$0xff]  }
 0x2cf   : > { %6835 = vmatmul.mubr.bf16.gmra.mrb[56].mxu0 %v14150_v63  ;;  %8765 = vmatmul.mubr.bf16.gmra.mrb[56].mxu1 %v14150_v63  ;;  %v14222_v63 = vld [vmem:[%s15448_s8 + $0x3e0] ss:$80 sps:$4 sm:$0xff]  }
 0x2d0   : > { %6844 = vmatprep.mubr.bf16.mxu0 %v14157_v0  ;;  %8774 = vmatprep.mubr.bf16.mxu1 %v14157_v0  ;;  %v14229_v0 = vld [vmem:[%s15448_s8 + $0x484] ss:$80 sps:$4 sm:$0xff]  }
 0x2d7   : > { %6845 = vmatmul.mubr.bf16.gmra.mrb[60].mxu0 %v14159_v1  ;;  %8775 = vmatmul.mubr.bf16.gmra.mrb[60].mxu1 %v14159_v1  ;;  %v14277_v1 = vld [vmem:[#allocation5 + $0xb80] ss:$16 sps:$4 sm:$0xff]  }
 0x2d8   : > { %6887 = vmatprep.mubr.bf16.mxu0 %v14168_v2  ;;  %8817 = vmatprep.mubr.bf16.mxu1 %v14168_v2  ;;  %v14280_v2 = vld [vmem:[#allocation5 + $0xb88] ss:$16 sps:$4 sm:$0xff]  }
 0x2df   : > { %6888 = vmatmul.mubr.bf16.vlgmr.msra.gmra.mrb[0].mxu0 %v14166_v3  ;;  %8818 = vmatmul.mubr.bf16.vlgmr.msra.gmra.mrb[0].mxu1 %v14166_v3  ;;  %v14288_v3 = vld [vmem:[#allocation5 + $0xba4] ss:$16 sps:$4 sm:$0xff]  }
 0x2e0   : > { %7049 = vmatpush1.bf16.msra.mxu0 %v14169_v4  ;;  %8979 = vmatpush1.bf16.msra.mxu1 %v14172_v5  ;;  %v14291_v4 = vld [vmem:[#allocation5 + $0xbac] ss:$16 sps:$4 sm:$0xff]   ;;  %v14286_v5 = vld [vmem:[#allocation5 + $0xba0] ss:$16 sps:$4 sm:$0xff]  }
 0x2e1   : > { %6897 = vmatprep.mubr.bf16.mxu0 %v14175_v6  ;;  %8827 = vmatprep.mubr.bf16.mxu1 %v14175_v6  ;;  %v14289_v6 = vld [vmem:[#allocation5 + $0xba8] ss:$16 sps:$4 sm:$0xff]  }
 0x2e2   : > { %7050 = vmatprep.subr.bf16.mxu0 %v14180_v7  ;;  %8980 = vmatprep.subr.bf16.mxu1 %v14183_v8  ;;  %v14297_v7 = vld [vmem:[#allocation5 + $0xbc4] ss:$16 sps:$4 sm:$0xff]   ;;  %v14300_v8 = vld [vmem:[#allocation5 + $0xbcc] ss:$16 sps:$4 sm:$0xff]  }
 0x2e4   : > { %7051 = vmatpush1.bf16.msra.mxu0 %v14178_v9  ;;  %8981 = vmatpush1.bf16.msra.mxu1 %v14181_v10  ;;  %v14231_v9 = vld [vmem:[%s15448_s8 + $0x480] ss:$80 sps:$4 sm:$0xff]   ;;  %v14238_v10 = vld [vmem:[%s15448_s8 + $0x524] ss:$80 sps:$4 sm:$0xff]  }
 0x2e5   : > { %7052 = vmatprep.subr.bf16.mxu0 %v14189_v11  ;;  %8982 = vmatprep.subr.bf16.mxu1 %v14192_v12  ;;  %v14295_v11 = vld [vmem:[#allocation5 + $0xbc0] ss:$16 sps:$4 sm:$0xff]   ;;  %v14298_v12 = vld [vmem:[#allocation5 + $0xbc8] ss:$16 sps:$4 sm:$0xff]  }
 0x2e7   : > { %6898 = vmatmul.mubr.bf16.gmra.mrb[4].mxu0 %v14177_v13  ;;  %8828 = vmatmul.mubr.bf16.gmra.mrb[4].mxu1 %v14177_v13  ;;  %v14306_v13 = vld [vmem:[#allocation5 + $0xbe4] ss:$16 sps:$4 sm:$0xff]  }
 0x2e8   : > { %6907 = vmatprep.mubr.bf16.mxu0 %v14184_v14  ;;  %8837 = vmatprep.mubr.bf16.mxu1 %v14184_v14  ;;  %v14309_v14 = vld [vmem:[#allocation5 + $0xbec] ss:$16 sps:$4 sm:$0xff]  }
 0x2e9   : > { %7053 = vmatpush1.bf16.msra.mxu0 %v14187_v15  ;;  %8983 = vmatpush1.bf16.msra.mxu1 %v14190_v16  ;;  %v14304_v15 = vld [vmem:[#allocation5 + $0xbe0] ss:$16 sps:$4 sm:$0xff]   ;;  %v14307_v16 = vld [vmem:[#allocation5 + $0xbe8] ss:$16 sps:$4 sm:$0xff]  }
 0x2ea   : > { %7054 = vmatprep.subr.bf16.mxu0 %v14198_v17  ;;  %8984 = vmatprep.subr.bf16.mxu1 %v14201_v18  ;;  %v14315_v17 = vld [vmem:[#allocation5 + $0xc04] ss:$16 sps:$4 sm:$0xff]   ;;  %v14318_v18 = vld [vmem:[#allocation5 + $0xc0c] ss:$16 sps:$4 sm:$0xff]  }
 0x2ed   : > { %7055 = vmatpush1.bf16.msra.mxu0 %v14196_v19  ;;  %8985 = vmatpush1.bf16.msra.mxu1 %v14199_v20  ;;  %v14240_v19 = vld [vmem:[%s15448_s8 + $0x520] ss:$80 sps:$4 sm:$0xff]   ;;  %v14247_v20 = vld [vmem:[%s15448_s8 + $0x5c4] ss:$80 sps:$4 sm:$0xff]  }
 0x2ee   : > { %7056 = vmatprep.subr.bf16.mxu0 %v14207_v21  ;;  %8986 = vmatprep.subr.bf16.mxu1 %v14210_v22  ;;  %v14249_v21 = vld [vmem:[%s15448_s8 + $0x5c0] ss:$80 sps:$4 sm:$0xff]   ;;  %v14256_v22 = vld [vmem:[%s15448_s8 + $0x664] ss:$80 sps:$4 sm:$0xff]  }
 0x2ef   : > { %6908 = vmatmul.mubr.bf16.gmra.mrb[8].mxu0 %v14186_v23  ;;  %8838 = vmatmul.mubr.bf16.gmra.mrb[8].mxu1 %v14186_v23  ;;  %v14258_v23 = vld [vmem:[%s15448_s8 + $0x660] ss:$80 sps:$4 sm:$0xff]  }
 0x2f0   : > { %6917 = vmatprep.mubr.bf16.mxu0 %v14193_v24  ;;  %8847 = vmatprep.mubr.bf16.mxu1 %v14193_v24  ;;  %v14265_v24 = vld [vmem:[%s15448_s8 + $0x704] ss:$80 sps:$4 sm:$0xff]  }
 0x2f1   : > { %7057 = vmatpush1.bf16.msra.mxu0 %v14205_v25  ;;  %8987 = vmatpush1.bf16.msra.mxu1 %v14208_v26  ;;  %v14267_v25 = vld [vmem:[%s15448_s8 + $0x700] ss:$80 sps:$4 sm:$0xff]   ;;  %v14274_v26 = vld [vmem:[%s15448_s8 + $0x7a4] ss:$80 sps:$4 sm:$0xff]  }
 0x2f2   : > { %7058 = vmatprep.subr.bf16.mxu0 %v14216_v27  ;;  %8988 = vmatprep.subr.bf16.mxu1 %v14219_v28  ;;  %v14276_v27 = vld [vmem:[%s15448_s8 + $0x7a0] ss:$80 sps:$4 sm:$0xff]   ;;  %v14283_v28 = vld [vmem:[%s15448_s8 + $0x844] ss:$80 sps:$4 sm:$0xff]  }
 0x2f5   : > { %7059 = vmatpush1.bf16.msra.mxu0 %v14214_v29  ;;  %8989 = vmatpush1.bf16.msra.mxu1 %v14217_v30  ;;  %v14285_v29 = vld [vmem:[%s15448_s8 + $0x840] ss:$80 sps:$4 sm:$0xff]   ;;  %v14292_v30 = vld [vmem:[%s15448_s8 + $0x8e4] ss:$80 sps:$4 sm:$0xff]  }
 0x2f6   : > { %7060 = vmatprep.subr.bf16.mxu0 %v14225_v31  ;;  %8990 = vmatprep.subr.bf16.mxu1 %v14228_v32  ;;  %v14294_v31 = vld [vmem:[%s15448_s8 + $0x8e0] ss:$80 sps:$4 sm:$0xff]   ;;  %v14301_v32 = vld [vmem:[%s15448_s8 + $0x984] ss:$80 sps:$4 sm:$0xff]  }
 0x2f7   : > { %6918 = vmatmul.mubr.bf16.gmra.mrb[12].mxu0 %v14195_v33  ;;  %8848 = vmatmul.mubr.bf16.gmra.mrb[12].mxu1 %v14195_v33  ;;  %v14303_v33 = vld [vmem:[%s15448_s8 + $0x980] ss:$80 sps:$4 sm:$0xff]  }
 0x2f8   : > { %6927 = vmatprep.mubr.bf16.mxu0 %v14202_v34  ;;  %8857 = vmatprep.mubr.bf16.mxu1 %v14202_v34  ;;  %v14312_v34 = vld [vmem:[%s15448_s8 + $0x2c] ss:$80 sps:$4 sm:$0xff]  }
 0x2f9   : > { %7061 = vmatpush1.bf16.msra.mxu0 %v14223_v35  ;;  %8991 = vmatpush1.bf16.msra.mxu1 %v14226_v36  ;;  %v14310_v35 = vld [vmem:[%s15448_s8 + $0x28] ss:$80 sps:$4 sm:$0xff]   ;;  %v14313_v36 = vld [vmem:[#allocation5 + $0xc00] ss:$16 sps:$4 sm:$0xff]  }
 0x2fa   : > { %7062 = vmatprep.subr.bf16.mxu0 %v14234_v37  ;;  %8992 = vmatprep.subr.bf16.mxu1 %v14237_v38  ;;  %v14316_v37 = vld [vmem:[#allocation5 + $0xc08] ss:$16 sps:$4 sm:$0xff]   ;;  %v14319_v38 = vld [vmem:[%s15448_s8 + $0xcc] ss:$80 sps:$4 sm:$0xff]  }
 0x2fd   : > { %7063 = vmatpush1.bf16.msra.mxu0 %v14232_v39  ;;  %8993 = vmatpush1.bf16.msra.mxu1 %v14235_v40  ;;  %v14324_v39 = vld [vmem:[#allocation5 + $0xc24] ss:$16 sps:$4 sm:$0xff]   ;;  %v14327_v40 = vld [vmem:[#allocation5 + $0xc2c] ss:$16 sps:$4 sm:$0xff]  }
 0x2fe   : > { %7064 = vmatprep.subr.bf16.mxu0 %v14243_v41  ;;  %8994 = vmatprep.subr.bf16.mxu1 %v14246_v42  ;;  %v14322_v41 = vld [vmem:[#allocation5 + $0xc20] ss:$16 sps:$4 sm:$0xff]   ;;  %v14325_v42 = vld [vmem:[#allocation5 + $0xc28] ss:$16 sps:$4 sm:$0xff]  }
 0x2ff   : > { %6928 = vmatmul.mubr.bf16.gmra.mrb[16].mxu0 %v14204_v43  ;;  %8858 = vmatmul.mubr.bf16.gmra.mrb[16].mxu1 %v14204_v43  ;;  %v14333_v43 = vld [vmem:[#allocation5 + $0xc44] ss:$16 sps:$4 sm:$0xff]  }
 0x300   : > { %6937 = vmatprep.mubr.bf16.mxu0 %v14211_v44  ;;  %8867 = vmatprep.mubr.bf16.mxu1 %v14211_v44  ;;  %v14336_v44 = vld [vmem:[#allocation5 + $0xc4c] ss:$16 sps:$4 sm:$0xff]  }
 0x301   : > { %7065 = vmatpush1.bf16.msra.mxu0 %v14241_v45  ;;  %8995 = vmatpush1.bf16.msra.mxu1 %v14244_v46  ;;  %v14321_v45 = vld [vmem:[%s15448_s8 + $0xc8] ss:$80 sps:$4 sm:$0xff]   ;;  %v14328_v46 = vld [vmem:[%s15448_s8 + $0x16c] ss:$80 sps:$4 sm:$0xff]  }
 0x302   : > { %7066 = vmatprep.subr.bf16.mxu0 %v14252_v47  ;;  %8996 = vmatprep.subr.bf16.mxu1 %v14255_v48  ;;  %v14331_v47 = vld [vmem:[#allocation5 + $0xc40] ss:$16 sps:$4 sm:$0xff]   ;;  %v14334_v48 = vld [vmem:[#allocation5 + $0xc48] ss:$16 sps:$4 sm:$0xff]  }
 0x305   : > { %7067 = vmatpush1.bf16.msra.mxu0 %v14250_v49  ;;  %8997 = vmatpush1.bf16.msra.mxu1 %v14253_v50  ;;  %v14342_v49 = vld [vmem:[#allocation5 + $0xc64] ss:$16 sps:$4 sm:$0xff]   ;;  %v14345_v50 = vld [vmem:[#allocation5 + $0xc6c] ss:$16 sps:$4 sm:$0xff]  }
 0x306   : > { %7068 = vmatprep.subr.bf16.mxu0 %v14261_v51  ;;  %8998 = vmatprep.subr.bf16.mxu1 %v14264_v52  ;;  %v14340_v51 = vld [vmem:[#allocation5 + $0xc60] ss:$16 sps:$4 sm:$0xff]   ;;  %v14343_v52 = vld [vmem:[#allocation5 + $0xc68] ss:$16 sps:$4 sm:$0xff]  }
 0x307   : > { %6938 = vmatmul.mubr.bf16.gmra.mrb[20].mxu0 %v14213_v53  ;;  %8868 = vmatmul.mubr.bf16.gmra.mrb[20].mxu1 %v14213_v53  ;;  %v14351_v53 = vld [vmem:[#allocation5 + $0xc84] ss:$16 sps:$4 sm:$0xff]  }
 0x308   : > { %6947 = vmatprep.mubr.bf16.mxu0 %v14220_v54  ;;  %8877 = vmatprep.mubr.bf16.mxu1 %v14220_v54  ;;  %v14354_v54 = vld [vmem:[#allocation5 + $0xc8c] ss:$16 sps:$4 sm:$0xff]  }
 0x309   : > { %7069 = vmatpush1.bf16.msra.mxu0 %v14259_v55  ;;  %8999 = vmatpush1.bf16.msra.mxu1 %v14262_v56  ;;  %v14330_v55 = vld [vmem:[%s15448_s8 + $0x168] ss:$80 sps:$4 sm:$0xff]   ;;  %v14337_v56 = vld [vmem:[%s15448_s8 + $0x20c] ss:$80 sps:$4 sm:$0xff]  }
 0x30a   : > { %7070 = vmatprep.subr.bf16.mxu0 %v14270_v57  ;;  %9000 = vmatprep.subr.bf16.mxu1 %v14273_v58  ;;  %v14349_v57 = vld [vmem:[#allocation5 + $0xc80] ss:$16 sps:$4 sm:$0xff]   ;;  %v14352_v58 = vld [vmem:[#allocation5 + $0xc88] ss:$16 sps:$4 sm:$0xff]  }
 0x30d   : > { %7071 = vmatpush1.bf16.msra.mxu0 %v14268_v59  ;;  %9001 = vmatpush1.bf16.msra.mxu1 %v14271_v60  ;;  %v14360_v59 = vld [vmem:[#allocation5 + $0xca4] ss:$16 sps:$4 sm:$0xff]   ;;  %v14363_v60 = vld [vmem:[#allocation5 + $0xcac] ss:$16 sps:$4 sm:$0xff]  }
 0x30e   : > { %7072 = vmatprep.subr.bf16.mxu0 %v14279_v61  ;;  %9002 = vmatprep.subr.bf16.mxu1 %v14282_v62  ;;  %v14358_v61 = vld [vmem:[#allocation5 + $0xca0] ss:$16 sps:$4 sm:$0xff]   ;;  %v14361_v62 = vld [vmem:[#allocation5 + $0xca8] ss:$16 sps:$4 sm:$0xff]  }
 0x30f   : > { %6948 = vmatmul.mubr.bf16.gmra.mrb[24].mxu0 %v14222_v63  ;;  %8878 = vmatmul.mubr.bf16.gmra.mrb[24].mxu1 %v14222_v63  ;;  %v14369_v63 = vld [vmem:[#allocation5 + $0xcc4] ss:$16 sps:$4 sm:$0xff]  }
 0x310   : > { %6957 = vmatprep.mubr.bf16.mxu0 %v14229_v0  ;;  %8887 = vmatprep.mubr.bf16.mxu1 %v14229_v0  ;;  %v14372_v0 = vld [vmem:[#allocation5 + $0xccc] ss:$16 sps:$4 sm:$0xff]  }
 0x311   : > { %7073 = vmatpush1.bf16.msra.mxu0 %v14277_v1  ;;  %9003 = vmatpush1.bf16.msra.mxu1 %v14280_v2  ;;  %v14339_v1 = vld [vmem:[%s15448_s8 + $0x208] ss:$80 sps:$4 sm:$0xff]   ;;  %v14346_v2 = vld [vmem:[%s15448_s8 + $0x2ac] ss:$80 sps:$4 sm:$0xff]  }
 0x312   : > { %7074 = vmatprep.subr.bf16.mxu0 %v14288_v3  ;;  %9004 = vmatprep.subr.bf16.mxu1 %v14291_v4  ;;  %v14367_v3 = vld [vmem:[#allocation5 + $0xcc0] ss:$16 sps:$4 sm:$0xff]   ;;  %v14370_v4 = vld [vmem:[#allocation5 + $0xcc8] ss:$16 sps:$4 sm:$0xff]  }
 0x315   : > { %7075 = vmatpush1.bf16.msra.mxu0 %v14286_v5  ;;  %9005 = vmatpush1.bf16.msra.mxu1 %v14289_v6  ;;  %v14378_v5 = vld [vmem:[#allocation5 + $0xce4] ss:$16 sps:$4 sm:$0xff]   ;;  %v14381_v6 = vld [vmem:[#allocation5 + $0xcec] ss:$16 sps:$4 sm:$0xff]  }
 0x316   : > { %7076 = vmatprep.subr.bf16.mxu0 %v14297_v7  ;;  %9006 = vmatprep.subr.bf16.mxu1 %v14300_v8  ;;  %v14376_v7 = vld [vmem:[#allocation5 + $0xce0] ss:$16 sps:$4 sm:$0xff]   ;;  %v14379_v8 = vld [vmem:[#allocation5 + $0xce8] ss:$16 sps:$4 sm:$0xff]  }
 0x317   : > { %6958 = vmatmul.mubr.bf16.gmra.mrb[28].mxu0 %v14231_v9  ;;  %8888 = vmatmul.mubr.bf16.gmra.mrb[28].mxu1 %v14231_v9  ;;  %v14387_v9 = vld [vmem:[#allocation5 + $0xd04] ss:$16 sps:$4 sm:$0xff]  }
 0x318   : > { %6967 = vmatprep.mubr.bf16.mxu0 %v14238_v10  ;;  %8897 = vmatprep.mubr.bf16.mxu1 %v14238_v10  ;;  %v14390_v10 = vld [vmem:[#allocation5 + $0xd0c] ss:$16 sps:$4 sm:$0xff]  }
 0x319   : > { %7077 = vmatpush1.bf16.msra.mxu0 %v14295_v11  ;;  %9007 = vmatpush1.bf16.msra.mxu1 %v14298_v12  ;;  %v14348_v11 = vld [vmem:[%s15448_s8 + $0x2a8] ss:$80 sps:$4 sm:$0xff]   ;;  %v14355_v12 = vld [vmem:[%s15448_s8 + $0x34c] ss:$80 sps:$4 sm:$0xff]  }
 0x31a   : > { %7078 = vmatprep.subr.bf16.mxu0 %v14306_v13  ;;  %9008 = vmatprep.subr.bf16.mxu1 %v14309_v14  ;;  %v14385_v13 = vld [vmem:[#allocation5 + $0xd00] ss:$16 sps:$4 sm:$0xff]   ;;  %v14388_v14 = vld [vmem:[#allocation5 + $0xd08] ss:$16 sps:$4 sm:$0xff]  }
 0x31d   : > { %7079 = vmatpush1.bf16.msra.mxu0 %v14304_v15  ;;  %9009 = vmatpush1.bf16.msra.mxu1 %v14307_v16  ;;  %v14396_v15 = vld [vmem:[#allocation5 + $0xd24] ss:$16 sps:$4 sm:$0xff]   ;;  %v14399_v16 = vld [vmem:[#allocation5 + $0xd2c] ss:$16 sps:$4 sm:$0xff]  }
 0x31e   : > { %7241 = vmatprep.subr.bf16.mxu0 %v14315_v17  ;;  %9171 = vmatprep.subr.bf16.mxu1 %v14318_v18  ;;  %v14394_v17 = vld [vmem:[#allocation5 + $0xd20] ss:$16 sps:$4 sm:$0xff]   ;;  %v14397_v18 = vld [vmem:[#allocation5 + $0xd28] ss:$16 sps:$4 sm:$0xff]  }
 0x31f   : > { %6968 = vmatmul.mubr.bf16.gmra.mrb[32].mxu0 %v14240_v19  ;;  %8898 = vmatmul.mubr.bf16.gmra.mrb[32].mxu1 %v14240_v19  ;;  %v14405_v19 = vld [vmem:[#allocation5 + $0xd44] ss:$16 sps:$4 sm:$0xff]  }
 0x320   : > { %6977 = vmatprep.mubr.bf16.mxu0 %v14247_v20  ;;  %8907 = vmatprep.mubr.bf16.mxu1 %v14247_v20  ;;  %v14408_v20 = vld [vmem:[#allocation5 + $0xd4c] ss:$16 sps:$4 sm:$0xff]  }
 0x327   : > { %6978 = vmatmul.mubr.bf16.gmra.mrb[36].mxu0 %v14249_v21  ;;  %8908 = vmatmul.mubr.bf16.gmra.mrb[36].mxu1 %v14249_v21  ;;  %v14357_v21 = vld [vmem:[%s15448_s8 + $0x348] ss:$80 sps:$4 sm:$0xff]  }
 0x328   : > { %6987 = vmatprep.mubr.bf16.mxu0 %v14256_v22  ;;  %8917 = vmatprep.mubr.bf16.mxu1 %v14256_v22  ;;  %v14364_v22 = vld [vmem:[%s15448_s8 + $0x3ec] ss:$80 sps:$4 sm:$0xff]  }
 0x32f   : > { %6988 = vmatmul.mubr.bf16.gmra.mrb[40].mxu0 %v14258_v23  ;;  %8918 = vmatmul.mubr.bf16.gmra.mrb[40].mxu1 %v14258_v23  ;;  %v14403_v23 = vld [vmem:[#allocation5 + $0xd40] ss:$16 sps:$4 sm:$0xff]  }
 0x330   : > { %6997 = vmatprep.mubr.bf16.mxu0 %v14265_v24  ;;  %8927 = vmatprep.mubr.bf16.mxu1 %v14265_v24  ;;  %v14406_v24 = vld [vmem:[#allocation5 + $0xd48] ss:$16 sps:$4 sm:$0xff]  }
 0x337   : > { %6998 = vmatmul.mubr.bf16.gmra.mrb[44].mxu0 %v14267_v25  ;;  %8928 = vmatmul.mubr.bf16.gmra.mrb[44].mxu1 %v14267_v25  ;;  %v14414_v25 = vld [vmem:[#allocation5 + $0xd64] ss:$16 sps:$4 sm:$0xff]  }
 0x338   : > { %7007 = vmatprep.mubr.bf16.mxu0 %v14274_v26  ;;  %8937 = vmatprep.mubr.bf16.mxu1 %v14274_v26  ;;  %v14417_v26 = vld [vmem:[#allocation5 + $0xd6c] ss:$16 sps:$4 sm:$0xff]  }
 0x33f   : > { %7008 = vmatmul.mubr.bf16.gmra.mrb[48].mxu0 %v14276_v27  ;;  %8938 = vmatmul.mubr.bf16.gmra.mrb[48].mxu1 %v14276_v27  ;;  %v14412_v27 = vld [vmem:[#allocation5 + $0xd60] ss:$16 sps:$4 sm:$0xff]  }
 0x340   : > { %7017 = vmatprep.mubr.bf16.mxu0 %v14283_v28  ;;  %8947 = vmatprep.mubr.bf16.mxu1 %v14283_v28  ;;  %v14415_v28 = vld [vmem:[#allocation5 + $0xd68] ss:$16 sps:$4 sm:$0xff]  }
 0x347   : > { %7018 = vmatmul.mubr.bf16.gmra.mrb[52].mxu0 %v14285_v29  ;;  %8948 = vmatmul.mubr.bf16.gmra.mrb[52].mxu1 %v14285_v29  ;;  %v14423_v29 = vld [vmem:[#allocation5 + $0xd84] ss:$16 sps:$4 sm:$0xff]  }
 0x348   : > { %7027 = vmatprep.mubr.bf16.mxu0 %v14292_v30  ;;  %8957 = vmatprep.mubr.bf16.mxu1 %v14292_v30  ;;  %v14426_v30 = vld [vmem:[#allocation5 + $0xd8c] ss:$16 sps:$4 sm:$0xff]  }
 0x34f   : > { %7028 = vmatmul.mubr.bf16.gmra.mrb[56].mxu0 %v14294_v31  ;;  %8958 = vmatmul.mubr.bf16.gmra.mrb[56].mxu1 %v14294_v31  ;;  %v14366_v31 = vld [vmem:[%s15448_s8 + $0x3e8] ss:$80 sps:$4 sm:$0xff]  }
 0x350   : > { %7037 = vmatprep.mubr.bf16.mxu0 %v14301_v32  ;;  %8967 = vmatprep.mubr.bf16.mxu1 %v14301_v32  ;;  %v14373_v32 = vld [vmem:[%s15448_s8 + $0x48c] ss:$80 sps:$4 sm:$0xff]  }
 0x357   : > { %7038 = vmatmul.mubr.bf16.gmra.mrb[60].mxu0 %v14303_v33  ;;  %8968 = vmatmul.mubr.bf16.gmra.mrb[60].mxu1 %v14303_v33  ;;  %v14421_v33 = vld [vmem:[#allocation5 + $0xd80] ss:$16 sps:$4 sm:$0xff]  }
 0x358   : > { %7080 = vmatprep.mubr.bf16.mxu0 %v14312_v34  ;;  %9010 = vmatprep.mubr.bf16.mxu1 %v14312_v34  ;;  %v14424_v34 = vld [vmem:[#allocation5 + $0xd88] ss:$16 sps:$4 sm:$0xff]  }
 0x35f   : > { %7081 = vmatmul.mubr.bf16.vlgmr.msra.gmra.mrb[0].mxu0 %v14310_v35  ;;  %9011 = vmatmul.mubr.bf16.vlgmr.msra.gmra.mrb[0].mxu1 %v14310_v35  ;;  %v14432_v35 = vld [vmem:[#allocation5 + $0xda4] ss:$16 sps:$4 sm:$0xff]  }
 0x360   : > { %7242 = vmatpush1.bf16.msra.mxu0 %v14313_v36  ;;  %9172 = vmatpush1.bf16.msra.mxu1 %v14316_v37  ;;  %v14435_v36 = vld [vmem:[#allocation5 + $0xdac] ss:$16 sps:$4 sm:$0xff]   ;;  %v14430_v37 = vld [vmem:[#allocation5 + $0xda0] ss:$16 sps:$4 sm:$0xff]  }
 0x361   : > { %7090 = vmatprep.mubr.bf16.mxu0 %v14319_v38  ;;  %9020 = vmatprep.mubr.bf16.mxu1 %v14319_v38  ;;  %v14433_v38 = vld [vmem:[#allocation5 + $0xda8] ss:$16 sps:$4 sm:$0xff]  }
 0x362   : > { %7243 = vmatprep.subr.bf16.mxu0 %v14324_v39  ;;  %9173 = vmatprep.subr.bf16.mxu1 %v14327_v40  ;;  %v14441_v39 = vld [vmem:[#allocation5 + $0xdc4] ss:$16 sps:$4 sm:$0xff]   ;;  %v14444_v40 = vld [vmem:[#allocation5 + $0xdcc] ss:$16 sps:$4 sm:$0xff]  }
 0x364   : > { %7244 = vmatpush1.bf16.msra.mxu0 %v14322_v41  ;;  %9174 = vmatpush1.bf16.msra.mxu1 %v14325_v42  ;;  %v14375_v41 = vld [vmem:[%s15448_s8 + $0x488] ss:$80 sps:$4 sm:$0xff]   ;;  %v14382_v42 = vld [vmem:[%s15448_s8 + $0x52c] ss:$80 sps:$4 sm:$0xff]  }
 0x365   : > { %7245 = vmatprep.subr.bf16.mxu0 %v14333_v43  ;;  %9175 = vmatprep.subr.bf16.mxu1 %v14336_v44  ;;  %v14439_v43 = vld [vmem:[#allocation5 + $0xdc0] ss:$16 sps:$4 sm:$0xff]   ;;  %v14442_v44 = vld [vmem:[#allocation5 + $0xdc8] ss:$16 sps:$4 sm:$0xff]  }
 0x367   : > { %7091 = vmatmul.mubr.bf16.gmra.mrb[4].mxu0 %v14321_v45  ;;  %9021 = vmatmul.mubr.bf16.gmra.mrb[4].mxu1 %v14321_v45  ;;  %v14450_v45 = vld [vmem:[#allocation5 + $0xde4] ss:$16 sps:$4 sm:$0xff]  }
 0x368   : > { %7100 = vmatprep.mubr.bf16.mxu0 %v14328_v46  ;;  %9030 = vmatprep.mubr.bf16.mxu1 %v14328_v46  ;;  %v14453_v46 = vld [vmem:[#allocation5 + $0xdec] ss:$16 sps:$4 sm:$0xff]  }
 0x369   : > { %7246 = vmatpush1.bf16.msra.mxu0 %v14331_v47  ;;  %9176 = vmatpush1.bf16.msra.mxu1 %v14334_v48  ;;  %v14448_v47 = vld [vmem:[#allocation5 + $0xde0] ss:$16 sps:$4 sm:$0xff]   ;;  %v14451_v48 = vld [vmem:[#allocation5 + $0xde8] ss:$16 sps:$4 sm:$0xff]  }
 0x36a   : > { %7247 = vmatprep.subr.bf16.mxu0 %v14342_v49  ;;  %9177 = vmatprep.subr.bf16.mxu1 %v14345_v50  ;;  %v14459_v49 = vld [vmem:[#allocation5 + $0xe04] ss:$16 sps:$4 sm:$0xff]   ;;  %v14462_v50 = vld [vmem:[#allocation5 + $0xe0c] ss:$16 sps:$4 sm:$0xff]  }
 0x36d   : > { %7248 = vmatpush1.bf16.msra.mxu0 %v14340_v51  ;;  %9178 = vmatpush1.bf16.msra.mxu1 %v14343_v52  ;;  %v14384_v51 = vld [vmem:[%s15448_s8 + $0x528] ss:$80 sps:$4 sm:$0xff]   ;;  %v14391_v52 = vld [vmem:[%s15448_s8 + $0x5cc] ss:$80 sps:$4 sm:$0xff]  }
 0x36e   : > { %7249 = vmatprep.subr.bf16.mxu0 %v14351_v53  ;;  %9179 = vmatprep.subr.bf16.mxu1 %v14354_v54  ;;  %v14393_v53 = vld [vmem:[%s15448_s8 + $0x5c8] ss:$80 sps:$4 sm:$0xff]   ;;  %v14400_v54 = vld [vmem:[%s15448_s8 + $0x66c] ss:$80 sps:$4 sm:$0xff]  }
 0x36f   : > { %7101 = vmatmul.mubr.bf16.gmra.mrb[8].mxu0 %v14330_v55  ;;  %9031 = vmatmul.mubr.bf16.gmra.mrb[8].mxu1 %v14330_v55  ;;  %v14402_v55 = vld [vmem:[%s15448_s8 + $0x668] ss:$80 sps:$4 sm:$0xff]  }
 0x370   : > { %7110 = vmatprep.mubr.bf16.mxu0 %v14337_v56  ;;  %9040 = vmatprep.mubr.bf16.mxu1 %v14337_v56  ;;  %v14409_v56 = vld [vmem:[%s15448_s8 + $0x70c] ss:$80 sps:$4 sm:$0xff]  }
 0x371   : > { %7250 = vmatpush1.bf16.msra.mxu0 %v14349_v57  ;;  %9180 = vmatpush1.bf16.msra.mxu1 %v14352_v58  ;;  %v14411_v57 = vld [vmem:[%s15448_s8 + $0x708] ss:$80 sps:$4 sm:$0xff]   ;;  %v14418_v58 = vld [vmem:[%s15448_s8 + $0x7ac] ss:$80 sps:$4 sm:$0xff]  }
 0x372   : > { %7251 = vmatprep.subr.bf16.mxu0 %v14360_v59  ;;  %9181 = vmatprep.subr.bf16.mxu1 %v14363_v60  ;;  %v14420_v59 = vld [vmem:[%s15448_s8 + $0x7a8] ss:$80 sps:$4 sm:$0xff]   ;;  %v14427_v60 = vld [vmem:[%s15448_s8 + $0x84c] ss:$80 sps:$4 sm:$0xff]  }
 0x375   : > { %7252 = vmatpush1.bf16.msra.mxu0 %v14358_v61  ;;  %9182 = vmatpush1.bf16.msra.mxu1 %v14361_v62  ;;  %v14429_v61 = vld [vmem:[%s15448_s8 + $0x848] ss:$80 sps:$4 sm:$0xff]   ;;  %v14436_v62 = vld [vmem:[%s15448_s8 + $0x8ec] ss:$80 sps:$4 sm:$0xff]  }
 0x376   : > { %7253 = vmatprep.subr.bf16.mxu0 %v14369_v63  ;;  %9183 = vmatprep.subr.bf16.mxu1 %v14372_v0  ;;  %v14438_v63 = vld [vmem:[%s15448_s8 + $0x8e8] ss:$80 sps:$4 sm:$0xff]   ;;  %v14445_v0 = vld [vmem:[%s15448_s8 + $0x98c] ss:$80 sps:$4 sm:$0xff]  }
 0x377   : > { %7111 = vmatmul.mubr.bf16.gmra.mrb[12].mxu0 %v14339_v1  ;;  %9041 = vmatmul.mubr.bf16.gmra.mrb[12].mxu1 %v14339_v1  ;;  %v14447_v1 = vld [vmem:[%s15448_s8 + $0x988] ss:$80 sps:$4 sm:$0xff]  }
 0x378   : > { %7120 = vmatprep.mubr.bf16.mxu0 %v14346_v2  ;;  %9050 = vmatprep.mubr.bf16.mxu1 %v14346_v2  ;;  %v14456_v2 = vld [vmem:[%s15448_s8 + $0x34] ss:$80 sps:$4 sm:$0xff]  }
 0x379   : > { %7254 = vmatpush1.bf16.msra.mxu0 %v14367_v3  ;;  %9184 = vmatpush1.bf16.msra.mxu1 %v14370_v4  ;;  %v14454_v3 = vld [vmem:[%s15448_s8 + $0x30] ss:$80 sps:$4 sm:$0xff]  }
 0x37a   : > { %7255 = vmatprep.subr.bf16.mxu0 %v14378_v5  ;;  %9185 = vmatprep.subr.bf16.mxu1 %v14381_v6  ;;  %v14457_v4 = vld [vmem:[#allocation5 + $0xe00] ss:$16 sps:$4 sm:$0xff]   ;;  %v14460_v5 = vld [vmem:[#allocation5 + $0xe08] ss:$16 sps:$4 sm:$0xff]   ;;  %v14463_v6 = vld [vmem:[%s15448_s8 + $0xd4] ss:$80 sps:$4 sm:$0xff]  }
 0x37d   : > { %7256 = vmatpush1.bf16.msra.mxu0 %v14376_v7  ;;  %9186 = vmatpush1.bf16.msra.mxu1 %v14379_v8  ;;  %v14468_v7 = vld [vmem:[#allocation5 + $0xe24] ss:$16 sps:$4 sm:$0xff]   ;;  %v14471_v8 = vld [vmem:[#allocation5 + $0xe2c] ss:$16 sps:$4 sm:$0xff]  }
 0x37e   : > { %7257 = vmatprep.subr.bf16.mxu0 %v14387_v9  ;;  %9187 = vmatprep.subr.bf16.mxu1 %v14390_v10  ;;  %v14466_v9 = vld [vmem:[#allocation5 + $0xe20] ss:$16 sps:$4 sm:$0xff]   ;;  %v14469_v10 = vld [vmem:[#allocation5 + $0xe28] ss:$16 sps:$4 sm:$0xff]  }
 0x37f   : > { %7121 = vmatmul.mubr.bf16.gmra.mrb[16].mxu0 %v14348_v11  ;;  %9051 = vmatmul.mubr.bf16.gmra.mrb[16].mxu1 %v14348_v11  ;;  %v14477_v11 = vld [vmem:[#allocation5 + $0xe44] ss:$16 sps:$4 sm:$0xff]  }
 0x380   : > { %7130 = vmatprep.mubr.bf16.mxu0 %v14355_v12  ;;  %9060 = vmatprep.mubr.bf16.mxu1 %v14355_v12  ;;  %v14480_v12 = vld [vmem:[#allocation5 + $0xe4c] ss:$16 sps:$4 sm:$0xff]  }
 0x381   : > { %7258 = vmatpush1.bf16.msra.mxu0 %v14385_v13  ;;  %9188 = vmatpush1.bf16.msra.mxu1 %v14388_v14  ;;  %v14465_v13 = vld [vmem:[%s15448_s8 + $0xd0] ss:$80 sps:$4 sm:$0xff]   ;;  %v14472_v14 = vld [vmem:[%s15448_s8 + $0x174] ss:$80 sps:$4 sm:$0xff]  }
 0x382   : > { %7259 = vmatprep.subr.bf16.mxu0 %v14396_v15  ;;  %9189 = vmatprep.subr.bf16.mxu1 %v14399_v16  ;;  %v14475_v15 = vld [vmem:[#allocation5 + $0xe40] ss:$16 sps:$4 sm:$0xff]   ;;  %v14478_v16 = vld [vmem:[#allocation5 + $0xe48] ss:$16 sps:$4 sm:$0xff]  }
 0x385   : > { %7260 = vmatpush1.bf16.msra.mxu0 %v14394_v17  ;;  %9190 = vmatpush1.bf16.msra.mxu1 %v14397_v18  ;;  %v14486_v17 = vld [vmem:[#allocation5 + $0xe64] ss:$16 sps:$4 sm:$0xff]   ;;  %v14489_v18 = vld [vmem:[#allocation5 + $0xe6c] ss:$16 sps:$4 sm:$0xff]  }
 0x386   : > { %7261 = vmatprep.subr.bf16.mxu0 %v14405_v19  ;;  %9191 = vmatprep.subr.bf16.mxu1 %v14408_v20  ;;  %v14484_v19 = vld [vmem:[#allocation5 + $0xe60] ss:$16 sps:$4 sm:$0xff]   ;;  %v14487_v20 = vld [vmem:[#allocation5 + $0xe68] ss:$16 sps:$4 sm:$0xff]  }
 0x387   : > { %7131 = vmatmul.mubr.bf16.gmra.mrb[20].mxu0 %v14357_v21  ;;  %9061 = vmatmul.mubr.bf16.gmra.mrb[20].mxu1 %v14357_v21  ;;  %v14495_v21 = vld [vmem:[#allocation5 + $0xe84] ss:$16 sps:$4 sm:$0xff]  }
 0x388   : > { %7140 = vmatprep.mubr.bf16.mxu0 %v14364_v22  ;;  %9070 = vmatprep.mubr.bf16.mxu1 %v14364_v22  ;;  %v14498_v22 = vld [vmem:[#allocation5 + $0xe8c] ss:$16 sps:$4 sm:$0xff]  }
 0x389   : > { %7262 = vmatpush1.bf16.msra.mxu0 %v14403_v23  ;;  %9192 = vmatpush1.bf16.msra.mxu1 %v14406_v24  ;;  %v14474_v23 = vld [vmem:[%s15448_s8 + $0x170] ss:$80 sps:$4 sm:$0xff]   ;;  %v14481_v24 = vld [vmem:[%s15448_s8 + $0x214] ss:$80 sps:$4 sm:$0xff]  }
 0x38a   : > { %7263 = vmatprep.subr.bf16.mxu0 %v14414_v25  ;;  %9193 = vmatprep.subr.bf16.mxu1 %v14417_v26  ;;  %v14493_v25 = vld [vmem:[#allocation5 + $0xe80] ss:$16 sps:$4 sm:$0xff]   ;;  %v14496_v26 = vld [vmem:[#allocation5 + $0xe88] ss:$16 sps:$4 sm:$0xff]  }
 0x38d   : > { %7264 = vmatpush1.bf16.msra.mxu0 %v14412_v27  ;;  %9194 = vmatpush1.bf16.msra.mxu1 %v14415_v28  ;;  %v14504_v27 = vld [vmem:[#allocation5 + $0xea4] ss:$16 sps:$4 sm:$0xff]   ;;  %v14507_v28 = vld [vmem:[#allocation5 + $0xeac] ss:$16 sps:$4 sm:$0xff]  }
 0x38e   : > { %7265 = vmatprep.subr.bf16.mxu0 %v14423_v29  ;;  %9195 = vmatprep.subr.bf16.mxu1 %v14426_v30  ;;  %v14502_v29 = vld [vmem:[#allocation5 + $0xea0] ss:$16 sps:$4 sm:$0xff]   ;;  %v14505_v30 = vld [vmem:[#allocation5 + $0xea8] ss:$16 sps:$4 sm:$0xff]  }
 0x38f   : > { %7141 = vmatmul.mubr.bf16.gmra.mrb[24].mxu0 %v14366_v31  ;;  %9071 = vmatmul.mubr.bf16.gmra.mrb[24].mxu1 %v14366_v31  ;;  %v14513_v31 = vld [vmem:[#allocation5 + $0xec4] ss:$16 sps:$4 sm:$0xff]  }
 0x390   : > { %7150 = vmatprep.mubr.bf16.mxu0 %v14373_v32  ;;  %9080 = vmatprep.mubr.bf16.mxu1 %v14373_v32  ;;  %v14516_v32 = vld [vmem:[#allocation5 + $0xecc] ss:$16 sps:$4 sm:$0xff]  }
 0x391   : > { %7266 = vmatpush1.bf16.msra.mxu0 %v14421_v33  ;;  %9196 = vmatpush1.bf16.msra.mxu1 %v14424_v34  ;;  %v14483_v33 = vld [vmem:[%s15448_s8 + $0x210] ss:$80 sps:$4 sm:$0xff]   ;;  %v14490_v34 = vld [vmem:[%s15448_s8 + $0x2b4] ss:$80 sps:$4 sm:$0xff]  }
 0x392   : > { %7267 = vmatprep.subr.bf16.mxu0 %v14432_v35  ;;  %9197 = vmatprep.subr.bf16.mxu1 %v14435_v36  ;;  %v14511_v35 = vld [vmem:[#allocation5 + $0xec0] ss:$16 sps:$4 sm:$0xff]   ;;  %v14514_v36 = vld [vmem:[#allocation5 + $0xec8] ss:$16 sps:$4 sm:$0xff]  }
 0x395   : > { %7268 = vmatpush1.bf16.msra.mxu0 %v14430_v37  ;;  %9198 = vmatpush1.bf16.msra.mxu1 %v14433_v38  ;;  %v14522_v37 = vld [vmem:[#allocation5 + $0xee4] ss:$16 sps:$4 sm:$0xff]   ;;  %v14525_v38 = vld [vmem:[#allocation5 + $0xeec] ss:$16 sps:$4 sm:$0xff]  }
 0x396   : > { %7269 = vmatprep.subr.bf16.mxu0 %v14441_v39  ;;  %9199 = vmatprep.subr.bf16.mxu1 %v14444_v40  ;;  %v14520_v39 = vld [vmem:[#allocation5 + $0xee0] ss:$16 sps:$4 sm:$0xff]   ;;  %v14523_v40 = vld [vmem:[#allocation5 + $0xee8] ss:$16 sps:$4 sm:$0xff]  }
 0x397   : > { %7151 = vmatmul.mubr.bf16.gmra.mrb[28].mxu0 %v14375_v41  ;;  %9081 = vmatmul.mubr.bf16.gmra.mrb[28].mxu1 %v14375_v41  ;;  %v14531_v41 = vld [vmem:[#allocation5 + $0xf04] ss:$16 sps:$4 sm:$0xff]  }
 0x398   : > { %7160 = vmatprep.mubr.bf16.mxu0 %v14382_v42  ;;  %9090 = vmatprep.mubr.bf16.mxu1 %v14382_v42  ;;  %v14534_v42 = vld [vmem:[#allocation5 + $0xf0c] ss:$16 sps:$4 sm:$0xff]  }
 0x399   : > { %7270 = vmatpush1.bf16.msra.mxu0 %v14439_v43  ;;  %9200 = vmatpush1.bf16.msra.mxu1 %v14442_v44  ;;  %v14492_v43 = vld [vmem:[%s15448_s8 + $0x2b0] ss:$80 sps:$4 sm:$0xff]   ;;  %v14499_v44 = vld [vmem:[%s15448_s8 + $0x354] ss:$80 sps:$4 sm:$0xff]  }
 0x39a   : > { %7271 = vmatprep.subr.bf16.mxu0 %v14450_v45  ;;  %9201 = vmatprep.subr.bf16.mxu1 %v14453_v46  ;;  %v14529_v45 = vld [vmem:[#allocation5 + $0xf00] ss:$16 sps:$4 sm:$0xff]   ;;  %v14532_v46 = vld [vmem:[#allocation5 + $0xf08] ss:$16 sps:$4 sm:$0xff]  }
 0x39d   : > { %7272 = vmatpush1.bf16.msra.mxu0 %v14448_v47  ;;  %9202 = vmatpush1.bf16.msra.mxu1 %v14451_v48  ;;  %v14540_v47 = vld [vmem:[#allocation5 + $0xf24] ss:$16 sps:$4 sm:$0xff]   ;;  %v14543_v48 = vld [vmem:[#allocation5 + $0xf2c] ss:$16 sps:$4 sm:$0xff]  }
 0x39e   : > { %7434 = vmatprep.subr.bf16.mxu0 %v14459_v49  ;;  %9364 = vmatprep.subr.bf16.mxu1 %v14462_v50  ;;  %v14538_v49 = vld [vmem:[#allocation5 + $0xf20] ss:$16 sps:$4 sm:$0xff]   ;;  %v14541_v50 = vld [vmem:[#allocation5 + $0xf28] ss:$16 sps:$4 sm:$0xff]  }
 0x39f   : > { %7161 = vmatmul.mubr.bf16.gmra.mrb[32].mxu0 %v14384_v51  ;;  %9091 = vmatmul.mubr.bf16.gmra.mrb[32].mxu1 %v14384_v51  ;;  %v14549_v51 = vld [vmem:[#allocation5 + $0xf44] ss:$16 sps:$4 sm:$0xff]  }
 0x3a0   : > { %7170 = vmatprep.mubr.bf16.mxu0 %v14391_v52  ;;  %9100 = vmatprep.mubr.bf16.mxu1 %v14391_v52  ;;  %v14552_v52 = vld [vmem:[#allocation5 + $0xf4c] ss:$16 sps:$4 sm:$0xff]  }
 0x3a7   : > { %7171 = vmatmul.mubr.bf16.gmra.mrb[36].mxu0 %v14393_v53  ;;  %9101 = vmatmul.mubr.bf16.gmra.mrb[36].mxu1 %v14393_v53  ;;  %v14501_v53 = vld [vmem:[%s15448_s8 + $0x350] ss:$80 sps:$4 sm:$0xff]  }
 0x3a8   : > { %7180 = vmatprep.mubr.bf16.mxu0 %v14400_v54  ;;  %9110 = vmatprep.mubr.bf16.mxu1 %v14400_v54  ;;  %v14508_v54 = vld [vmem:[%s15448_s8 + $0x3f4] ss:$80 sps:$4 sm:$0xff]  }
 0x3af   : > { %7181 = vmatmul.mubr.bf16.gmra.mrb[40].mxu0 %v14402_v55  ;;  %9111 = vmatmul.mubr.bf16.gmra.mrb[40].mxu1 %v14402_v55  ;;  %v14547_v55 = vld [vmem:[#allocation5 + $0xf40] ss:$16 sps:$4 sm:$0xff]  }
 0x3b0   : > { %7190 = vmatprep.mubr.bf16.mxu0 %v14409_v56  ;;  %9120 = vmatprep.mubr.bf16.mxu1 %v14409_v56  ;;  %v14550_v56 = vld [vmem:[#allocation5 + $0xf48] ss:$16 sps:$4 sm:$0xff]  }
 0x3b7   : > { %7191 = vmatmul.mubr.bf16.gmra.mrb[44].mxu0 %v14411_v57  ;;  %9121 = vmatmul.mubr.bf16.gmra.mrb[44].mxu1 %v14411_v57  ;;  %v14558_v57 = vld [vmem:[#allocation5 + $0xf64] ss:$16 sps:$4 sm:$0xff]  }
 0x3b8   : > { %7200 = vmatprep.mubr.bf16.mxu0 %v14418_v58  ;;  %9130 = vmatprep.mubr.bf16.mxu1 %v14418_v58  ;;  %v14561_v58 = vld [vmem:[#allocation5 + $0xf6c] ss:$16 sps:$4 sm:$0xff]  }
 0x3bf   : > { %7201 = vmatmul.mubr.bf16.gmra.mrb[48].mxu0 %v14420_v59  ;;  %9131 = vmatmul.mubr.bf16.gmra.mrb[48].mxu1 %v14420_v59  ;;  %v14556_v59 = vld [vmem:[#allocation5 + $0xf60] ss:$16 sps:$4 sm:$0xff]  }
 0x3c0   : > { %7210 = vmatprep.mubr.bf16.mxu0 %v14427_v60  ;;  %9140 = vmatprep.mubr.bf16.mxu1 %v14427_v60  ;;  %v14559_v60 = vld [vmem:[#allocation5 + $0xf68] ss:$16 sps:$4 sm:$0xff]  }
 0x3c7   : > { %7211 = vmatmul.mubr.bf16.gmra.mrb[52].mxu0 %v14429_v61  ;;  %9141 = vmatmul.mubr.bf16.gmra.mrb[52].mxu1 %v14429_v61  ;;  %v14567_v61 = vld [vmem:[#allocation5 + $0xf84] ss:$16 sps:$4 sm:$0xff]  }
 0x3c8   : > { %7220 = vmatprep.mubr.bf16.mxu0 %v14436_v62  ;;  %9150 = vmatprep.mubr.bf16.mxu1 %v14436_v62  ;;  %v14570_v62 = vld [vmem:[#allocation5 + $0xf8c] ss:$16 sps:$4 sm:$0xff]  }
 0x3cf   : > { %7221 = vmatmul.mubr.bf16.gmra.mrb[56].mxu0 %v14438_v63  ;;  %9151 = vmatmul.mubr.bf16.gmra.mrb[56].mxu1 %v14438_v63  ;;  %v14510_v63 = vld [vmem:[%s15448_s8 + $0x3f0] ss:$80 sps:$4 sm:$0xff]  }
 0x3d0   : > { %7230 = vmatprep.mubr.bf16.mxu0 %v14445_v0  ;;  %9160 = vmatprep.mubr.bf16.mxu1 %v14445_v0  ;;  %v14517_v0 = vld [vmem:[%s15448_s8 + $0x494] ss:$80 sps:$4 sm:$0xff]  }
 0x3d7   : > { %7231 = vmatmul.mubr.bf16.gmra.mrb[60].mxu0 %v14447_v1  ;;  %9161 = vmatmul.mubr.bf16.gmra.mrb[60].mxu1 %v14447_v1  ;;  %v14565_v1 = vld [vmem:[#allocation5 + $0xf80] ss:$16 sps:$4 sm:$0xff]  }
 0x3d8   : > { %7273 = vmatprep.mubr.bf16.mxu0 %v14456_v2  ;;  %9203 = vmatprep.mubr.bf16.mxu1 %v14456_v2  ;;  %v14568_v2 = vld [vmem:[#allocation5 + $0xf88] ss:$16 sps:$4 sm:$0xff]  }
 0x3df   : > { %7274 = vmatmul.mubr.bf16.vlgmr.msra.gmra.mrb[0].mxu0 %v14454_v3  ;;  %9204 = vmatmul.mubr.bf16.vlgmr.msra.gmra.mrb[0].mxu1 %v14454_v3  ;;  %v14576_v3 = vld [vmem:[#allocation5 + $0xfa4] ss:$16 sps:$4 sm:$0xff]  }
 0x3e0   : > { %7435 = vmatpush1.bf16.msra.mxu0 %v14457_v4  ;;  %9365 = vmatpush1.bf16.msra.mxu1 %v14460_v5  ;;  %v14579_v4 = vld [vmem:[#allocation5 + $0xfac] ss:$16 sps:$4 sm:$0xff]   ;;  %v14574_v5 = vld [vmem:[#allocation5 + $0xfa0] ss:$16 sps:$4 sm:$0xff]  }
 0x3e1   : > { %7283 = vmatprep.mubr.bf16.mxu0 %v14463_v6  ;;  %9213 = vmatprep.mubr.bf16.mxu1 %v14463_v6  ;;  %v14577_v6 = vld [vmem:[#allocation5 + $0xfa8] ss:$16 sps:$4 sm:$0xff]  }
 0x3e2   : > { %7436 = vmatprep.subr.bf16.mxu0 %v14468_v7  ;;  %9366 = vmatprep.subr.bf16.mxu1 %v14471_v8  ;;  %v14585_v7 = vld [vmem:[#allocation5 + $0xfc4] ss:$16 sps:$4 sm:$0xff]   ;;  %v14588_v8 = vld [vmem:[#allocation5 + $0xfcc] ss:$16 sps:$4 sm:$0xff]  }
 0x3e4   : > { %7437 = vmatpush1.bf16.msra.mxu0 %v14466_v9  ;;  %9367 = vmatpush1.bf16.msra.mxu1 %v14469_v10  ;;  %v14519_v9 = vld [vmem:[%s15448_s8 + $0x490] ss:$80 sps:$4 sm:$0xff]   ;;  %v14526_v10 = vld [vmem:[%s15448_s8 + $0x534] ss:$80 sps:$4 sm:$0xff]  }
 0x3e5   : > { %7438 = vmatprep.subr.bf16.mxu0 %v14477_v11  ;;  %9368 = vmatprep.subr.bf16.mxu1 %v14480_v12  ;;  %v14583_v11 = vld [vmem:[#allocation5 + $0xfc0] ss:$16 sps:$4 sm:$0xff]   ;;  %v14586_v12 = vld [vmem:[#allocation5 + $0xfc8] ss:$16 sps:$4 sm:$0xff]  }
 0x3e7   : > { %7284 = vmatmul.mubr.bf16.gmra.mrb[4].mxu0 %v14465_v13  ;;  %9214 = vmatmul.mubr.bf16.gmra.mrb[4].mxu1 %v14465_v13  ;;  %v14594_v13 = vld [vmem:[#allocation5 + $0xfe4] ss:$16 sps:$4 sm:$0xff]  }
 0x3e8   : > { %7293 = vmatprep.mubr.bf16.mxu0 %v14472_v14  ;;  %9223 = vmatprep.mubr.bf16.mxu1 %v14472_v14  ;;  %v14597_v14 = vld [vmem:[#allocation5 + $0xfec] ss:$16 sps:$4 sm:$0xff]  }
 0x3e9   : > { %7439 = vmatpush1.bf16.msra.mxu0 %v14475_v15  ;;  %9369 = vmatpush1.bf16.msra.mxu1 %v14478_v16  ;;  %v14592_v15 = vld [vmem:[#allocation5 + $0xfe0] ss:$16 sps:$4 sm:$0xff]   ;;  %v14595_v16 = vld [vmem:[#allocation5 + $0xfe8] ss:$16 sps:$4 sm:$0xff]  }
 0x3ea   : > { %7440 = vmatprep.subr.bf16.mxu0 %v14486_v17  ;;  %9370 = vmatprep.subr.bf16.mxu1 %v14489_v18  ;;  %v14603_v17 = vld [vmem:[#allocation5 + $0x1004] ss:$16 sps:$4 sm:$0xff]   ;;  %v14606_v18 = vld [vmem:[#allocation5 + $0x100c] ss:$16 sps:$4 sm:$0xff]  }
 0x3ed   : > { %7441 = vmatpush1.bf16.msra.mxu0 %v14484_v19  ;;  %9371 = vmatpush1.bf16.msra.mxu1 %v14487_v20  ;;  %v14528_v19 = vld [vmem:[%s15448_s8 + $0x530] ss:$80 sps:$4 sm:$0xff]   ;;  %v14535_v20 = vld [vmem:[%s15448_s8 + $0x5d4] ss:$80 sps:$4 sm:$0xff]  }
 0x3ee   : > { %7442 = vmatprep.subr.bf16.mxu0 %v14495_v21  ;;  %9372 = vmatprep.subr.bf16.mxu1 %v14498_v22  ;;  %v14537_v21 = vld [vmem:[%s15448_s8 + $0x5d0] ss:$80 sps:$4 sm:$0xff]   ;;  %v14544_v22 = vld [vmem:[%s15448_s8 + $0x674] ss:$80 sps:$4 sm:$0xff]  }
 0x3ef   : > { %7294 = vmatmul.mubr.bf16.gmra.mrb[8].mxu0 %v14474_v23  ;;  %9224 = vmatmul.mubr.bf16.gmra.mrb[8].mxu1 %v14474_v23  ;;  %v14546_v23 = vld [vmem:[%s15448_s8 + $0x670] ss:$80 sps:$4 sm:$0xff]  }
 0x3f0   : > { %7303 = vmatprep.mubr.bf16.mxu0 %v14481_v24  ;;  %9233 = vmatprep.mubr.bf16.mxu1 %v14481_v24  ;;  %v14553_v24 = vld [vmem:[%s15448_s8 + $0x714] ss:$80 sps:$4 sm:$0xff]  }
 0x3f1   : > { %7443 = vmatpush1.bf16.msra.mxu0 %v14493_v25  ;;  %9373 = vmatpush1.bf16.msra.mxu1 %v14496_v26  ;;  %v14555_v25 = vld [vmem:[%s15448_s8 + $0x710] ss:$80 sps:$4 sm:$0xff]   ;;  %v14562_v26 = vld [vmem:[%s15448_s8 + $0x7b4] ss:$80 sps:$4 sm:$0xff]  }
 0x3f2   : > { %7444 = vmatprep.subr.bf16.mxu0 %v14504_v27  ;;  %9374 = vmatprep.subr.bf16.mxu1 %v14507_v28  ;;  %v14564_v27 = vld [vmem:[%s15448_s8 + $0x7b0] ss:$80 sps:$4 sm:$0xff]   ;;  %v14571_v28 = vld [vmem:[%s15448_s8 + $0x854] ss:$80 sps:$4 sm:$0xff]  }
 0x3f5   : > { %7445 = vmatpush1.bf16.msra.mxu0 %v14502_v29  ;;  %9375 = vmatpush1.bf16.msra.mxu1 %v14505_v30  ;;  %v14573_v29 = vld [vmem:[%s15448_s8 + $0x850] ss:$80 sps:$4 sm:$0xff]   ;;  %v14580_v30 = vld [vmem:[%s15448_s8 + $0x8f4] ss:$80 sps:$4 sm:$0xff]  }
 0x3f6   : > { %7446 = vmatprep.subr.bf16.mxu0 %v14513_v31  ;;  %9376 = vmatprep.subr.bf16.mxu1 %v14516_v32  ;;  %v14582_v31 = vld [vmem:[%s15448_s8 + $0x8f0] ss:$80 sps:$4 sm:$0xff]   ;;  %v14589_v32 = vld [vmem:[%s15448_s8 + $0x994] ss:$80 sps:$4 sm:$0xff]  }
 0x3f7   : > { %7304 = vmatmul.mubr.bf16.gmra.mrb[12].mxu0 %v14483_v33  ;;  %9234 = vmatmul.mubr.bf16.gmra.mrb[12].mxu1 %v14483_v33  ;;  %v14591_v33 = vld [vmem:[%s15448_s8 + $0x990] ss:$80 sps:$4 sm:$0xff]  }
 0x3f8   : > { %7313 = vmatprep.mubr.bf16.mxu0 %v14490_v34  ;;  %9243 = vmatprep.mubr.bf16.mxu1 %v14490_v34  ;;  %v14600_v34 = vld [vmem:[%s15448_s8 + $0x3c] ss:$80 sps:$4 sm:$0xff]  }
 0x3f9   : > { %7447 = vmatpush1.bf16.msra.mxu0 %v14511_v35  ;;  %9377 = vmatpush1.bf16.msra.mxu1 %v14514_v36  ;;  %v14598_v35 = vld [vmem:[%s15448_s8 + $0x38] ss:$80 sps:$4 sm:$0xff]   ;;  %v14601_v36 = vld [vmem:[#allocation5 + $0x1000] ss:$16 sps:$4 sm:$0xff]  }
 0x3fa   : > { %7448 = vmatprep.subr.bf16.mxu0 %v14522_v37  ;;  %9378 = vmatprep.subr.bf16.mxu1 %v14525_v38  ;;  %v14604_v37 = vld [vmem:[#allocation5 + $0x1008] ss:$16 sps:$4 sm:$0xff]   ;;  %v14607_v38 = vld [vmem:[%s15448_s8 + $0xdc] ss:$80 sps:$4 sm:$0xff]  }
 0x3fd   : > { %7449 = vmatpush1.bf16.msra.mxu0 %v14520_v39  ;;  %9379 = vmatpush1.bf16.msra.mxu1 %v14523_v40  ;;  %v14612_v39 = vld [vmem:[#allocation5 + $0x1024] ss:$16 sps:$4 sm:$0xff]   ;;  %v14615_v40 = vld [vmem:[#allocation5 + $0x102c] ss:$16 sps:$4 sm:$0xff]  }
 0x3fe   : > { %7450 = vmatprep.subr.bf16.mxu0 %v14531_v41  ;;  %9380 = vmatprep.subr.bf16.mxu1 %v14534_v42  ;;  %v14610_v41 = vld [vmem:[#allocation5 + $0x1020] ss:$16 sps:$4 sm:$0xff]   ;;  %v14613_v42 = vld [vmem:[#allocation5 + $0x1028] ss:$16 sps:$4 sm:$0xff]  }
 0x3ff   : > { %7314 = vmatmul.mubr.bf16.gmra.mrb[16].mxu0 %v14492_v43  ;;  %9244 = vmatmul.mubr.bf16.gmra.mrb[16].mxu1 %v14492_v43  ;;  %v14621_v43 = vld [vmem:[#allocation5 + $0x1044] ss:$16 sps:$4 sm:$0xff]  }
 0x400   : > { %7323 = vmatprep.mubr.bf16.mxu0 %v14499_v44  ;;  %9253 = vmatprep.mubr.bf16.mxu1 %v14499_v44  ;;  %v14624_v44 = vld [vmem:[#allocation5 + $0x104c] ss:$16 sps:$4 sm:$0xff]  }
 0x401   : > { %7451 = vmatpush1.bf16.msra.mxu0 %v14529_v45  ;;  %9381 = vmatpush1.bf16.msra.mxu1 %v14532_v46  ;;  %v14609_v45 = vld [vmem:[%s15448_s8 + $0xd8] ss:$80 sps:$4 sm:$0xff]   ;;  %v14616_v46 = vld [vmem:[%s15448_s8 + $0x17c] ss:$80 sps:$4 sm:$0xff]  }
 0x402   : > { %7452 = vmatprep.subr.bf16.mxu0 %v14540_v47  ;;  %9382 = vmatprep.subr.bf16.mxu1 %v14543_v48  ;;  %v14619_v47 = vld [vmem:[#allocation5 + $0x1040] ss:$16 sps:$4 sm:$0xff]   ;;  %v14622_v48 = vld [vmem:[#allocation5 + $0x1048] ss:$16 sps:$4 sm:$0xff]  }
 0x405   : > { %7453 = vmatpush1.bf16.msra.mxu0 %v14538_v49  ;;  %9383 = vmatpush1.bf16.msra.mxu1 %v14541_v50  ;;  %v14630_v49 = vld [vmem:[#allocation5 + $0x1064] ss:$16 sps:$4 sm:$0xff]   ;;  %v14633_v50 = vld [vmem:[#allocation5 + $0x106c] ss:$16 sps:$4 sm:$0xff]  }
 0x406   : > { %7454 = vmatprep.subr.bf16.mxu0 %v14549_v51  ;;  %9384 = vmatprep.subr.bf16.mxu1 %v14552_v52  ;;  %v14628_v51 = vld [vmem:[#allocation5 + $0x1060] ss:$16 sps:$4 sm:$0xff]   ;;  %v14631_v52 = vld [vmem:[#allocation5 + $0x1068] ss:$16 sps:$4 sm:$0xff]  }
 0x407   : > { %7324 = vmatmul.mubr.bf16.gmra.mrb[20].mxu0 %v14501_v53  ;;  %9254 = vmatmul.mubr.bf16.gmra.mrb[20].mxu1 %v14501_v53  ;;  %v14639_v53 = vld [vmem:[#allocation5 + $0x1084] ss:$16 sps:$4 sm:$0xff]  }
 0x408   : > { %7333 = vmatprep.mubr.bf16.mxu0 %v14508_v54  ;;  %9263 = vmatprep.mubr.bf16.mxu1 %v14508_v54  ;;  %v14642_v54 = vld [vmem:[#allocation5 + $0x108c] ss:$16 sps:$4 sm:$0xff]  }
 0x409   : > { %7455 = vmatpush1.bf16.msra.mxu0 %v14547_v55  ;;  %9385 = vmatpush1.bf16.msra.mxu1 %v14550_v56  ;;  %v14618_v55 = vld [vmem:[%s15448_s8 + $0x178] ss:$80 sps:$4 sm:$0xff]   ;;  %v14625_v56 = vld [vmem:[%s15448_s8 + $0x21c] ss:$80 sps:$4 sm:$0xff]  }
 0x40a   : > { %7456 = vmatprep.subr.bf16.mxu0 %v14558_v57  ;;  %9386 = vmatprep.subr.bf16.mxu1 %v14561_v58  ;;  %v14637_v57 = vld [vmem:[#allocation5 + $0x1080] ss:$16 sps:$4 sm:$0xff]   ;;  %v14640_v58 = vld [vmem:[#allocation5 + $0x1088] ss:$16 sps:$4 sm:$0xff]  }
 0x40d   : > { %7457 = vmatpush1.bf16.msra.mxu0 %v14556_v59  ;;  %9387 = vmatpush1.bf16.msra.mxu1 %v14559_v60  ;;  %v14648_v59 = vld [vmem:[#allocation5 + $0x10a4] ss:$16 sps:$4 sm:$0xff]   ;;  %v14651_v60 = vld [vmem:[#allocation5 + $0x10ac] ss:$16 sps:$4 sm:$0xff]  }
 0x40e   : > { %7458 = vmatprep.subr.bf16.mxu0 %v14567_v61  ;;  %9388 = vmatprep.subr.bf16.mxu1 %v14570_v62  ;;  %v14646_v61 = vld [vmem:[#allocation5 + $0x10a0] ss:$16 sps:$4 sm:$0xff]   ;;  %v14649_v62 = vld [vmem:[#allocation5 + $0x10a8] ss:$16 sps:$4 sm:$0xff]  }
 0x40f   : > { %7334 = vmatmul.mubr.bf16.gmra.mrb[24].mxu0 %v14510_v63  ;;  %9264 = vmatmul.mubr.bf16.gmra.mrb[24].mxu1 %v14510_v63  ;;  %v14657_v63 = vld [vmem:[#allocation5 + $0x10c4] ss:$16 sps:$4 sm:$0xff]  }
 0x410   : > { %7343 = vmatprep.mubr.bf16.mxu0 %v14517_v0  ;;  %9273 = vmatprep.mubr.bf16.mxu1 %v14517_v0  ;;  %v14660_v0 = vld [vmem:[#allocation5 + $0x10cc] ss:$16 sps:$4 sm:$0xff]  }
 0x411   : > { %7459 = vmatpush1.bf16.msra.mxu0 %v14565_v1  ;;  %9389 = vmatpush1.bf16.msra.mxu1 %v14568_v2  ;;  %v14627_v1 = vld [vmem:[%s15448_s8 + $0x218] ss:$80 sps:$4 sm:$0xff]   ;;  %v14634_v2 = vld [vmem:[%s15448_s8 + $0x2bc] ss:$80 sps:$4 sm:$0xff]  }
 0x412   : > { %7460 = vmatprep.subr.bf16.mxu0 %v14576_v3  ;;  %9390 = vmatprep.subr.bf16.mxu1 %v14579_v4  ;;  %v14655_v3 = vld [vmem:[#allocation5 + $0x10c0] ss:$16 sps:$4 sm:$0xff]   ;;  %v14658_v4 = vld [vmem:[#allocation5 + $0x10c8] ss:$16 sps:$4 sm:$0xff]  }
 0x415   : > { %7461 = vmatpush1.bf16.msra.mxu0 %v14574_v5  ;;  %9391 = vmatpush1.bf16.msra.mxu1 %v14577_v6  ;;  %v14666_v5 = vld [vmem:[#allocation5 + $0x10e4] ss:$16 sps:$4 sm:$0xff]   ;;  %v14669_v6 = vld [vmem:[#allocation5 + $0x10ec] ss:$16 sps:$4 sm:$0xff]  }
 0x416   : > { %7462 = vmatprep.subr.bf16.mxu0 %v14585_v7  ;;  %9392 = vmatprep.subr.bf16.mxu1 %v14588_v8  ;;  %v14664_v7 = vld [vmem:[#allocation5 + $0x10e0] ss:$16 sps:$4 sm:$0xff]   ;;  %v14667_v8 = vld [vmem:[#allocation5 + $0x10e8] ss:$16 sps:$4 sm:$0xff]  }
 0x417   : > { %7344 = vmatmul.mubr.bf16.gmra.mrb[28].mxu0 %v14519_v9  ;;  %9274 = vmatmul.mubr.bf16.gmra.mrb[28].mxu1 %v14519_v9  ;;  %v14675_v9 = vld [vmem:[#allocation5 + $0x1104] ss:$16 sps:$4 sm:$0xff]  }
 0x418   : > { %7353 = vmatprep.mubr.bf16.mxu0 %v14526_v10  ;;  %9283 = vmatprep.mubr.bf16.mxu1 %v14526_v10  ;;  %v14678_v10 = vld [vmem:[#allocation5 + $0x110c] ss:$16 sps:$4 sm:$0xff]  }
 0x419   : > { %7463 = vmatpush1.bf16.msra.mxu0 %v14583_v11  ;;  %9393 = vmatpush1.bf16.msra.mxu1 %v14586_v12  ;;  %v14636_v11 = vld [vmem:[%s15448_s8 + $0x2b8] ss:$80 sps:$4 sm:$0xff]   ;;  %v14643_v12 = vld [vmem:[%s15448_s8 + $0x35c] ss:$80 sps:$4 sm:$0xff]  }
 0x41a   : > { %7464 = vmatprep.subr.bf16.mxu0 %v14594_v13  ;;  %9394 = vmatprep.subr.bf16.mxu1 %v14597_v14  ;;  %v14673_v13 = vld [vmem:[#allocation5 + $0x1100] ss:$16 sps:$4 sm:$0xff]   ;;  %v14676_v14 = vld [vmem:[#allocation5 + $0x1108] ss:$16 sps:$4 sm:$0xff]  }
 0x41d   : > { %7465 = vmatpush1.bf16.msra.mxu0 %v14592_v15  ;;  %9395 = vmatpush1.bf16.msra.mxu1 %v14595_v16  ;;  %v14684_v15 = vld [vmem:[#allocation5 + $0x1124] ss:$16 sps:$4 sm:$0xff]   ;;  %v14687_v16 = vld [vmem:[#allocation5 + $0x112c] ss:$16 sps:$4 sm:$0xff]  }
 0x41e   : > { %7627 = vmatprep.subr.bf16.mxu0 %v14603_v17  ;;  %9557 = vmatprep.subr.bf16.mxu1 %v14606_v18  ;;  %v14682_v17 = vld [vmem:[#allocation5 + $0x1120] ss:$16 sps:$4 sm:$0xff]   ;;  %v14685_v18 = vld [vmem:[#allocation5 + $0x1128] ss:$16 sps:$4 sm:$0xff]  }
 0x41f   : > { %7354 = vmatmul.mubr.bf16.gmra.mrb[32].mxu0 %v14528_v19  ;;  %9284 = vmatmul.mubr.bf16.gmra.mrb[32].mxu1 %v14528_v19  ;;  %v14693_v19 = vld [vmem:[#allocation5 + $0x1144] ss:$16 sps:$4 sm:$0xff]  }
 0x420   : > { %7363 = vmatprep.mubr.bf16.mxu0 %v14535_v20  ;;  %9293 = vmatprep.mubr.bf16.mxu1 %v14535_v20  ;;  %v14696_v20 = vld [vmem:[#allocation5 + $0x114c] ss:$16 sps:$4 sm:$0xff]  }
 0x427   : > { %7364 = vmatmul.mubr.bf16.gmra.mrb[36].mxu0 %v14537_v21  ;;  %9294 = vmatmul.mubr.bf16.gmra.mrb[36].mxu1 %v14537_v21  ;;  %v14645_v21 = vld [vmem:[%s15448_s8 + $0x358] ss:$80 sps:$4 sm:$0xff]  }
 0x428   : > { %7373 = vmatprep.mubr.bf16.mxu0 %v14544_v22  ;;  %9303 = vmatprep.mubr.bf16.mxu1 %v14544_v22  ;;  %v14652_v22 = vld [vmem:[%s15448_s8 + $0x3fc] ss:$80 sps:$4 sm:$0xff]  }
 0x42f   : > { %7374 = vmatmul.mubr.bf16.gmra.mrb[40].mxu0 %v14546_v23  ;;  %9304 = vmatmul.mubr.bf16.gmra.mrb[40].mxu1 %v14546_v23  ;;  %v14691_v23 = vld [vmem:[#allocation5 + $0x1140] ss:$16 sps:$4 sm:$0xff]  }
 0x430   : > { %7383 = vmatprep.mubr.bf16.mxu0 %v14553_v24  ;;  %9313 = vmatprep.mubr.bf16.mxu1 %v14553_v24  ;;  %v14694_v24 = vld [vmem:[#allocation5 + $0x1148] ss:$16 sps:$4 sm:$0xff]  }
 0x437   : > { %7384 = vmatmul.mubr.bf16.gmra.mrb[44].mxu0 %v14555_v25  ;;  %9314 = vmatmul.mubr.bf16.gmra.mrb[44].mxu1 %v14555_v25  ;;  %v14702_v25 = vld [vmem:[#allocation5 + $0x1164] ss:$16 sps:$4 sm:$0xff]  }
 0x438   : > { %7393 = vmatprep.mubr.bf16.mxu0 %v14562_v26  ;;  %9323 = vmatprep.mubr.bf16.mxu1 %v14562_v26  ;;  %v14705_v26 = vld [vmem:[#allocation5 + $0x116c] ss:$16 sps:$4 sm:$0xff]  }
 0x43f   : > { %7394 = vmatmul.mubr.bf16.gmra.mrb[48].mxu0 %v14564_v27  ;;  %9324 = vmatmul.mubr.bf16.gmra.mrb[48].mxu1 %v14564_v27  ;;  %v14700_v27 = vld [vmem:[#allocation5 + $0x1160] ss:$16 sps:$4 sm:$0xff]  }
 0x440   : > { %7403 = vmatprep.mubr.bf16.mxu0 %v14571_v28  ;;  %9333 = vmatprep.mubr.bf16.mxu1 %v14571_v28  ;;  %v14703_v28 = vld [vmem:[#allocation5 + $0x1168] ss:$16 sps:$4 sm:$0xff]  }
 0x447   : > { %7404 = vmatmul.mubr.bf16.gmra.mrb[52].mxu0 %v14573_v29  ;;  %9334 = vmatmul.mubr.bf16.gmra.mrb[52].mxu1 %v14573_v29  ;;  %v14711_v29 = vld [vmem:[#allocation5 + $0x1184] ss:$16 sps:$4 sm:$0xff]  }
 0x448   : > { %7413 = vmatprep.mubr.bf16.mxu0 %v14580_v30  ;;  %9343 = vmatprep.mubr.bf16.mxu1 %v14580_v30  ;;  %v14714_v30 = vld [vmem:[#allocation5 + $0x118c] ss:$16 sps:$4 sm:$0xff]  }
 0x44f   : > { %7414 = vmatmul.mubr.bf16.gmra.mrb[56].mxu0 %v14582_v31  ;;  %9344 = vmatmul.mubr.bf16.gmra.mrb[56].mxu1 %v14582_v31  ;;  %v14654_v31 = vld [vmem:[%s15448_s8 + $0x3f8] ss:$80 sps:$4 sm:$0xff]  }
 0x450   : > { %7423 = vmatprep.mubr.bf16.mxu0 %v14589_v32  ;;  %9353 = vmatprep.mubr.bf16.mxu1 %v14589_v32  ;;  %v14661_v32 = vld [vmem:[%s15448_s8 + $0x49c] ss:$80 sps:$4 sm:$0xff]  }
 0x457   : > { %7424 = vmatmul.mubr.bf16.gmra.mrb[60].mxu0 %v14591_v33  ;;  %9354 = vmatmul.mubr.bf16.gmra.mrb[60].mxu1 %v14591_v33  ;;  %v14709_v33 = vld [vmem:[#allocation5 + $0x1180] ss:$16 sps:$4 sm:$0xff]  }
 0x458   : > { %7466 = vmatprep.mubr.bf16.mxu0 %v14600_v34  ;;  %9396 = vmatprep.mubr.bf16.mxu1 %v14600_v34  ;;  %v14712_v34 = vld [vmem:[#allocation5 + $0x1188] ss:$16 sps:$4 sm:$0xff]  }
 0x45f   : > { %7467 = vmatmul.mubr.bf16.vlgmr.msra.gmra.mrb[0].mxu0 %v14598_v35  ;;  %9397 = vmatmul.mubr.bf16.vlgmr.msra.gmra.mrb[0].mxu1 %v14598_v35  ;;  %v14720_v35 = vld [vmem:[#allocation5 + $0x11a4] ss:$16 sps:$4 sm:$0xff]  }
 0x460   : > { %7628 = vmatpush1.bf16.msra.mxu0 %v14601_v36  ;;  %9558 = vmatpush1.bf16.msra.mxu1 %v14604_v37  ;;  %v14723_v36 = vld [vmem:[#allocation5 + $0x11ac] ss:$16 sps:$4 sm:$0xff]   ;;  %v14718_v37 = vld [vmem:[#allocation5 + $0x11a0] ss:$16 sps:$4 sm:$0xff]  }
 0x461   : > { %7476 = vmatprep.mubr.bf16.mxu0 %v14607_v38  ;;  %9406 = vmatprep.mubr.bf16.mxu1 %v14607_v38  ;;  %v14721_v38 = vld [vmem:[#allocation5 + $0x11a8] ss:$16 sps:$4 sm:$0xff]  }
 0x462   : > { %7629 = vmatprep.subr.bf16.mxu0 %v14612_v39  ;;  %9559 = vmatprep.subr.bf16.mxu1 %v14615_v40  ;;  %v14729_v39 = vld [vmem:[#allocation5 + $0x11c4] ss:$16 sps:$4 sm:$0xff]   ;;  %v14732_v40 = vld [vmem:[#allocation5 + $0x11cc] ss:$16 sps:$4 sm:$0xff]  }
 0x464   : > { %7630 = vmatpush1.bf16.msra.mxu0 %v14610_v41  ;;  %9560 = vmatpush1.bf16.msra.mxu1 %v14613_v42  ;;  %v14663_v41 = vld [vmem:[%s15448_s8 + $0x498] ss:$80 sps:$4 sm:$0xff]   ;;  %v14670_v42 = vld [vmem:[%s15448_s8 + $0x53c] ss:$80 sps:$4 sm:$0xff]  }
 0x465   : > { %7631 = vmatprep.subr.bf16.mxu0 %v14621_v43  ;;  %9561 = vmatprep.subr.bf16.mxu1 %v14624_v44  ;;  %v14727_v43 = vld [vmem:[#allocation5 + $0x11c0] ss:$16 sps:$4 sm:$0xff]   ;;  %v14730_v44 = vld [vmem:[#allocation5 + $0x11c8] ss:$16 sps:$4 sm:$0xff]  }
 0x467   : > { %7477 = vmatmul.mubr.bf16.gmra.mrb[4].mxu0 %v14609_v45  ;;  %9407 = vmatmul.mubr.bf16.gmra.mrb[4].mxu1 %v14609_v45  ;;  %v14738_v45 = vld [vmem:[#allocation5 + $0x11e4] ss:$16 sps:$4 sm:$0xff]  }
 0x468   : > { %7486 = vmatprep.mubr.bf16.mxu0 %v14616_v46  ;;  %9416 = vmatprep.mubr.bf16.mxu1 %v14616_v46  ;;  %v14741_v46 = vld [vmem:[#allocation5 + $0x11ec] ss:$16 sps:$4 sm:$0xff]  }
 0x469   : > { %7632 = vmatpush1.bf16.msra.mxu0 %v14619_v47  ;;  %9562 = vmatpush1.bf16.msra.mxu1 %v14622_v48  ;;  %v14736_v47 = vld [vmem:[#allocation5 + $0x11e0] ss:$16 sps:$4 sm:$0xff]   ;;  %v14739_v48 = vld [vmem:[#allocation5 + $0x11e8] ss:$16 sps:$4 sm:$0xff]  }
 0x46a   : > { %7633 = vmatprep.subr.bf16.mxu0 %v14630_v49  ;;  %9563 = vmatprep.subr.bf16.mxu1 %v14633_v50  ;;  %v14747_v49 = vld [vmem:[#allocation5 + $0x1204] ss:$16 sps:$4 sm:$0xff]   ;;  %v14750_v50 = vld [vmem:[#allocation5 + $0x120c] ss:$16 sps:$4 sm:$0xff]  }
 0x46d   : > { %7634 = vmatpush1.bf16.msra.mxu0 %v14628_v51  ;;  %9564 = vmatpush1.bf16.msra.mxu1 %v14631_v52  ;;  %v14672_v51 = vld [vmem:[%s15448_s8 + $0x538] ss:$80 sps:$4 sm:$0xff]   ;;  %v14679_v52 = vld [vmem:[%s15448_s8 + $0x5dc] ss:$80 sps:$4 sm:$0xff]  }
 0x46e   : > { %7635 = vmatprep.subr.bf16.mxu0 %v14639_v53  ;;  %9565 = vmatprep.subr.bf16.mxu1 %v14642_v54  ;;  %v14681_v53 = vld [vmem:[%s15448_s8 + $0x5d8] ss:$80 sps:$4 sm:$0xff]   ;;  %v14688_v54 = vld [vmem:[%s15448_s8 + $0x67c] ss:$80 sps:$4 sm:$0xff]  }
 0x46f   : > { %7487 = vmatmul.mubr.bf16.gmra.mrb[8].mxu0 %v14618_v55  ;;  %9417 = vmatmul.mubr.bf16.gmra.mrb[8].mxu1 %v14618_v55  ;;  %v14690_v55 = vld [vmem:[%s15448_s8 + $0x678] ss:$80 sps:$4 sm:$0xff]  }
 0x470   : > { %7496 = vmatprep.mubr.bf16.mxu0 %v14625_v56  ;;  %9426 = vmatprep.mubr.bf16.mxu1 %v14625_v56  ;;  %v14697_v56 = vld [vmem:[%s15448_s8 + $0x71c] ss:$80 sps:$4 sm:$0xff]  }
 0x471   : > { %7636 = vmatpush1.bf16.msra.mxu0 %v14637_v57  ;;  %9566 = vmatpush1.bf16.msra.mxu1 %v14640_v58  ;;  %v14699_v57 = vld [vmem:[%s15448_s8 + $0x718] ss:$80 sps:$4 sm:$0xff]   ;;  %v14706_v58 = vld [vmem:[%s15448_s8 + $0x7bc] ss:$80 sps:$4 sm:$0xff]  }
 0x472   : > { %7637 = vmatprep.subr.bf16.mxu0 %v14648_v59  ;;  %9567 = vmatprep.subr.bf16.mxu1 %v14651_v60  ;;  %v14708_v59 = vld [vmem:[%s15448_s8 + $0x7b8] ss:$80 sps:$4 sm:$0xff]   ;;  %v14715_v60 = vld [vmem:[%s15448_s8 + $0x85c] ss:$80 sps:$4 sm:$0xff]  }
 0x475   : > { %7638 = vmatpush1.bf16.msra.mxu0 %v14646_v61  ;;  %9568 = vmatpush1.bf16.msra.mxu1 %v14649_v62  ;;  %v14717_v61 = vld [vmem:[%s15448_s8 + $0x858] ss:$80 sps:$4 sm:$0xff]   ;;  %v14724_v62 = vld [vmem:[%s15448_s8 + $0x8fc] ss:$80 sps:$4 sm:$0xff]  }
 0x476   : > { %7639 = vmatprep.subr.bf16.mxu0 %v14657_v63  ;;  %9569 = vmatprep.subr.bf16.mxu1 %v14660_v0  ;;  %v14726_v63 = vld [vmem:[%s15448_s8 + $0x8f8] ss:$80 sps:$4 sm:$0xff]   ;;  %v14733_v0 = vld [vmem:[%s15448_s8 + $0x99c] ss:$80 sps:$4 sm:$0xff]  }
 0x477   : > { %7497 = vmatmul.mubr.bf16.gmra.mrb[12].mxu0 %v14627_v1  ;;  %9427 = vmatmul.mubr.bf16.gmra.mrb[12].mxu1 %v14627_v1  ;;  %v14735_v1 = vld [vmem:[%s15448_s8 + $0x998] ss:$80 sps:$4 sm:$0xff]  }
 0x478   : > { %7506 = vmatprep.mubr.bf16.mxu0 %v14634_v2  ;;  %9436 = vmatprep.mubr.bf16.mxu1 %v14634_v2  ;;  %v14744_v2 = vld [vmem:[%s15448_s8 + $0x44] ss:$80 sps:$4 sm:$0xff]  }
 0x479   : > { %7640 = vmatpush1.bf16.msra.mxu0 %v14655_v3  ;;  %9570 = vmatpush1.bf16.msra.mxu1 %v14658_v4  ;;  %v14742_v3 = vld [vmem:[%s15448_s8 + $0x40] ss:$80 sps:$4 sm:$0xff]  }
 0x47a   : > { %7641 = vmatprep.subr.bf16.mxu0 %v14666_v5  ;;  %9571 = vmatprep.subr.bf16.mxu1 %v14669_v6  ;;  %v14745_v4 = vld [vmem:[#allocation5 + $0x1200] ss:$16 sps:$4 sm:$0xff]   ;;  %v14748_v5 = vld [vmem:[#allocation5 + $0x1208] ss:$16 sps:$4 sm:$0xff]   ;;  %v14751_v6 = vld [vmem:[%s15448_s8 + $0xe4] ss:$80 sps:$4 sm:$0xff]  }
 0x47d   : > { %7642 = vmatpush1.bf16.msra.mxu0 %v14664_v7  ;;  %9572 = vmatpush1.bf16.msra.mxu1 %v14667_v8  ;;  %v14756_v7 = vld [vmem:[#allocation5 + $0x1224] ss:$16 sps:$4 sm:$0xff]   ;;  %v14759_v8 = vld [vmem:[#allocation5 + $0x122c] ss:$16 sps:$4 sm:$0xff]  }
 0x47e   : > { %7643 = vmatprep.subr.bf16.mxu0 %v14675_v9  ;;  %9573 = vmatprep.subr.bf16.mxu1 %v14678_v10  ;;  %v14754_v9 = vld [vmem:[#allocation5 + $0x1220] ss:$16 sps:$4 sm:$0xff]   ;;  %v14757_v10 = vld [vmem:[#allocation5 + $0x1228] ss:$16 sps:$4 sm:$0xff]  }
 0x47f   : > { %7507 = vmatmul.mubr.bf16.gmra.mrb[16].mxu0 %v14636_v11  ;;  %9437 = vmatmul.mubr.bf16.gmra.mrb[16].mxu1 %v14636_v11  ;;  %v14765_v11 = vld [vmem:[#allocation5 + $0x1244] ss:$16 sps:$4 sm:$0xff]  }
 0x480   : > { %7516 = vmatprep.mubr.bf16.mxu0 %v14643_v12  ;;  %9446 = vmatprep.mubr.bf16.mxu1 %v14643_v12  ;;  %v14768_v12 = vld [vmem:[#allocation5 + $0x124c] ss:$16 sps:$4 sm:$0xff]  }
 0x481   : > { %7644 = vmatpush1.bf16.msra.mxu0 %v14673_v13  ;;  %9574 = vmatpush1.bf16.msra.mxu1 %v14676_v14  ;;  %v14753_v13 = vld [vmem:[%s15448_s8 + $0xe0] ss:$80 sps:$4 sm:$0xff]   ;;  %v14760_v14 = vld [vmem:[%s15448_s8 + $0x184] ss:$80 sps:$4 sm:$0xff]  }
 0x482   : > { %7645 = vmatprep.subr.bf16.mxu0 %v14684_v15  ;;  %9575 = vmatprep.subr.bf16.mxu1 %v14687_v16  ;;  %v14763_v15 = vld [vmem:[#allocation5 + $0x1240] ss:$16 sps:$4 sm:$0xff]   ;;  %v14766_v16 = vld [vmem:[#allocation5 + $0x1248] ss:$16 sps:$4 sm:$0xff]  }
 0x485   : > { %7646 = vmatpush1.bf16.msra.mxu0 %v14682_v17  ;;  %9576 = vmatpush1.bf16.msra.mxu1 %v14685_v18  ;;  %v14774_v17 = vld [vmem:[#allocation5 + $0x1264] ss:$16 sps:$4 sm:$0xff]   ;;  %v14777_v18 = vld [vmem:[#allocation5 + $0x126c] ss:$16 sps:$4 sm:$0xff]  }
 0x486   : > { %7647 = vmatprep.subr.bf16.mxu0 %v14693_v19  ;;  %9577 = vmatprep.subr.bf16.mxu1 %v14696_v20  ;;  %v14772_v19 = vld [vmem:[#allocation5 + $0x1260] ss:$16 sps:$4 sm:$0xff]   ;;  %v14775_v20 = vld [vmem:[#allocation5 + $0x1268] ss:$16 sps:$4 sm:$0xff]  }
 0x487   : > { %7517 = vmatmul.mubr.bf16.gmra.mrb[20].mxu0 %v14645_v21  ;;  %9447 = vmatmul.mubr.bf16.gmra.mrb[20].mxu1 %v14645_v21  ;;  %v14783_v21 = vld [vmem:[#allocation5 + $0x1284] ss:$16 sps:$4 sm:$0xff]  }
 0x488   : > { %7526 = vmatprep.mubr.bf16.mxu0 %v14652_v22  ;;  %9456 = vmatprep.mubr.bf16.mxu1 %v14652_v22  ;;  %v14786_v22 = vld [vmem:[#allocation5 + $0x128c] ss:$16 sps:$4 sm:$0xff]  }
 0x489   : > { %7648 = vmatpush1.bf16.msra.mxu0 %v14691_v23  ;;  %9578 = vmatpush1.bf16.msra.mxu1 %v14694_v24  ;;  %v14762_v23 = vld [vmem:[%s15448_s8 + $0x180] ss:$80 sps:$4 sm:$0xff]   ;;  %v14769_v24 = vld [vmem:[%s15448_s8 + $0x224] ss:$80 sps:$4 sm:$0xff]  }
 0x48a   : > { %7649 = vmatprep.subr.bf16.mxu0 %v14702_v25  ;;  %9579 = vmatprep.subr.bf16.mxu1 %v14705_v26  ;;  %v14781_v25 = vld [vmem:[#allocation5 + $0x1280] ss:$16 sps:$4 sm:$0xff]   ;;  %v14784_v26 = vld [vmem:[#allocation5 + $0x1288] ss:$16 sps:$4 sm:$0xff]  }
 0x48d   : > { %7650 = vmatpush1.bf16.msra.mxu0 %v14700_v27  ;;  %9580 = vmatpush1.bf16.msra.mxu1 %v14703_v28  ;;  %v14792_v27 = vld [vmem:[#allocation5 + $0x12a4] ss:$16 sps:$4 sm:$0xff]   ;;  %v14795_v28 = vld [vmem:[#allocation5 + $0x12ac] ss:$16 sps:$4 sm:$0xff]  }
 0x48e   : > { %7651 = vmatprep.subr.bf16.mxu0 %v14711_v29  ;;  %9581 = vmatprep.subr.bf16.mxu1 %v14714_v30  ;;  %v14790_v29 = vld [vmem:[#allocation5 + $0x12a0] ss:$16 sps:$4 sm:$0xff]   ;;  %v14793_v30 = vld [vmem:[#allocation5 + $0x12a8] ss:$16 sps:$4 sm:$0xff]  }
 0x48f   : > { %7527 = vmatmul.mubr.bf16.gmra.mrb[24].mxu0 %v14654_v31  ;;  %9457 = vmatmul.mubr.bf16.gmra.mrb[24].mxu1 %v14654_v31  ;;  %v14801_v31 = vld [vmem:[#allocation5 + $0x12c4] ss:$16 sps:$4 sm:$0xff]  }
 0x490   : > { %7536 = vmatprep.mubr.bf16.mxu0 %v14661_v32  ;;  %9466 = vmatprep.mubr.bf16.mxu1 %v14661_v32  ;;  %v14804_v32 = vld [vmem:[#allocation5 + $0x12cc] ss:$16 sps:$4 sm:$0xff]  }
 0x491   : > { %7652 = vmatpush1.bf16.msra.mxu0 %v14709_v33  ;;  %9582 = vmatpush1.bf16.msra.mxu1 %v14712_v34  ;;  %v14771_v33 = vld [vmem:[%s15448_s8 + $0x220] ss:$80 sps:$4 sm:$0xff]   ;;  %v14778_v34 = vld [vmem:[%s15448_s8 + $0x2c4] ss:$80 sps:$4 sm:$0xff]  }
 0x492   : > { %7653 = vmatprep.subr.bf16.mxu0 %v14720_v35  ;;  %9583 = vmatprep.subr.bf16.mxu1 %v14723_v36  ;;  %v14799_v35 = vld [vmem:[#allocation5 + $0x12c0] ss:$16 sps:$4 sm:$0xff]   ;;  %v14802_v36 = vld [vmem:[#allocation5 + $0x12c8] ss:$16 sps:$4 sm:$0xff]  }
 0x495   : > { %7654 = vmatpush1.bf16.msra.mxu0 %v14718_v37  ;;  %9584 = vmatpush1.bf16.msra.mxu1 %v14721_v38  ;;  %v14810_v37 = vld [vmem:[#allocation5 + $0x12e4] ss:$16 sps:$4 sm:$0xff]   ;;  %v14813_v38 = vld [vmem:[#allocation5 + $0x12ec] ss:$16 sps:$4 sm:$0xff]  }
 0x496   : > { %7655 = vmatprep.subr.bf16.mxu0 %v14729_v39  ;;  %9585 = vmatprep.subr.bf16.mxu1 %v14732_v40  ;;  %v14808_v39 = vld [vmem:[#allocation5 + $0x12e0] ss:$16 sps:$4 sm:$0xff]   ;;  %v14811_v40 = vld [vmem:[#allocation5 + $0x12e8] ss:$16 sps:$4 sm:$0xff]  }
 0x497   : > { %7537 = vmatmul.mubr.bf16.gmra.mrb[28].mxu0 %v14663_v41  ;;  %9467 = vmatmul.mubr.bf16.gmra.mrb[28].mxu1 %v14663_v41  ;;  %v14819_v41 = vld [vmem:[#allocation5 + $0x1304] ss:$16 sps:$4 sm:$0xff]  }
 0x498   : > { %7546 = vmatprep.mubr.bf16.mxu0 %v14670_v42  ;;  %9476 = vmatprep.mubr.bf16.mxu1 %v14670_v42  ;;  %v14822_v42 = vld [vmem:[#allocation5 + $0x130c] ss:$16 sps:$4 sm:$0xff]  }
 0x499   : > { %7656 = vmatpush1.bf16.msra.mxu0 %v14727_v43  ;;  %9586 = vmatpush1.bf16.msra.mxu1 %v14730_v44  ;;  %v14780_v43 = vld [vmem:[%s15448_s8 + $0x2c0] ss:$80 sps:$4 sm:$0xff]   ;;  %v14787_v44 = vld [vmem:[%s15448_s8 + $0x364] ss:$80 sps:$4 sm:$0xff]  }
 0x49a   : > { %7657 = vmatprep.subr.bf16.mxu0 %v14738_v45  ;;  %9587 = vmatprep.subr.bf16.mxu1 %v14741_v46  ;;  %v14817_v45 = vld [vmem:[#allocation5 + $0x1300] ss:$16 sps:$4 sm:$0xff]   ;;  %v14820_v46 = vld [vmem:[#allocation5 + $0x1308] ss:$16 sps:$4 sm:$0xff]  }
 0x49d   : > { %7658 = vmatpush1.bf16.msra.mxu0 %v14736_v47  ;;  %9588 = vmatpush1.bf16.msra.mxu1 %v14739_v48  ;;  %v14828_v47 = vld [vmem:[#allocation5 + $0x1324] ss:$16 sps:$4 sm:$0xff]   ;;  %v14831_v48 = vld [vmem:[#allocation5 + $0x132c] ss:$16 sps:$4 sm:$0xff]  }
 0x49e   : > { %7820 = vmatprep.subr.bf16.mxu0 %v14747_v49  ;;  %9750 = vmatprep.subr.bf16.mxu1 %v14750_v50  ;;  %v14826_v49 = vld [vmem:[#allocation5 + $0x1320] ss:$16 sps:$4 sm:$0xff]   ;;  %v14829_v50 = vld [vmem:[#allocation5 + $0x1328] ss:$16 sps:$4 sm:$0xff]  }
 0x49f   : > { %7547 = vmatmul.mubr.bf16.gmra.mrb[32].mxu0 %v14672_v51  ;;  %9477 = vmatmul.mubr.bf16.gmra.mrb[32].mxu1 %v14672_v51  ;;  %v14837_v51 = vld [vmem:[#allocation5 + $0x1344] ss:$16 sps:$4 sm:$0xff]  }
 0x4a0   : > { %7556 = vmatprep.mubr.bf16.mxu0 %v14679_v52  ;;  %9486 = vmatprep.mubr.bf16.mxu1 %v14679_v52  ;;  %v14840_v52 = vld [vmem:[#allocation5 + $0x134c] ss:$16 sps:$4 sm:$0xff]  }
 0x4a7   : > { %7557 = vmatmul.mubr.bf16.gmra.mrb[36].mxu0 %v14681_v53  ;;  %9487 = vmatmul.mubr.bf16.gmra.mrb[36].mxu1 %v14681_v53  ;;  %v14789_v53 = vld [vmem:[%s15448_s8 + $0x360] ss:$80 sps:$4 sm:$0xff]  }
 0x4a8   : > { %7566 = vmatprep.mubr.bf16.mxu0 %v14688_v54  ;;  %9496 = vmatprep.mubr.bf16.mxu1 %v14688_v54  ;;  %v14796_v54 = vld [vmem:[%s15448_s8 + $0x404] ss:$80 sps:$4 sm:$0xff]  }
 0x4af   : > { %7567 = vmatmul.mubr.bf16.gmra.mrb[40].mxu0 %v14690_v55  ;;  %9497 = vmatmul.mubr.bf16.gmra.mrb[40].mxu1 %v14690_v55  ;;  %v14835_v55 = vld [vmem:[#allocation5 + $0x1340] ss:$16 sps:$4 sm:$0xff]  }
 0x4b0   : > { %7576 = vmatprep.mubr.bf16.mxu0 %v14697_v56  ;;  %9506 = vmatprep.mubr.bf16.mxu1 %v14697_v56  ;;  %v14838_v56 = vld [vmem:[#allocation5 + $0x1348] ss:$16 sps:$4 sm:$0xff]  }
 0x4b7   : > { %7577 = vmatmul.mubr.bf16.gmra.mrb[44].mxu0 %v14699_v57  ;;  %9507 = vmatmul.mubr.bf16.gmra.mrb[44].mxu1 %v14699_v57  ;;  %v14846_v57 = vld [vmem:[#allocation5 + $0x1364] ss:$16 sps:$4 sm:$0xff]  }
 0x4b8   : > { %7586 = vmatprep.mubr.bf16.mxu0 %v14706_v58  ;;  %9516 = vmatprep.mubr.bf16.mxu1 %v14706_v58  ;;  %v14849_v58 = vld [vmem:[#allocation5 + $0x136c] ss:$16 sps:$4 sm:$0xff]  }
 0x4bf   : > { %7587 = vmatmul.mubr.bf16.gmra.mrb[48].mxu0 %v14708_v59  ;;  %9517 = vmatmul.mubr.bf16.gmra.mrb[48].mxu1 %v14708_v59  ;;  %v14844_v59 = vld [vmem:[#allocation5 + $0x1360] ss:$16 sps:$4 sm:$0xff]  }
 0x4c0   : > { %7596 = vmatprep.mubr.bf16.mxu0 %v14715_v60  ;;  %9526 = vmatprep.mubr.bf16.mxu1 %v14715_v60  ;;  %v14847_v60 = vld [vmem:[#allocation5 + $0x1368] ss:$16 sps:$4 sm:$0xff]  }
 0x4c7   : > { %7597 = vmatmul.mubr.bf16.gmra.mrb[52].mxu0 %v14717_v61  ;;  %9527 = vmatmul.mubr.bf16.gmra.mrb[52].mxu1 %v14717_v61  ;;  %v14855_v61 = vld [vmem:[#allocation5 + $0x1384] ss:$16 sps:$4 sm:$0xff]  }
 0x4c8   : > { %7606 = vmatprep.mubr.bf16.mxu0 %v14724_v62  ;;  %9536 = vmatprep.mubr.bf16.mxu1 %v14724_v62  ;;  %v14858_v62 = vld [vmem:[#allocation5 + $0x138c] ss:$16 sps:$4 sm:$0xff]  }
 0x4cf   : > { %7607 = vmatmul.mubr.bf16.gmra.mrb[56].mxu0 %v14726_v63  ;;  %9537 = vmatmul.mubr.bf16.gmra.mrb[56].mxu1 %v14726_v63  ;;  %v14798_v63 = vld [vmem:[%s15448_s8 + $0x400] ss:$80 sps:$4 sm:$0xff]  }
 0x4d0   : > { %7616 = vmatprep.mubr.bf16.mxu0 %v14733_v0  ;;  %9546 = vmatprep.mubr.bf16.mxu1 %v14733_v0  ;;  %v14805_v0 = vld [vmem:[%s15448_s8 + $0x4a4] ss:$80 sps:$4 sm:$0xff]  }
 0x4d7   : > { %7617 = vmatmul.mubr.bf16.gmra.mrb[60].mxu0 %v14735_v1  ;;  %9547 = vmatmul.mubr.bf16.gmra.mrb[60].mxu1 %v14735_v1  ;;  %v14853_v1 = vld [vmem:[#allocation5 + $0x1380] ss:$16 sps:$4 sm:$0xff]  }
 0x4d8   : > { %7659 = vmatprep.mubr.bf16.mxu0 %v14744_v2  ;;  %9589 = vmatprep.mubr.bf16.mxu1 %v14744_v2  ;;  %v14856_v2 = vld [vmem:[#allocation5 + $0x1388] ss:$16 sps:$4 sm:$0xff]  }
 0x4df   : > { %7660 = vmatmul.mubr.bf16.vlgmr.msra.gmra.mrb[0].mxu0 %v14742_v3  ;;  %9590 = vmatmul.mubr.bf16.vlgmr.msra.gmra.mrb[0].mxu1 %v14742_v3  ;;  %v14864_v3 = vld [vmem:[#allocation5 + $0x13a4] ss:$16 sps:$4 sm:$0xff]  }
 0x4e0   : > { %7821 = vmatpush1.bf16.msra.mxu0 %v14745_v4  ;;  %9751 = vmatpush1.bf16.msra.mxu1 %v14748_v5  ;;  %v14867_v4 = vld [vmem:[#allocation5 + $0x13ac] ss:$16 sps:$4 sm:$0xff]   ;;  %v14862_v5 = vld [vmem:[#allocation5 + $0x13a0] ss:$16 sps:$4 sm:$0xff]  }
 0x4e1   : > { %7669 = vmatprep.mubr.bf16.mxu0 %v14751_v6  ;;  %9599 = vmatprep.mubr.bf16.mxu1 %v14751_v6  ;;  %v14865_v6 = vld [vmem:[#allocation5 + $0x13a8] ss:$16 sps:$4 sm:$0xff]  }
 0x4e2   : > { %7822 = vmatprep.subr.bf16.mxu0 %v14756_v7  ;;  %9752 = vmatprep.subr.bf16.mxu1 %v14759_v8  ;;  %v14873_v7 = vld [vmem:[#allocation5 + $0x13c4] ss:$16 sps:$4 sm:$0xff]   ;;  %v14876_v8 = vld [vmem:[#allocation5 + $0x13cc] ss:$16 sps:$4 sm:$0xff]  }
 0x4e4   : > { %7823 = vmatpush1.bf16.msra.mxu0 %v14754_v9  ;;  %9753 = vmatpush1.bf16.msra.mxu1 %v14757_v10  ;;  %v14807_v9 = vld [vmem:[%s15448_s8 + $0x4a0] ss:$80 sps:$4 sm:$0xff]   ;;  %v14814_v10 = vld [vmem:[%s15448_s8 + $0x544] ss:$80 sps:$4 sm:$0xff]  }
 0x4e5   : > { %7824 = vmatprep.subr.bf16.mxu0 %v14765_v11  ;;  %9754 = vmatprep.subr.bf16.mxu1 %v14768_v12  ;;  %v14871_v11 = vld [vmem:[#allocation5 + $0x13c0] ss:$16 sps:$4 sm:$0xff]   ;;  %v14874_v12 = vld [vmem:[#allocation5 + $0x13c8] ss:$16 sps:$4 sm:$0xff]  }
 0x4e7   : > { %7670 = vmatmul.mubr.bf16.gmra.mrb[4].mxu0 %v14753_v13  ;;  %9600 = vmatmul.mubr.bf16.gmra.mrb[4].mxu1 %v14753_v13  ;;  %v14882_v13 = vld [vmem:[#allocation5 + $0x13e4] ss:$16 sps:$4 sm:$0xff]  }
 0x4e8   : > { %7679 = vmatprep.mubr.bf16.mxu0 %v14760_v14  ;;  %9609 = vmatprep.mubr.bf16.mxu1 %v14760_v14  ;;  %v14885_v14 = vld [vmem:[#allocation5 + $0x13ec] ss:$16 sps:$4 sm:$0xff]  }
 0x4e9   : > { %7825 = vmatpush1.bf16.msra.mxu0 %v14763_v15  ;;  %9755 = vmatpush1.bf16.msra.mxu1 %v14766_v16  ;;  %v14880_v15 = vld [vmem:[#allocation5 + $0x13e0] ss:$16 sps:$4 sm:$0xff]   ;;  %v14883_v16 = vld [vmem:[#allocation5 + $0x13e8] ss:$16 sps:$4 sm:$0xff]  }
 0x4ea   : > { %7826 = vmatprep.subr.bf16.mxu0 %v14774_v17  ;;  %9756 = vmatprep.subr.bf16.mxu1 %v14777_v18  ;;  %v14816_v17 = vld [vmem:[%s15448_s8 + $0x540] ss:$80 sps:$4 sm:$0xff]   ;;  %v14823_v18 = vld [vmem:[%s15448_s8 + $0x5e4] ss:$80 sps:$4 sm:$0xff]  }
 0x4ed   : > { %7827 = vmatpush1.bf16.msra.mxu0 %v14772_v19  ;;  %9757 = vmatpush1.bf16.msra.mxu1 %v14775_v20  ;;  %v14825_v19 = vld [vmem:[%s15448_s8 + $0x5e0] ss:$80 sps:$4 sm:$0xff]   ;;  %v14832_v20 = vld [vmem:[%s15448_s8 + $0x684] ss:$80 sps:$4 sm:$0xff]  }
 0x4ee   : > { %7828 = vmatprep.subr.bf16.mxu0 %v14783_v21  ;;  %9758 = vmatprep.subr.bf16.mxu1 %v14786_v22  ;;  %v14834_v21 = vld [vmem:[%s15448_s8 + $0x680] ss:$80 sps:$4 sm:$0xff]   ;;  %v14841_v22 = vld [vmem:[%s15448_s8 + $0x724] ss:$80 sps:$4 sm:$0xff]  }
 0x4ef   : > { %7680 = vmatmul.mubr.bf16.gmra.mrb[8].mxu0 %v14762_v23  ;;  %9610 = vmatmul.mubr.bf16.gmra.mrb[8].mxu1 %v14762_v23  ;;  %v14843_v23 = vld [vmem:[%s15448_s8 + $0x720] ss:$80 sps:$4 sm:$0xff]  }
 0x4f0   : > { %7689 = vmatprep.mubr.bf16.mxu0 %v14769_v24  ;;  %9619 = vmatprep.mubr.bf16.mxu1 %v14769_v24  ;;  %v14850_v24 = vld [vmem:[%s15448_s8 + $0x7c4] ss:$80 sps:$4 sm:$0xff]  }
 0x4f1   : > { %7829 = vmatpush1.bf16.msra.mxu0 %v14781_v25  ;;  %9759 = vmatpush1.bf16.msra.mxu1 %v14784_v26  ;;  %v14922_v25 = vld [vmem:[#allocation8 + $0x40] sm:$0xff]   ;;  %v14852_v26 = vld [vmem:[%s15448_s8 + $0x7c0] ss:$80 sps:$4 sm:$0xff]  }
 0x4f2   : > { %7830 = vmatprep.subr.bf16.mxu0 %v14792_v27  ;;  %9760 = vmatprep.subr.bf16.mxu1 %v14795_v28  ;;  %v14859_v27 = vld [vmem:[%s15448_s8 + $0x864] ss:$80 sps:$4 sm:$0xff]  }
 0x4f3   : > { %v14927_v28 = vld [vmem:[#allocation8 + $0xc0] sm:$0xff]  }
 0x4f5   : > { %7831 = vmatpush1.bf16.msra.mxu0 %v14790_v29  ;;  %9761 = vmatpush1.bf16.msra.mxu1 %v14793_v30  ;;  %v14861_v29 = vld [vmem:[%s15448_s8 + $0x860] ss:$80 sps:$4 sm:$0xff]   ;;  %v14868_v30 = vld [vmem:[%s15448_s8 + $0x904] ss:$80 sps:$4 sm:$0xff]  }
 0x4f6   : > { %7832 = vmatprep.subr.bf16.mxu0 %v14801_v31  ;;  %9762 = vmatprep.subr.bf16.mxu1 %v14804_v32  ;;  %v14870_v31 = vld [vmem:[%s15448_s8 + $0x900] ss:$80 sps:$4 sm:$0xff]   ;;  %v14877_v32 = vld [vmem:[%s15448_s8 + $0x9a4] ss:$80 sps:$4 sm:$0xff]  }
 0x4f7   : > { %7690 = vmatmul.mubr.bf16.gmra.mrb[12].mxu0 %v14771_v33  ;;  %9620 = vmatmul.mubr.bf16.gmra.mrb[12].mxu1 %v14771_v33  ;;  %v14879_v33 = vld [vmem:[%s15448_s8 + $0x9a0] ss:$80 sps:$4 sm:$0xff]  }
 0x4f8   : > { %7699 = vmatprep.mubr.bf16.mxu0 %v14778_v34  ;;  %9629 = vmatprep.mubr.bf16.mxu1 %v14778_v34  ;;  %v14888_v34 = vld [vmem:[%s15448_s8 + $0x4c] ss:$80 sps:$4 sm:$0xff]  }
 0x4f9   : > { %7833 = vmatpush1.bf16.msra.mxu0 %v14799_v35  ;;  %9763 = vmatpush1.bf16.msra.mxu1 %v14802_v36  ;;  %v14886_v35 = vld [vmem:[%s15448_s8 + $0x48] ss:$80 sps:$4 sm:$0xff]   ;;  %v14889_v36 = vld [vmem:[%s15448_s8 + $0xec] ss:$80 sps:$4 sm:$0xff]  }
 0x4fa   : > { %7834 = vmatprep.subr.bf16.mxu0 %v14810_v37  ;;  %9764 = vmatprep.subr.bf16.mxu1 %v14813_v38  ;;  %v14925_v37 = vld [vmem:[#allocation8] sm:$0xff]  }
 0x4fb   : > { %v14928_v38 = vld [vmem:[#allocation8 + $0x80] sm:$0xff]  }
 0x4fd   : > { %7835 = vmatpush1.bf16.msra.mxu0 %v14808_v39  ;;  %9765 = vmatpush1.bf16.msra.mxu1 %v14811_v40  ;;  %v14932_v39 = vld [vmem:[#allocation8 + $0x48] sm:$0xff]  }
 0x4fe   : > { %7836 = vmatprep.subr.bf16.mxu0 %v14819_v41  ;;  %9766 = vmatprep.subr.bf16.mxu1 %v14822_v42  ;;  %v14937_v40 = vld [vmem:[#allocation8 + $0xc8] sm:$0xff]  }
 0x4ff   : > { %7700 = vmatmul.mubr.bf16.gmra.mrb[16].mxu0 %v14780_v43  ;;  %9630 = vmatmul.mubr.bf16.gmra.mrb[16].mxu1 %v14780_v43  ;;  %v14935_v41 = vld [vmem:[#allocation8 + $0x8] sm:$0xff]   ;;  %v14942_v43 = vld [vmem:[#allocation8 + $0x50] sm:$0xff]  }
 0x500   : > { %7709 = vmatprep.mubr.bf16.mxu0 %v14787_v44  ;;  %9639 = vmatprep.mubr.bf16.mxu1 %v14787_v44  ;;  %v14938_v42 = vld [vmem:[#allocation8 + $0x88] sm:$0xff]   ;;  %v14944_v44 = vld [vmem:[#allocation8 + $0xd0] sm:$0xff]  }
 0x501   : > { %7837 = vmatpush1.bf16.msra.mxu0 %v14817_v45  ;;  %9767 = vmatpush1.bf16.msra.mxu1 %v14820_v46  ;;  %v14891_v45 = vld [vmem:[%s15448_s8 + $0xe8] ss:$80 sps:$4 sm:$0xff]   ;;  %v14892_v46 = vld [vmem:[%s15448_s8 + $0x18c] ss:$80 sps:$4 sm:$0xff]  }
 0x502   : > { %7838 = vmatprep.subr.bf16.mxu0 %v14828_v47  ;;  %9768 = vmatprep.subr.bf16.mxu1 %v14831_v48  ;;  %v14943_v47 = vld [vmem:[#allocation8 + $0x10] sm:$0xff]  }
 0x503   : > { %v14945_v48 = vld [vmem:[#allocation8 + $0x90] sm:$0xff]  }
 0x505   : > { %7839 = vmatpush1.bf16.msra.mxu0 %v14826_v49  ;;  %9769 = vmatpush1.bf16.msra.mxu1 %v14829_v50  ;;  %v14946_v49 = vld [vmem:[#allocation8 + $0x58] sm:$0xff]  }
 0x506   : > { %7840 = vmatprep.subr.bf16.mxu0 %v14837_v51  ;;  %9770 = vmatprep.subr.bf16.mxu1 %v14840_v52  ;;  %v14948_v50 = vld [vmem:[#allocation8 + $0xd8] sm:$0xff]  }
 0x507   : > { %7710 = vmatmul.mubr.bf16.gmra.mrb[20].mxu0 %v14789_v53  ;;  %9640 = vmatmul.mubr.bf16.gmra.mrb[20].mxu1 %v14789_v53  ;;  %v14947_v51 = vld [vmem:[#allocation8 + $0x18] sm:$0xff]   ;;  %v14950_v53 = vld [vmem:[#allocation8 + $0x60] sm:$0xff]  }
 0x508   : > { %7719 = vmatprep.mubr.bf16.mxu0 %v14796_v54  ;;  %9649 = vmatprep.mubr.bf16.mxu1 %v14796_v54  ;;  %v14949_v52 = vld [vmem:[#allocation8 + $0x98] sm:$0xff]   ;;  %v14952_v54 = vld [vmem:[#allocation8 + $0xe0] sm:$0xff]  }
 0x509   : > { %7841 = vmatpush1.bf16.msra.mxu0 %v14835_v55  ;;  %9771 = vmatpush1.bf16.msra.mxu1 %v14838_v56  ;;  %v14894_v55 = vld [vmem:[%s15448_s8 + $0x188] ss:$80 sps:$4 sm:$0xff]   ;;  %v14895_v56 = vld [vmem:[%s15448_s8 + $0x22c] ss:$80 sps:$4 sm:$0xff]  }
 0x50a   : > { %7842 = vmatprep.subr.bf16.mxu0 %v14846_v57  ;;  %9772 = vmatprep.subr.bf16.mxu1 %v14849_v58  ;;  %v14951_v57 = vld [vmem:[#allocation8 + $0x20] sm:$0xff]  }
 0x50b   : > { %v14953_v58 = vld [vmem:[#allocation8 + $0xa0] sm:$0xff]  }
 0x50d   : > { %7843 = vmatpush1.bf16.msra.mxu0 %v14844_v59  ;;  %9773 = vmatpush1.bf16.msra.mxu1 %v14847_v60  ;;  %v14954_v59 = vld [vmem:[#allocation8 + $0x68] sm:$0xff]  }
 0x50e   : > { %7844 = vmatprep.subr.bf16.mxu0 %v14855_v61  ;;  %9774 = vmatprep.subr.bf16.mxu1 %v14858_v62  ;;  %v14956_v60 = vld [vmem:[#allocation8 + $0xe8] sm:$0xff]  }
 0x50f   : > { %7720 = vmatmul.mubr.bf16.gmra.mrb[24].mxu0 %v14798_v63  ;;  %9650 = vmatmul.mubr.bf16.gmra.mrb[24].mxu1 %v14798_v63  ;;  %v14955_v61 = vld [vmem:[#allocation8 + $0x28] sm:$0xff]   ;;  %v14958_v63 = vld [vmem:[#allocation8 + $0x70] sm:$0xff]  }
 0x510   : > { %7729 = vmatprep.mubr.bf16.mxu0 %v14805_v0  ;;  %9659 = vmatprep.mubr.bf16.mxu1 %v14805_v0  ;;  %v14957_v62 = vld [vmem:[#allocation8 + $0xa8] sm:$0xff]   ;;  %v14960_v0 = vld [vmem:[#allocation8 + $0xf0] sm:$0xff]  }
 0x511   : > { %7845 = vmatpush1.bf16.msra.mxu0 %v14853_v1  ;;  %9775 = vmatpush1.bf16.msra.mxu1 %v14856_v2  ;;  %v14897_v1 = vld [vmem:[%s15448_s8 + $0x228] ss:$80 sps:$4 sm:$0xff]   ;;  %v14898_v2 = vld [vmem:[%s15448_s8 + $0x2cc] ss:$80 sps:$4 sm:$0xff]  }
 0x512   : > { %7846 = vmatprep.subr.bf16.mxu0 %v14864_v3  ;;  %9776 = vmatprep.subr.bf16.mxu1 %v14867_v4  ;;  %v14959_v3 = vld [vmem:[#allocation8 + $0x30] sm:$0xff]  }
 0x513   : > { %v14961_v4 = vld [vmem:[#allocation8 + $0xb0] sm:$0xff]  }
 0x515   : > { %7847 = vmatpush1.bf16.msra.mxu0 %v14862_v5  ;;  %9777 = vmatpush1.bf16.msra.mxu1 %v14865_v6  ;;  %v14962_v5 = vld [vmem:[#allocation8 + $0x78] sm:$0xff]  }
 0x516   : > { %7848 = vmatprep.subr.bf16.mxu0 %v14873_v7  ;;  %9778 = vmatprep.subr.bf16.mxu1 %v14876_v8  ;;  %v14964_v6 = vld [vmem:[#allocation8 + $0xf8] sm:$0xff]  }
 0x517   : > { %7730 = vmatmul.mubr.bf16.gmra.mrb[28].mxu0 %v14807_v9  ;;  %9660 = vmatmul.mubr.bf16.gmra.mrb[28].mxu1 %v14807_v9  ;;  %v14963_v7 = vld [vmem:[#allocation8 + $0x38] sm:$0xff]   ;;  %v14900_v9 = vld [vmem:[%s15448_s8 + $0x2c8] ss:$80 sps:$4 sm:$0xff]  }
 0x518   : > { %7739 = vmatprep.mubr.bf16.mxu0 %v14814_v10  ;;  %9669 = vmatprep.mubr.bf16.mxu1 %v14814_v10  ;;  %v14965_v8 = vld [vmem:[#allocation8 + $0xb8] sm:$0xff]  }
 0x519   : > { %7849 = vmatpush1.bf16.msra.mxu0 %v14871_v11  ;;  %9779 = vmatpush1.bf16.msra.mxu1 %v14874_v12  ;;  %v14901_v10 = vld [vmem:[%s15448_s8 + $0x36c] ss:$80 sps:$4 sm:$0xff]   ;;  %v14903_v11 = vld [vmem:[%s15448_s8 + $0x368] ss:$80 sps:$4 sm:$0xff]  }
 0x51a   : > { %7850 = vmatprep.subr.bf16.mxu0 %v14882_v13  ;;  %9780 = vmatprep.subr.bf16.mxu1 %v14885_v14  ;;  %v14904_v12 = vld [vmem:[%s15448_s8 + $0x40c] ss:$80 sps:$4 sm:$0xff]   ;;  %v14906_v13 = vld [vmem:[%s15448_s8 + $0x408] ss:$80 sps:$4 sm:$0xff]  }
 0x51b   : > { %v14907_v14 = vld [vmem:[%s15448_s8 + $0x4ac] ss:$80 sps:$4 sm:$0xff]  }
 0x51d   : > { %7851 = vmatpush1.bf16.msra.mxu0 %v14880_v15  ;;  %9781 = vmatpush1.bf16.msra.mxu1 %v14883_v16  ;;  %v14909_v15 = vld [vmem:[%s15448_s8 + $0x4a8] ss:$80 sps:$4 sm:$0xff]   ;;  %v14910_v16 = vld [vmem:[%s15448_s8 + $0x54c] ss:$80 sps:$4 sm:$0xff]  }
 0x51e   : > { %11892 = vmatprep.subr.bf16.mxu0 %v14922_v25  ;;  %12004 = vmatprep.subr.bf16.mxu1 %v14927_v28  ;;  %v14926_v25 = vld [vmem:[%s15448_s8 + $0x7c8] ss:$80 sps:$4 sm:$0xff]   ;;  %v14933_v28 = vld [vmem:[%s15448_s8 + $0x90c] ss:$80 sps:$4 sm:$0xff]  }
 0x51f   : > { %7740 = vmatmul.mubr.bf16.gmra.mrb[32].mxu0 %v14816_v17  ;;  %9670 = vmatmul.mubr.bf16.gmra.mrb[32].mxu1 %v14816_v17  ;;  %v14912_v17 = vld [vmem:[%s15448_s8 + $0x548] ss:$80 sps:$4 sm:$0xff]  }
 0x520   : > { %7749 = vmatprep.mubr.bf16.mxu0 %v14823_v18  ;;  %9679 = vmatprep.mubr.bf16.mxu1 %v14823_v18  ;;  %v14913_v18 = vld [vmem:[%s15448_s8 + $0x5ec] ss:$80 sps:$4 sm:$0xff]  }
 0x527   : > { %7750 = vmatmul.mubr.bf16.gmra.mrb[36].mxu0 %v14825_v19  ;;  %9680 = vmatmul.mubr.bf16.gmra.mrb[36].mxu1 %v14825_v19  ;;  %v14915_v19 = vld [vmem:[%s15448_s8 + $0x5e8] ss:$80 sps:$4 sm:$0xff]  }
 0x528   : > { %7759 = vmatprep.mubr.bf16.mxu0 %v14832_v20  ;;  %9689 = vmatprep.mubr.bf16.mxu1 %v14832_v20  ;;  %v14916_v20 = vld [vmem:[%s15448_s8 + $0x68c] ss:$80 sps:$4 sm:$0xff]  }
 0x52f   : > { %7760 = vmatmul.mubr.bf16.gmra.mrb[40].mxu0 %v14834_v21  ;;  %9690 = vmatmul.mubr.bf16.gmra.mrb[40].mxu1 %v14834_v21  ;;  %v14918_v21 = vld [vmem:[%s15448_s8 + $0x688] ss:$80 sps:$4 sm:$0xff]  }
 0x530   : > { %7769 = vmatprep.mubr.bf16.mxu0 %v14841_v22  ;;  %9699 = vmatprep.mubr.bf16.mxu1 %v14841_v22  ;;  %v14919_v22 = vld [vmem:[%s15448_s8 + $0x72c] ss:$80 sps:$4 sm:$0xff]  }
 0x537   : > { %7770 = vmatmul.mubr.bf16.gmra.mrb[44].mxu0 %v14843_v23  ;;  %9700 = vmatmul.mubr.bf16.gmra.mrb[44].mxu1 %v14843_v23  ;;  %v14921_v23 = vld [vmem:[%s15448_s8 + $0x728] ss:$80 sps:$4 sm:$0xff]  }
 0x538   : > { %7779 = vmatprep.mubr.bf16.mxu0 %v14850_v24  ;;  %9709 = vmatprep.mubr.bf16.mxu1 %v14850_v24  ;;  %v14923_v24 = vld [vmem:[%s15448_s8 + $0x7cc] ss:$80 sps:$4 sm:$0xff]  }
 0x53f   : > { %7780 = vmatmul.mubr.bf16.gmra.mrb[48].mxu0 %v14852_v26  ;;  %9710 = vmatmul.mubr.bf16.gmra.mrb[48].mxu1 %v14852_v26  ;;  %v14929_v26 = vld [vmem:[%s15448_s8 + $0x86c] ss:$80 sps:$4 sm:$0xff]  }
 0x540   : > { %7789 = vmatprep.mubr.bf16.mxu0 %v14859_v27  ;;  %9719 = vmatprep.mubr.bf16.mxu1 %v14859_v27  ;;  %v14931_v27 = vld [vmem:[%s15448_s8 + $0x868] ss:$80 sps:$4 sm:$0xff]  }
 0x547   : > { %7790 = vmatmul.mubr.bf16.gmra.mrb[52].mxu0 %v14861_v29  ;;  %9720 = vmatmul.mubr.bf16.gmra.mrb[52].mxu1 %v14861_v29  ;;  %v14936_v29 = vld [vmem:[%s15448_s8 + $0x908] ss:$80 sps:$4 sm:$0xff]  }
 0x548   : > { %7799 = vmatprep.mubr.bf16.mxu0 %v14868_v30  ;;  %9729 = vmatprep.mubr.bf16.mxu1 %v14868_v30  ;;  %v14939_v30 = vld [vmem:[%s15448_s8 + $0x9ac] ss:$80 sps:$4 sm:$0xff]  }
 0x54f   : > { %7800 = vmatmul.mubr.bf16.gmra.mrb[56].mxu0 %v14870_v31  ;;  %9730 = vmatmul.mubr.bf16.gmra.mrb[56].mxu1 %v14870_v31  ;;  %v14941_v31 = vld [vmem:[%s15448_s8 + $0x9a8] ss:$80 sps:$4 sm:$0xff]  }
 0x550   : > { %7809 = vmatprep.mubr.bf16.mxu0 %v14877_v32  ;;  %9739 = vmatprep.mubr.bf16.mxu1 %v14877_v32  ;;  %v1263_v32 = vlaneseq }
 0x557   : > { %7810 = vmatmul.mubr.bf16.gmra.mrb[60].mxu0 %v14879_v33  ;;  %9740 = vmatmul.mubr.bf16.gmra.mrb[60].mxu1 %v14879_v33  ;;  %v1264_v33 = vshrl.u32 %v1263_v32, 7 }
 0x558   : > { %7852 = vmatprep.mubr.bf16.mxu0 %v14888_v34  ;;  %9782 = vmatprep.mubr.bf16.mxu1 %v14888_v34 }
 0x559   : > { %v1265_v34 = vsub.s32 0, %v1264_v33 }
 0x55f   : > { %7853 = vmatmul.mubr.bf16.vlgmr.msra.gmra.mrb[0].mxu0 %v14886_v35  ;;  %9783 = vmatmul.mubr.bf16.vlgmr.msra.gmra.mrb[0].mxu1 %v14886_v35  ;;  %v1273_v35 = vsub.s32 2, %v1264_v33 }
 0x560   : > { %7862 = vmatprep.mubr.bf16.mxu0 %v14889_v36  ;;  %9792 = vmatprep.mubr.bf16.mxu1 %v14889_v36  ;;  %v1261_v36 = vld [vmem:[#allocation7] sm:$0xf] }
 0x561   : > { %11893 = vmatpush3.bf16.msra.mxu0 %v14925_v37  ;;  %12005 = vmatpush3.bf16.msra.mxu1 %v14928_v38  ;;  %v1269_v37 = vsub.s32 1, %v1264_v33  ;;  %v1277_v38 = vsub.s32 3, %v1264_v33 }
 0x562   : > { %11894 = vmatprep.subr.bf16.mxu0 %v14932_v39  ;;  %12006 = vmatprep.subr.bf16.mxu1 %v14937_v40  ;;  %v15782_v39 = vrot.slane %v1261_v36, %v1265_v34  ;;  %v15784_v40 = vrot.slane %v1261_v36, %v1273_v35 }
 0x565   : > { %11895 = vmatpush3.bf16.msra.mxu0 %v14935_v41  ;;  %12007 = vmatpush3.bf16.msra.mxu1 %v14938_v42  ;;  %v15786_v41 = vrot.slane %v1261_v36, %v1269_v37  ;;  %v15788_v42 = vrot.slane %v1261_v36, %v1277_v38 }
 0x566   : > { %11896 = vmatprep.subr.bf16.mxu0 %v14942_v43  ;;  %12008 = vmatprep.subr.bf16.mxu1 %v14944_v44 }
 0x567   : > { %7863 = vmatmul.mubr.bf16.gmra.mrb[4].mxu0 %v14891_v45  ;;  %9793 = vmatmul.mubr.bf16.gmra.mrb[4].mxu1 %v14891_v45 }
 0x568   : > { %7872 = vmatprep.mubr.bf16.mxu0 %v14892_v46  ;;  %9802 = vmatprep.mubr.bf16.mxu1 %v14892_v46 }
 0x569   : > { %11897 = vmatpush3.bf16.msra.mxu0 %v14943_v47  ;;  %12009 = vmatpush3.bf16.msra.mxu1 %v14945_v48 }
 0x56a   : > { %11898 = vmatprep.subr.bf16.mxu0 %v14946_v49  ;;  %12010 = vmatprep.subr.bf16.mxu1 %v14948_v50 }
 0x56d   : > { %11899 = vmatpush3.bf16.msra.mxu0 %v14947_v51  ;;  %12011 = vmatpush3.bf16.msra.mxu1 %v14949_v52 }
 0x56e   : > { %11900 = vmatprep.subr.bf16.mxu0 %v14950_v53  ;;  %12012 = vmatprep.subr.bf16.mxu1 %v14952_v54 }
 0x56f   : > { %7873 = vmatmul.mubr.bf16.gmra.mrb[8].mxu0 %v14894_v55  ;;  %9803 = vmatmul.mubr.bf16.gmra.mrb[8].mxu1 %v14894_v55 }
 0x570   : > { %7882 = vmatprep.mubr.bf16.mxu0 %v14895_v56  ;;  %9812 = vmatprep.mubr.bf16.mxu1 %v14895_v56 }
 0x571   : > { %11901 = vmatpush3.bf16.msra.mxu0 %v14951_v57  ;;  %12013 = vmatpush3.bf16.msra.mxu1 %v14953_v58 }
 0x572   : > { %11902 = vmatprep.subr.bf16.mxu0 %v14954_v59  ;;  %12014 = vmatprep.subr.bf16.mxu1 %v14956_v60 }
 0x575   : > { %11903 = vmatpush3.bf16.msra.mxu0 %v14955_v61  ;;  %12015 = vmatpush3.bf16.msra.mxu1 %v14957_v62 }
 0x576   : > { %11904 = vmatprep.subr.bf16.mxu0 %v14958_v63  ;;  %12016 = vmatprep.subr.bf16.mxu1 %v14960_v0 }
 0x577   : > { %7883 = vmatmul.mubr.bf16.gmra.mrb[12].mxu0 %v14897_v1  ;;  %9813 = vmatmul.mubr.bf16.gmra.mrb[12].mxu1 %v14897_v1 }
 0x578   : > { %7892 = vmatprep.mubr.bf16.mxu0 %v14898_v2  ;;  %9822 = vmatprep.mubr.bf16.mxu1 %v14898_v2 }
 0x579   : > { %11905 = vmatpush3.bf16.msra.mxu0 %v14959_v3  ;;  %12017 = vmatpush3.bf16.msra.mxu1 %v14961_v4 }
 0x57a   : > { %11906 = vmatprep.subr.bf16.mxu0 %v14962_v5  ;;  %12018 = vmatprep.subr.bf16.mxu1 %v14964_v6 }
 0x57d   : > { %11907 = vmatpush3.bf16.msra.mxu0 %v14963_v7  ;;  %12019 = vmatpush3.bf16.msra.mxu1 %v14965_v8 }
 0x57f   : > { %7893 = vmatmul.mubr.bf16.gmra.mrb[16].mxu0 %v14900_v9  ;;  %9823 = vmatmul.mubr.bf16.gmra.mrb[16].mxu1 %v14900_v9 }
 0x580   : > { %7902 = vmatprep.mubr.bf16.mxu0 %v14901_v10  ;;  %9832 = vmatprep.mubr.bf16.mxu1 %v14901_v10 }
 0x587   : > { %7903 = vmatmul.mubr.bf16.gmra.mrb[20].mxu0 %v14903_v11  ;;  %9833 = vmatmul.mubr.bf16.gmra.mrb[20].mxu1 %v14903_v11 }
 0x588   : > { %7912 = vmatprep.mubr.bf16.mxu0 %v14904_v12  ;;  %9842 = vmatprep.mubr.bf16.mxu1 %v14904_v12 }
 0x58f   : > { %7913 = vmatmul.mubr.bf16.gmra.mrb[24].mxu0 %v14906_v13  ;;  %9843 = vmatmul.mubr.bf16.gmra.mrb[24].mxu1 %v14906_v13 }
 0x590   : > { %7922 = vmatprep.mubr.bf16.mxu0 %v14907_v14  ;;  %9852 = vmatprep.mubr.bf16.mxu1 %v14907_v14 }
 0x597   : > { %7923 = vmatmul.mubr.bf16.gmra.mrb[28].mxu0 %v14909_v15  ;;  %9853 = vmatmul.mubr.bf16.gmra.mrb[28].mxu1 %v14909_v15 }
 0x598   : > { %7932 = vmatprep.mubr.bf16.mxu0 %v14910_v16  ;;  %9862 = vmatprep.mubr.bf16.mxu1 %v14910_v16 }
 0x59f   : > { %7933 = vmatmul.mubr.bf16.gmra.mrb[32].mxu0 %v14912_v17  ;;  %9863 = vmatmul.mubr.bf16.gmra.mrb[32].mxu1 %v14912_v17 }
 0x5a0   : > { %7942 = vmatprep.mubr.bf16.mxu0 %v14913_v18  ;;  %9872 = vmatprep.mubr.bf16.mxu1 %v14913_v18 }
 0x5a7   : > { %7943 = vmatmul.mubr.bf16.gmra.mrb[36].mxu0 %v14915_v19  ;;  %9873 = vmatmul.mubr.bf16.gmra.mrb[36].mxu1 %v14915_v19 }
 0x5a8   : > { %7952 = vmatprep.mubr.bf16.mxu0 %v14916_v20  ;;  %9882 = vmatprep.mubr.bf16.mxu1 %v14916_v20 }
 0x5af   : > { %7953 = vmatmul.mubr.bf16.gmra.mrb[40].mxu0 %v14918_v21  ;;  %9883 = vmatmul.mubr.bf16.gmra.mrb[40].mxu1 %v14918_v21 }
 0x5b0   : > { %7962 = vmatprep.mubr.bf16.mxu0 %v14919_v22  ;;  %9892 = vmatprep.mubr.bf16.mxu1 %v14919_v22 }
 0x5b7   : > { %7963 = vmatmul.mubr.bf16.gmra.mrb[44].mxu0 %v14921_v23  ;;  %9893 = vmatmul.mubr.bf16.gmra.mrb[44].mxu1 %v14921_v23 }
 0x5b8   : > { %7972 = vmatprep.mubr.bf16.mxu0 %v14923_v24  ;;  %9902 = vmatprep.mubr.bf16.mxu1 %v14923_v24 }
 0x5bf   : > { %7973 = vmatmul.mubr.bf16.gmra.mrb[48].mxu0 %v14926_v25  ;;  %9903 = vmatmul.mubr.bf16.gmra.mrb[48].mxu1 %v14926_v25 }
 0x5c0   : > { %7982 = vmatprep.mubr.bf16.mxu0 %v14929_v26  ;;  %9912 = vmatprep.mubr.bf16.mxu1 %v14929_v26 }
 0x5c7   : > { %7983 = vmatmul.mubr.bf16.gmra.mrb[52].mxu0 %v14931_v27  ;;  %9913 = vmatmul.mubr.bf16.gmra.mrb[52].mxu1 %v14931_v27 }
 0x5c8   : > { %7992 = vmatprep.mubr.bf16.mxu0 %v14933_v28  ;;  %9922 = vmatprep.mubr.bf16.mxu1 %v14933_v28 }
 0x5cf   : > { %7993 = vmatmul.mubr.bf16.gmra.mrb[56].mxu0 %v14936_v29  ;;  %9923 = vmatmul.mubr.bf16.gmra.mrb[56].mxu1 %v14936_v29 }
 0x5d0   : > { %8002 = vmatprep.mubr.bf16.mxu0 %v14939_v30  ;;  %9932 = vmatprep.mubr.bf16.mxu1 %v14939_v30 }
 0x5d7   : > { %8003 = vmatmul.mubr.bf16.gmra.mrb[60].mxu0 %v14941_v31  ;;  %9933 = vmatmul.mubr.bf16.gmra.mrb[60].mxu1 %v14941_v31 }
 0x632   : > { %v7854_v43 = vpop.f32.mrb[0].mxu0  ;;  %v9784_v44 = vpop.f32.mrb[0].mxu1 }
 0x633   : > { %v12116_v45 = vadd.f32 %v7854_v43, %v15782_v39  ;;  %v12180_v46 = vadd.f32 %v9784_v44, %v15784_v40  ;;  %v7856_v47 = vpop.f32.mrb[1].mxu0  ;;  %v9786_v48 = vpop.f32.mrb[1].mxu1 }
 0x634   : > { %v12117_v49 = vadd.f32 %v7856_v47, %v15786_v41  ;;  %v12181_v50 = vadd.f32 %v9786_v48, %v15788_v42  ;;  %v7858_v51 = vpop.f32.mrb[2].mxu0  ;;  %v9788_v52 = vpop.f32.mrb[2].mxu1 }
 0x635   : > { %v12118_v53 = vadd.f32 %v7858_v51, %v15782_v39  ;;  %v12182_v54 = vadd.f32 %v9788_v52, %v15784_v40  ;;  %v7860_v55 = vpop.f32.mrb[3].mxu0  ;;  %v9790_v56 = vpop.f32.mrb[3].mxu1  ;;  %v9943_v59 = vmax.f32 %v12116_v45, 0.0  ;;  %v9945_v60 = vmax.f32 %v12180_v46, 0.0 }
 0x636   : > { %v12119_v57 = vadd.f32 %v7860_v55, %v15786_v41  ;;  %v12183_v58 = vadd.f32 %v9790_v56, %v15788_v42  ;;  %v9944_v63 = vmax.f32 %v12117_v49, 0.0  ;;  %v9946_v0 = vmax.f32 %v12181_v50, 0.0 }
 0x637   : > { %v9947_v61 = vmax.f32 %v12118_v53, 0.0  ;;  %v9949_v62 = vmax.f32 %v12182_v54, 0.0 }
 0x638   : > { %v9948_v1 = vmax.f32 %v12119_v57, 0.0  ;;  %v9950_v2 = vmax.f32 %v12183_v58, 0.0 }
 0x639   : > { %v10071_v3 = vpack.c.bf16 %v9947_v61, %v9943_v59  ;;  %v10073_v4 = vpack.c.bf16 %v9949_v62, %v9945_v60 }
 0x63a   : > { %v10072_v5 = vpack.c.bf16 %v9948_v1, %v9944_v63  ;;  %v10074_v6 = vpack.c.bf16 %v9950_v2, %v9946_v0  ;;  %v7864_v7 = vpop.f32.mrb[4].mxu0  ;;  %v9794_v8 = vpop.f32.mrb[4].mxu1 }
 0x63b   : > { %v12120_v9 = vadd.f32 %v7864_v7, %v15782_v39  ;;  %v12184_v10 = vadd.f32 %v9794_v8, %v15784_v40  ;;  %v7866_v11 = vpop.f32.mrb[5].mxu0  ;;  %v9796_v12 = vpop.f32.mrb[5].mxu1 }
 0x63c   : > { %v12121_v13 = vadd.f32 %v7866_v11, %v15786_v41  ;;  %v12185_v14 = vadd.f32 %v9796_v12, %v15788_v42  ;;  %v7868_v15 = vpop.f32.mrb[6].mxu0  ;;  %v9798_v16 = vpop.f32.mrb[6].mxu1  ;;  %10430 = vmatprep.mubr.bf16.mxu0 %v10072_v5  ;;  %10591 = vmatprep.mubr.bf16.mxu1 %v10074_v6 }
 0x63d   : > { %v12122_v17 = vadd.f32 %v7868_v15, %v15782_v39  ;;  %v12186_v18 = vadd.f32 %v9798_v16, %v15784_v40  ;;  %v7870_v19 = vpop.f32.mrb[7].mxu0  ;;  %v9800_v20 = vpop.f32.mrb[7].mxu1  ;;  %10431 = vmatmul.mubr.bf16.vlgmr.msra.gmra.mrb[64].mxu0 %v10071_v3  ;;  %10592 = vmatmul.mubr.bf16.vlgmr.msra.gmra.mrb[64].mxu1 %v10073_v4  ;;  %v9951_v23 = vmax.f32 %v12120_v9, 0.0  ;;  %v9953_v24 = vmax.f32 %v12184_v10, 0.0 }
 0x63e   : > { %v12123_v21 = vadd.f32 %v7870_v19, %v15786_v41  ;;  %v12187_v22 = vadd.f32 %v9800_v20, %v15788_v42  ;;  %v9952_v27 = vmax.f32 %v12121_v13, 0.0  ;;  %v9954_v28 = vmax.f32 %v12185_v14, 0.0 }
 0x63f   : > { %v9955_v25 = vmax.f32 %v12122_v17, 0.0  ;;  %v9957_v26 = vmax.f32 %v12186_v18, 0.0 }
 0x640   : > { %v9956_v29 = vmax.f32 %v12123_v21, 0.0  ;;  %v9958_v30 = vmax.f32 %v12187_v22, 0.0 }
 0x641   : > { %v10075_v31 = vpack.c.bf16 %v9955_v25, %v9951_v23  ;;  %v10077_v32 = vpack.c.bf16 %v9957_v26, %v9953_v24 }
 0x642   : > { %v10076_v33 = vpack.c.bf16 %v9956_v29, %v9952_v27  ;;  %v10078_v34 = vpack.c.bf16 %v9958_v30, %v9954_v28  ;;  %v7874_v35 = vpop.f32.mrb[8].mxu0  ;;  %v9804_v36 = vpop.f32.mrb[8].mxu1 }
 0x643   : > { %v12124_v37 = vadd.f32 %v7874_v35, %v15782_v39  ;;  %v12188_v38 = vadd.f32 %v9804_v36, %v15784_v40  ;;  %v7876_v43 = vpop.f32.mrb[9].mxu0  ;;  %v9806_v44 = vpop.f32.mrb[9].mxu1 }
 0x644   : > { %v12125_v45 = vadd.f32 %v7876_v43, %v15786_v41  ;;  %v12189_v46 = vadd.f32 %v9806_v44, %v15788_v42  ;;  %v7878_v47 = vpop.f32.mrb[10].mxu0  ;;  %v9808_v48 = vpop.f32.mrb[10].mxu1  ;;  %10438 = vmatprep.mubr.bf16.mxu0 %v10076_v33  ;;  %10599 = vmatprep.mubr.bf16.mxu1 %v10078_v34 }
 0x645   : > { %v12126_v49 = vadd.f32 %v7878_v47, %v15782_v39  ;;  %v12190_v50 = vadd.f32 %v9808_v48, %v15784_v40  ;;  %v7880_v51 = vpop.f32.mrb[11].mxu0  ;;  %v9810_v52 = vpop.f32.mrb[11].mxu1  ;;  %10439 = vmatmul.mubr.bf16.gmra.mrb[68].mxu0 %v10075_v31  ;;  %10600 = vmatmul.mubr.bf16.gmra.mrb[68].mxu1 %v10077_v32  ;;  %v9959_v55 = vmax.f32 %v12124_v37, 0.0  ;;  %v9961_v56 = vmax.f32 %v12188_v38, 0.0 }
 0x646   : > { %v12127_v53 = vadd.f32 %v7880_v51, %v15786_v41  ;;  %v12191_v54 = vadd.f32 %v9810_v52, %v15788_v42  ;;  %v9960_v59 = vmax.f32 %v12125_v45, 0.0  ;;  %v9962_v60 = vmax.f32 %v12189_v46, 0.0 }
 0x647   : > { %v9963_v57 = vmax.f32 %v12126_v49, 0.0  ;;  %v9965_v58 = vmax.f32 %v12190_v50, 0.0 }
 0x648   : > { %v9964_v61 = vmax.f32 %v12127_v53, 0.0  ;;  %v9966_v62 = vmax.f32 %v12191_v54, 0.0 }
 0x649   : > { %v10079_v63 = vpack.c.bf16 %v9963_v57, %v9959_v55  ;;  %v10081_v0 = vpack.c.bf16 %v9965_v58, %v9961_v56 }
 0x64a   : > { %v10080_v1 = vpack.c.bf16 %v9964_v61, %v9960_v59  ;;  %v10082_v2 = vpack.c.bf16 %v9966_v62, %v9962_v60  ;;  %v7884_v3 = vpop.f32.mrb[12].mxu0  ;;  %v9814_v4 = vpop.f32.mrb[12].mxu1 }
 0x64b   : > { %v12128_v5 = vadd.f32 %v7884_v3, %v15782_v39  ;;  %v12192_v6 = vadd.f32 %v9814_v4, %v15784_v40  ;;  %v7886_v7 = vpop.f32.mrb[13].mxu0  ;;  %v9816_v8 = vpop.f32.mrb[13].mxu1 }
 0x64c   : > { %v12129_v9 = vadd.f32 %v7886_v7, %v15786_v41  ;;  %v12193_v10 = vadd.f32 %v9816_v8, %v15788_v42  ;;  %v7888_v11 = vpop.f32.mrb[14].mxu0  ;;  %v9818_v12 = vpop.f32.mrb[14].mxu1  ;;  %10446 = vmatprep.mubr.bf16.mxu0 %v10080_v1  ;;  %10607 = vmatprep.mubr.bf16.mxu1 %v10082_v2 }
 0x64d   : > { %v12130_v13 = vadd.f32 %v7888_v11, %v15782_v39  ;;  %v12194_v14 = vadd.f32 %v9818_v12, %v15784_v40  ;;  %v7890_v15 = vpop.f32.mrb[15].mxu0  ;;  %v9820_v16 = vpop.f32.mrb[15].mxu1  ;;  %10447 = vmatmul.mubr.bf16.gmra.mrb[72].mxu0 %v10079_v63  ;;  %10608 = vmatmul.mubr.bf16.gmra.mrb[72].mxu1 %v10081_v0  ;;  %v9967_v19 = vmax.f32 %v12128_v5, 0.0  ;;  %v9969_v20 = vmax.f32 %v12192_v6, 0.0 }
 0x64e   : > { %v12131_v17 = vadd.f32 %v7890_v15, %v15786_v41  ;;  %v12195_v18 = vadd.f32 %v9820_v16, %v15788_v42  ;;  %v9968_v23 = vmax.f32 %v12129_v9, 0.0  ;;  %v9970_v24 = vmax.f32 %v12193_v10, 0.0 }
 0x64f   : > { %v9971_v21 = vmax.f32 %v12130_v13, 0.0  ;;  %v9973_v22 = vmax.f32 %v12194_v14, 0.0 }
 0x650   : > { %v9972_v25 = vmax.f32 %v12131_v17, 0.0  ;;  %v9974_v26 = vmax.f32 %v12195_v18, 0.0 }
 0x651   : > { %v10083_v27 = vpack.c.bf16 %v9971_v21, %v9967_v19  ;;  %v10085_v28 = vpack.c.bf16 %v9973_v22, %v9969_v20 }
 0x652   : > { %v10084_v29 = vpack.c.bf16 %v9972_v25, %v9968_v23  ;;  %v10086_v30 = vpack.c.bf16 %v9974_v26, %v9970_v24  ;;  %v7894_v31 = vpop.f32.mrb[16].mxu0  ;;  %v9824_v32 = vpop.f32.mrb[16].mxu1 }
 0x653   : > { %v12132_v33 = vadd.f32 %v7894_v31, %v15782_v39  ;;  %v12196_v34 = vadd.f32 %v9824_v32, %v15784_v40  ;;  %v7896_v35 = vpop.f32.mrb[17].mxu0  ;;  %v9826_v36 = vpop.f32.mrb[17].mxu1 }
 0x654   : > { %v12133_v37 = vadd.f32 %v7896_v35, %v15786_v41  ;;  %v12197_v38 = vadd.f32 %v9826_v36, %v15788_v42  ;;  %v7898_v43 = vpop.f32.mrb[18].mxu0  ;;  %v9828_v44 = vpop.f32.mrb[18].mxu1  ;;  %10454 = vmatprep.mubr.bf16.mxu0 %v10084_v29  ;;  %10615 = vmatprep.mubr.bf16.mxu1 %v10086_v30 }
 0x655   : > { %v12134_v45 = vadd.f32 %v7898_v43, %v15782_v39  ;;  %v12198_v46 = vadd.f32 %v9828_v44, %v15784_v40  ;;  %v7900_v47 = vpop.f32.mrb[19].mxu0  ;;  %v9830_v48 = vpop.f32.mrb[19].mxu1  ;;  %10455 = vmatmul.mubr.bf16.gmra.mrb[76].mxu0 %v10083_v27  ;;  %10616 = vmatmul.mubr.bf16.gmra.mrb[76].mxu1 %v10085_v28  ;;  %v9975_v51 = vmax.f32 %v12132_v33, 0.0  ;;  %v9977_v52 = vmax.f32 %v12196_v34, 0.0 }
 0x656   : > { %v12135_v49 = vadd.f32 %v7900_v47, %v15786_v41  ;;  %v12199_v50 = vadd.f32 %v9830_v48, %v15788_v42  ;;  %v9976_v55 = vmax.f32 %v12133_v37, 0.0  ;;  %v9978_v56 = vmax.f32 %v12197_v38, 0.0 }
 0x657   : > { %v9979_v53 = vmax.f32 %v12134_v45, 0.0  ;;  %v9981_v54 = vmax.f32 %v12198_v46, 0.0 }
 0x658   : > { %v9980_v57 = vmax.f32 %v12135_v49, 0.0  ;;  %v9982_v58 = vmax.f32 %v12199_v50, 0.0 }
 0x659   : > { %v10087_v59 = vpack.c.bf16 %v9979_v53, %v9975_v51  ;;  %v10089_v60 = vpack.c.bf16 %v9981_v54, %v9977_v52 }
 0x65a   : > { %v10088_v61 = vpack.c.bf16 %v9980_v57, %v9976_v55  ;;  %v10090_v62 = vpack.c.bf16 %v9982_v58, %v9978_v56  ;;  %v7904_v63 = vpop.f32.mrb[20].mxu0  ;;  %v9834_v0 = vpop.f32.mrb[20].mxu1 }
 0x65b   : > { %v12136_v1 = vadd.f32 %v7904_v63, %v15782_v39  ;;  %v12200_v2 = vadd.f32 %v9834_v0, %v15784_v40  ;;  %v7906_v3 = vpop.f32.mrb[21].mxu0  ;;  %v9836_v4 = vpop.f32.mrb[21].mxu1 }
 0x65c   : > { %v12137_v5 = vadd.f32 %v7906_v3, %v15786_v41  ;;  %v12201_v6 = vadd.f32 %v9836_v4, %v15788_v42  ;;  %v7908_v7 = vpop.f32.mrb[22].mxu0  ;;  %v9838_v8 = vpop.f32.mrb[22].mxu1  ;;  %10462 = vmatprep.mubr.bf16.mxu0 %v10088_v61  ;;  %10623 = vmatprep.mubr.bf16.mxu1 %v10090_v62 }
 0x65d   : > { %v12138_v9 = vadd.f32 %v7908_v7, %v15782_v39  ;;  %v12202_v10 = vadd.f32 %v9838_v8, %v15784_v40  ;;  %v7910_v11 = vpop.f32.mrb[23].mxu0  ;;  %v9840_v12 = vpop.f32.mrb[23].mxu1  ;;  %10463 = vmatmul.mubr.bf16.gmra.mrb[80].mxu0 %v10087_v59  ;;  %10624 = vmatmul.mubr.bf16.gmra.mrb[80].mxu1 %v10089_v60  ;;  %v9983_v15 = vmax.f32 %v12136_v1, 0.0  ;;  %v9985_v16 = vmax.f32 %v12200_v2, 0.0 }
 0x65e   : > { %v12139_v13 = vadd.f32 %v7910_v11, %v15786_v41  ;;  %v12203_v14 = vadd.f32 %v9840_v12, %v15788_v42  ;;  %v9984_v19 = vmax.f32 %v12137_v5, 0.0  ;;  %v9986_v20 = vmax.f32 %v12201_v6, 0.0 }
 0x65f   : > { %v9987_v17 = vmax.f32 %v12138_v9, 0.0  ;;  %v9989_v18 = vmax.f32 %v12202_v10, 0.0 }
 0x660   : > { %v9988_v21 = vmax.f32 %v12139_v13, 0.0  ;;  %v9990_v22 = vmax.f32 %v12203_v14, 0.0 }
 0x661   : > { %v10091_v23 = vpack.c.bf16 %v9987_v17, %v9983_v15  ;;  %v10093_v24 = vpack.c.bf16 %v9989_v18, %v9985_v16 }
 0x662   : > { %v10092_v25 = vpack.c.bf16 %v9988_v21, %v9984_v19  ;;  %v10094_v26 = vpack.c.bf16 %v9990_v22, %v9986_v20  ;;  %v7914_v27 = vpop.f32.mrb[24].mxu0  ;;  %v9844_v28 = vpop.f32.mrb[24].mxu1 }
 0x663   : > { %v12140_v29 = vadd.f32 %v7914_v27, %v15782_v39  ;;  %v12204_v30 = vadd.f32 %v9844_v28, %v15784_v40  ;;  %v7916_v31 = vpop.f32.mrb[25].mxu0  ;;  %v9846_v32 = vpop.f32.mrb[25].mxu1 }
 0x664   : > { %v12141_v33 = vadd.f32 %v7916_v31, %v15786_v41  ;;  %v12205_v34 = vadd.f32 %v9846_v32, %v15788_v42  ;;  %v7918_v35 = vpop.f32.mrb[26].mxu0  ;;  %v9848_v36 = vpop.f32.mrb[26].mxu1  ;;  %10470 = vmatprep.mubr.bf16.mxu0 %v10092_v25  ;;  %10631 = vmatprep.mubr.bf16.mxu1 %v10094_v26 }
 0x665   : > { %v12142_v37 = vadd.f32 %v7918_v35, %v15782_v39  ;;  %v12206_v38 = vadd.f32 %v9848_v36, %v15784_v40  ;;  %v7920_v43 = vpop.f32.mrb[27].mxu0  ;;  %v9850_v44 = vpop.f32.mrb[27].mxu1  ;;  %10471 = vmatmul.mubr.bf16.gmra.mrb[84].mxu0 %v10091_v23  ;;  %10632 = vmatmul.mubr.bf16.gmra.mrb[84].mxu1 %v10093_v24  ;;  %v9991_v47 = vmax.f32 %v12140_v29, 0.0  ;;  %v9993_v48 = vmax.f32 %v12204_v30, 0.0 }
 0x666   : > { %v12143_v45 = vadd.f32 %v7920_v43, %v15786_v41  ;;  %v12207_v46 = vadd.f32 %v9850_v44, %v15788_v42  ;;  %v9992_v51 = vmax.f32 %v12141_v33, 0.0  ;;  %v9994_v52 = vmax.f32 %v12205_v34, 0.0 }
 0x667   : > { %v9995_v49 = vmax.f32 %v12142_v37, 0.0  ;;  %v9997_v50 = vmax.f32 %v12206_v38, 0.0 }
 0x668   : > { %v9996_v53 = vmax.f32 %v12143_v45, 0.0  ;;  %v9998_v54 = vmax.f32 %v12207_v46, 0.0 }
 0x669   : > { %v10095_v55 = vpack.c.bf16 %v9995_v49, %v9991_v47  ;;  %v10097_v56 = vpack.c.bf16 %v9997_v50, %v9993_v48 }
 0x66a   : > { %v10096_v57 = vpack.c.bf16 %v9996_v53, %v9992_v51  ;;  %v10098_v58 = vpack.c.bf16 %v9998_v54, %v9994_v52  ;;  %v7924_v59 = vpop.f32.mrb[28].mxu0  ;;  %v9854_v60 = vpop.f32.mrb[28].mxu1 }
 0x66b   : > { %v12144_v61 = vadd.f32 %v7924_v59, %v15782_v39  ;;  %v12208_v62 = vadd.f32 %v9854_v60, %v15784_v40  ;;  %v7926_v63 = vpop.f32.mrb[29].mxu0  ;;  %v9856_v0 = vpop.f32.mrb[29].mxu1 }
 0x66c   : > { %v12145_v1 = vadd.f32 %v7926_v63, %v15786_v41  ;;  %v12209_v2 = vadd.f32 %v9856_v0, %v15788_v42  ;;  %v7928_v3 = vpop.f32.mrb[30].mxu0  ;;  %v9858_v4 = vpop.f32.mrb[30].mxu1  ;;  %10478 = vmatprep.mubr.bf16.mxu0 %v10096_v57  ;;  %10639 = vmatprep.mubr.bf16.mxu1 %v10098_v58 }
 0x66d   : > { %v12146_v5 = vadd.f32 %v7928_v3, %v15782_v39  ;;  %v12210_v6 = vadd.f32 %v9858_v4, %v15784_v40  ;;  %v7930_v7 = vpop.f32.mrb[31].mxu0  ;;  %v9860_v8 = vpop.f32.mrb[31].mxu1  ;;  %10479 = vmatmul.mubr.bf16.gmra.mrb[88].mxu0 %v10095_v55  ;;  %10640 = vmatmul.mubr.bf16.gmra.mrb[88].mxu1 %v10097_v56  ;;  %v9999_v11 = vmax.f32 %v12144_v61, 0.0  ;;  %v10001_v12 = vmax.f32 %v12208_v62, 0.0 }
 0x66e   : > { %v12147_v9 = vadd.f32 %v7930_v7, %v15786_v41  ;;  %v12211_v10 = vadd.f32 %v9860_v8, %v15788_v42  ;;  %v10000_v15 = vmax.f32 %v12145_v1, 0.0  ;;  %v10002_v16 = vmax.f32 %v12209_v2, 0.0 }
 0x66f   : > { %v10003_v13 = vmax.f32 %v12146_v5, 0.0  ;;  %v10005_v14 = vmax.f32 %v12210_v6, 0.0 }
 0x670   : > { %v10004_v17 = vmax.f32 %v12147_v9, 0.0  ;;  %v10006_v18 = vmax.f32 %v12211_v10, 0.0 }
 0x671   : > { %v10099_v19 = vpack.c.bf16 %v10003_v13, %v9999_v11  ;;  %v10101_v20 = vpack.c.bf16 %v10005_v14, %v10001_v12 }
 0x672   : > { %v10100_v21 = vpack.c.bf16 %v10004_v17, %v10000_v15  ;;  %v10102_v22 = vpack.c.bf16 %v10006_v18, %v10002_v16  ;;  %v7934_v23 = vpop.f32.mrb[32].mxu0  ;;  %v9864_v24 = vpop.f32.mrb[32].mxu1 }
 0x673   : > { %v12148_v25 = vadd.f32 %v7934_v23, %v15782_v39  ;;  %v12212_v26 = vadd.f32 %v9864_v24, %v15784_v40  ;;  %v7936_v27 = vpop.f32.mrb[33].mxu0  ;;  %v9866_v28 = vpop.f32.mrb[33].mxu1 }
 0x674   : > { %v12149_v29 = vadd.f32 %v7936_v27, %v15786_v41  ;;  %v12213_v30 = vadd.f32 %v9866_v28, %v15788_v42  ;;  %v7938_v31 = vpop.f32.mrb[34].mxu0  ;;  %v9868_v32 = vpop.f32.mrb[34].mxu1  ;;  %10486 = vmatprep.mubr.bf16.mxu0 %v10100_v21  ;;  %10647 = vmatprep.mubr.bf16.mxu1 %v10102_v22 }
 0x675   : > { %v12150_v33 = vadd.f32 %v7938_v31, %v15782_v39  ;;  %v12214_v34 = vadd.f32 %v9868_v32, %v15784_v40  ;;  %v7940_v35 = vpop.f32.mrb[35].mxu0  ;;  %v9870_v36 = vpop.f32.mrb[35].mxu1  ;;  %10487 = vmatmul.mubr.bf16.gmra.mrb[92].mxu0 %v10099_v19  ;;  %10648 = vmatmul.mubr.bf16.gmra.mrb[92].mxu1 %v10101_v20  ;;  %v10007_v43 = vmax.f32 %v12148_v25, 0.0  ;;  %v10009_v44 = vmax.f32 %v12212_v26, 0.0 }
 0x676   : > { %v12151_v37 = vadd.f32 %v7940_v35, %v15786_v41  ;;  %v12215_v38 = vadd.f32 %v9870_v36, %v15788_v42  ;;  %v10008_v47 = vmax.f32 %v12149_v29, 0.0  ;;  %v10010_v48 = vmax.f32 %v12213_v30, 0.0 }
 0x677   : > { %v10011_v45 = vmax.f32 %v12150_v33, 0.0  ;;  %v10013_v46 = vmax.f32 %v12214_v34, 0.0 }
 0x678   : > { %v10012_v49 = vmax.f32 %v12151_v37, 0.0  ;;  %v10014_v50 = vmax.f32 %v12215_v38, 0.0 }
 0x679   : > { %v10103_v51 = vpack.c.bf16 %v10011_v45, %v10007_v43  ;;  %v10105_v52 = vpack.c.bf16 %v10013_v46, %v10009_v44 }
 0x67a   : > { %v10104_v53 = vpack.c.bf16 %v10012_v49, %v10008_v47  ;;  %v10106_v54 = vpack.c.bf16 %v10014_v50, %v10010_v48  ;;  %v7944_v55 = vpop.f32.mrb[36].mxu0  ;;  %v9874_v56 = vpop.f32.mrb[36].mxu1 }
 0x67b   : > { %v12152_v57 = vadd.f32 %v7944_v55, %v15782_v39  ;;  %v12216_v58 = vadd.f32 %v9874_v56, %v15784_v40  ;;  %v7946_v59 = vpop.f32.mrb[37].mxu0  ;;  %v9876_v60 = vpop.f32.mrb[37].mxu1 }
 0x67c   : > { %v12153_v61 = vadd.f32 %v7946_v59, %v15786_v41  ;;  %v12217_v62 = vadd.f32 %v9876_v60, %v15788_v42  ;;  %v7948_v63 = vpop.f32.mrb[38].mxu0  ;;  %v9878_v0 = vpop.f32.mrb[38].mxu1  ;;  %10494 = vmatprep.mubr.bf16.mxu0 %v10104_v53  ;;  %10655 = vmatprep.mubr.bf16.mxu1 %v10106_v54 }
 0x67d   : > { %v12154_v1 = vadd.f32 %v7948_v63, %v15782_v39  ;;  %v12218_v2 = vadd.f32 %v9878_v0, %v15784_v40  ;;  %v7950_v3 = vpop.f32.mrb[39].mxu0  ;;  %v9880_v4 = vpop.f32.mrb[39].mxu1  ;;  %10495 = vmatmul.mubr.bf16.gmra.mrb[96].mxu0 %v10103_v51  ;;  %10656 = vmatmul.mubr.bf16.gmra.mrb[96].mxu1 %v10105_v52  ;;  %v10015_v7 = vmax.f32 %v12152_v57, 0.0  ;;  %v10017_v8 = vmax.f32 %v12216_v58, 0.0 }
 0x67e   : > { %v12155_v5 = vadd.f32 %v7950_v3, %v15786_v41  ;;  %v12219_v6 = vadd.f32 %v9880_v4, %v15788_v42  ;;  %v10016_v11 = vmax.f32 %v12153_v61, 0.0  ;;  %v10018_v12 = vmax.f32 %v12217_v62, 0.0 }
 0x67f   : > { %v10019_v9 = vmax.f32 %v12154_v1, 0.0  ;;  %v10021_v10 = vmax.f32 %v12218_v2, 0.0 }
 0x680   : > { %v10020_v13 = vmax.f32 %v12155_v5, 0.0  ;;  %v10022_v14 = vmax.f32 %v12219_v6, 0.0 }
 0x681   : > { %v10107_v15 = vpack.c.bf16 %v10019_v9, %v10015_v7  ;;  %v10109_v16 = vpack.c.bf16 %v10021_v10, %v10017_v8 }
 0x682   : > { %v10108_v17 = vpack.c.bf16 %v10020_v13, %v10016_v11  ;;  %v10110_v18 = vpack.c.bf16 %v10022_v14, %v10018_v12  ;;  %v7954_v19 = vpop.f32.mrb[40].mxu0  ;;  %v9884_v20 = vpop.f32.mrb[40].mxu1 }
 0x683   : > { %v12156_v21 = vadd.f32 %v7954_v19, %v15782_v39  ;;  %v12220_v22 = vadd.f32 %v9884_v20, %v15784_v40  ;;  %v7956_v23 = vpop.f32.mrb[41].mxu0  ;;  %v9886_v24 = vpop.f32.mrb[41].mxu1 }
 0x684   : > { %v12157_v25 = vadd.f32 %v7956_v23, %v15786_v41  ;;  %v12221_v26 = vadd.f32 %v9886_v24, %v15788_v42  ;;  %v7958_v27 = vpop.f32.mrb[42].mxu0  ;;  %v9888_v28 = vpop.f32.mrb[42].mxu1  ;;  %10502 = vmatprep.mubr.bf16.mxu0 %v10108_v17  ;;  %10663 = vmatprep.mubr.bf16.mxu1 %v10110_v18 }
 0x685   : > { %v12158_v29 = vadd.f32 %v7958_v27, %v15782_v39  ;;  %v12222_v30 = vadd.f32 %v9888_v28, %v15784_v40  ;;  %v7960_v31 = vpop.f32.mrb[43].mxu0  ;;  %v9890_v32 = vpop.f32.mrb[43].mxu1  ;;  %10503 = vmatmul.mubr.bf16.gmra.mrb[100].mxu0 %v10107_v15  ;;  %10664 = vmatmul.mubr.bf16.gmra.mrb[100].mxu1 %v10109_v16  ;;  %v10023_v35 = vmax.f32 %v12156_v21, 0.0  ;;  %v10025_v36 = vmax.f32 %v12220_v22, 0.0 }
 0x686   : > { %v12159_v33 = vadd.f32 %v7960_v31, %v15786_v41  ;;  %v12223_v34 = vadd.f32 %v9890_v32, %v15788_v42  ;;  %v10024_v43 = vmax.f32 %v12157_v25, 0.0  ;;  %v10026_v44 = vmax.f32 %v12221_v26, 0.0 }
 0x687   : > { %v10027_v37 = vmax.f32 %v12158_v29, 0.0  ;;  %v10029_v38 = vmax.f32 %v12222_v30, 0.0 }
 0x688   : > { %v10028_v45 = vmax.f32 %v12159_v33, 0.0  ;;  %v10030_v46 = vmax.f32 %v12223_v34, 0.0 }
 0x689   : > { %v10111_v47 = vpack.c.bf16 %v10027_v37, %v10023_v35  ;;  %v10113_v48 = vpack.c.bf16 %v10029_v38, %v10025_v36 }
 0x68a   : > { %v10112_v49 = vpack.c.bf16 %v10028_v45, %v10024_v43  ;;  %v10114_v50 = vpack.c.bf16 %v10030_v46, %v10026_v44  ;;  %v7964_v51 = vpop.f32.mrb[44].mxu0  ;;  %v9894_v52 = vpop.f32.mrb[44].mxu1 }
 0x68b   : > { %v12160_v53 = vadd.f32 %v7964_v51, %v15782_v39  ;;  %v12224_v54 = vadd.f32 %v9894_v52, %v15784_v40  ;;  %v7966_v55 = vpop.f32.mrb[45].mxu0  ;;  %v9896_v56 = vpop.f32.mrb[45].mxu1 }
 0x68c   : > { %v12161_v57 = vadd.f32 %v7966_v55, %v15786_v41  ;;  %v12225_v58 = vadd.f32 %v9896_v56, %v15788_v42  ;;  %v7968_v59 = vpop.f32.mrb[46].mxu0  ;;  %v9898_v60 = vpop.f32.mrb[46].mxu1  ;;  %10510 = vmatprep.mubr.bf16.mxu0 %v10112_v49  ;;  %10671 = vmatprep.mubr.bf16.mxu1 %v10114_v50 }
 0x68d   : > { %v12162_v61 = vadd.f32 %v7968_v59, %v15782_v39  ;;  %v12226_v62 = vadd.f32 %v9898_v60, %v15784_v40  ;;  %v7970_v63 = vpop.f32.mrb[47].mxu0  ;;  %v9900_v0 = vpop.f32.mrb[47].mxu1  ;;  %10511 = vmatmul.mubr.bf16.gmra.mrb[104].mxu0 %v10111_v47  ;;  %10672 = vmatmul.mubr.bf16.gmra.mrb[104].mxu1 %v10113_v48  ;;  %v10031_v3 = vmax.f32 %v12160_v53, 0.0  ;;  %v10033_v4 = vmax.f32 %v12224_v54, 0.0 }
 0x68e   : > { %v12163_v1 = vadd.f32 %v7970_v63, %v15786_v41  ;;  %v12227_v2 = vadd.f32 %v9900_v0, %v15788_v42  ;;  %v10032_v7 = vmax.f32 %v12161_v57, 0.0  ;;  %v10034_v8 = vmax.f32 %v12225_v58, 0.0 }
 0x68f   : > { %v10035_v5 = vmax.f32 %v12162_v61, 0.0  ;;  %v10037_v6 = vmax.f32 %v12226_v62, 0.0 }
 0x690   : > { %v10036_v9 = vmax.f32 %v12163_v1, 0.0  ;;  %v10038_v10 = vmax.f32 %v12227_v2, 0.0 }
 0x691   : > { %v10115_v11 = vpack.c.bf16 %v10035_v5, %v10031_v3  ;;  %v10117_v12 = vpack.c.bf16 %v10037_v6, %v10033_v4 }
 0x692   : > { %v10116_v13 = vpack.c.bf16 %v10036_v9, %v10032_v7  ;;  %v10118_v14 = vpack.c.bf16 %v10038_v10, %v10034_v8  ;;  %v7974_v15 = vpop.f32.mrb[48].mxu0  ;;  %v9904_v16 = vpop.f32.mrb[48].mxu1 }
 0x693   : > { %v12164_v17 = vadd.f32 %v7974_v15, %v15782_v39  ;;  %v12228_v18 = vadd.f32 %v9904_v16, %v15784_v40  ;;  %v7976_v19 = vpop.f32.mrb[49].mxu0  ;;  %v9906_v20 = vpop.f32.mrb[49].mxu1 }
 0x694   : > { %v12165_v21 = vadd.f32 %v7976_v19, %v15786_v41  ;;  %v12229_v22 = vadd.f32 %v9906_v20, %v15788_v42  ;;  %v7978_v23 = vpop.f32.mrb[50].mxu0  ;;  %v9908_v24 = vpop.f32.mrb[50].mxu1  ;;  %10518 = vmatprep.mubr.bf16.mxu0 %v10116_v13  ;;  %10679 = vmatprep.mubr.bf16.mxu1 %v10118_v14 }
 0x695   : > { %v12166_v25 = vadd.f32 %v7978_v23, %v15782_v39  ;;  %v12230_v26 = vadd.f32 %v9908_v24, %v15784_v40  ;;  %v7980_v27 = vpop.f32.mrb[51].mxu0  ;;  %v9910_v28 = vpop.f32.mrb[51].mxu1  ;;  %10519 = vmatmul.mubr.bf16.gmra.mrb[108].mxu0 %v10115_v11  ;;  %10680 = vmatmul.mubr.bf16.gmra.mrb[108].mxu1 %v10117_v12  ;;  %v10039_v31 = vmax.f32 %v12164_v17, 0.0  ;;  %v10041_v32 = vmax.f32 %v12228_v18, 0.0 }
 0x696   : > { %v12167_v29 = vadd.f32 %v7980_v27, %v15786_v41  ;;  %v12231_v30 = vadd.f32 %v9910_v28, %v15788_v42  ;;  %v10040_v35 = vmax.f32 %v12165_v21, 0.0  ;;  %v10042_v36 = vmax.f32 %v12229_v22, 0.0 }
 0x697   : > { %v10043_v33 = vmax.f32 %v12166_v25, 0.0  ;;  %v10045_v34 = vmax.f32 %v12230_v26, 0.0 }
 0x698   : > { %v10044_v37 = vmax.f32 %v12167_v29, 0.0  ;;  %v10046_v38 = vmax.f32 %v12231_v30, 0.0 }
 0x699   : > { %v10119_v43 = vpack.c.bf16 %v10043_v33, %v10039_v31  ;;  %v10121_v44 = vpack.c.bf16 %v10045_v34, %v10041_v32 }
 0x69a   : > { %v10120_v45 = vpack.c.bf16 %v10044_v37, %v10040_v35  ;;  %v10122_v46 = vpack.c.bf16 %v10046_v38, %v10042_v36  ;;  %v7984_v47 = vpop.f32.mrb[52].mxu0  ;;  %v9914_v48 = vpop.f32.mrb[52].mxu1 }
 0x69b   : > { %v12168_v49 = vadd.f32 %v7984_v47, %v15782_v39  ;;  %v12232_v50 = vadd.f32 %v9914_v48, %v15784_v40  ;;  %v7986_v51 = vpop.f32.mrb[53].mxu0  ;;  %v9916_v52 = vpop.f32.mrb[53].mxu1 }
 0x69c   : > { %v12169_v53 = vadd.f32 %v7986_v51, %v15786_v41  ;;  %v12233_v54 = vadd.f32 %v9916_v52, %v15788_v42  ;;  %v7988_v55 = vpop.f32.mrb[54].mxu0  ;;  %v9918_v56 = vpop.f32.mrb[54].mxu1  ;;  %10526 = vmatprep.mubr.bf16.mxu0 %v10120_v45  ;;  %10687 = vmatprep.mubr.bf16.mxu1 %v10122_v46 }
 0x69d   : > { %v12170_v57 = vadd.f32 %v7988_v55, %v15782_v39  ;;  %v12234_v58 = vadd.f32 %v9918_v56, %v15784_v40  ;;  %v7990_v59 = vpop.f32.mrb[55].mxu0  ;;  %v9920_v60 = vpop.f32.mrb[55].mxu1  ;;  %10527 = vmatmul.mubr.bf16.gmra.mrb[112].mxu0 %v10119_v43  ;;  %10688 = vmatmul.mubr.bf16.gmra.mrb[112].mxu1 %v10121_v44  ;;  %v10047_v63 = vmax.f32 %v12168_v49, 0.0  ;;  %v10049_v0 = vmax.f32 %v12232_v50, 0.0 }
 0x69e   : > { %v12171_v61 = vadd.f32 %v7990_v59, %v15786_v41  ;;  %v12235_v62 = vadd.f32 %v9920_v60, %v15788_v42  ;;  %v10048_v3 = vmax.f32 %v12169_v53, 0.0  ;;  %v10050_v4 = vmax.f32 %v12233_v54, 0.0 }
 0x69f   : > { %v10051_v1 = vmax.f32 %v12170_v57, 0.0  ;;  %v10053_v2 = vmax.f32 %v12234_v58, 0.0 }
 0x6a0   : > { %v10052_v5 = vmax.f32 %v12171_v61, 0.0  ;;  %v10054_v6 = vmax.f32 %v12235_v62, 0.0 }
 0x6a1   : > { %v10123_v7 = vpack.c.bf16 %v10051_v1, %v10047_v63  ;;  %v10125_v8 = vpack.c.bf16 %v10053_v2, %v10049_v0 }
 0x6a2   : > { %v10124_v9 = vpack.c.bf16 %v10052_v5, %v10048_v3  ;;  %v10126_v10 = vpack.c.bf16 %v10054_v6, %v10050_v4  ;;  %v7994_v11 = vpop.f32.mrb[56].mxu0  ;;  %v9924_v12 = vpop.f32.mrb[56].mxu1 }
 0x6a3   : > { %v12172_v13 = vadd.f32 %v7994_v11, %v15782_v39  ;;  %v12236_v14 = vadd.f32 %v9924_v12, %v15784_v40  ;;  %v7996_v15 = vpop.f32.mrb[57].mxu0  ;;  %v9926_v16 = vpop.f32.mrb[57].mxu1 }
 0x6a4   : > { %v12173_v17 = vadd.f32 %v7996_v15, %v15786_v41  ;;  %v12237_v18 = vadd.f32 %v9926_v16, %v15788_v42  ;;  %v7998_v19 = vpop.f32.mrb[58].mxu0  ;;  %v9928_v20 = vpop.f32.mrb[58].mxu1  ;;  %10534 = vmatprep.mubr.bf16.mxu0 %v10124_v9  ;;  %10695 = vmatprep.mubr.bf16.mxu1 %v10126_v10 }
 0x6a5   : > { %v12174_v21 = vadd.f32 %v7998_v19, %v15782_v39  ;;  %v12238_v22 = vadd.f32 %v9928_v20, %v15784_v40  ;;  %v8000_v23 = vpop.f32.mrb[59].mxu0  ;;  %v9930_v24 = vpop.f32.mrb[59].mxu1  ;;  %10535 = vmatmul.mubr.bf16.gmra.mrb[116].mxu0 %v10123_v7  ;;  %10696 = vmatmul.mubr.bf16.gmra.mrb[116].mxu1 %v10125_v8  ;;  %v10055_v27 = vmax.f32 %v12172_v13, 0.0  ;;  %v10057_v28 = vmax.f32 %v12236_v14, 0.0 }
 0x6a6   : > { %v12175_v25 = vadd.f32 %v8000_v23, %v15786_v41  ;;  %v12239_v26 = vadd.f32 %v9930_v24, %v15788_v42  ;;  %v10056_v31 = vmax.f32 %v12173_v17, 0.0  ;;  %v10058_v32 = vmax.f32 %v12237_v18, 0.0 }
 0x6a7   : > { %v10059_v29 = vmax.f32 %v12174_v21, 0.0  ;;  %v10061_v30 = vmax.f32 %v12238_v22, 0.0 }
 0x6a8   : > { %v10060_v33 = vmax.f32 %v12175_v25, 0.0  ;;  %v10062_v34 = vmax.f32 %v12239_v26, 0.0 }
 0x6a9   : > { %v10127_v35 = vpack.c.bf16 %v10059_v29, %v10055_v27  ;;  %v10129_v36 = vpack.c.bf16 %v10061_v30, %v10057_v28 }
 0x6aa   : > { %v10128_v37 = vpack.c.bf16 %v10060_v33, %v10056_v31  ;;  %v10130_v38 = vpack.c.bf16 %v10062_v34, %v10058_v32  ;;  %v8004_v43 = vpop.f32.mrb[60].mxu0  ;;  %v9934_v44 = vpop.f32.mrb[60].mxu1 }
 0x6ab   : > { %v12176_v45 = vadd.f32 %v8004_v43, %v15782_v39  ;;  %v12240_v46 = vadd.f32 %v9934_v44, %v15784_v40  ;;  %v8006_v47 = vpop.f32.mrb[61].mxu0  ;;  %v9936_v48 = vpop.f32.mrb[61].mxu1 }
 0x6ac   : > { %v12177_v49 = vadd.f32 %v8006_v47, %v15786_v41  ;;  %v12241_v50 = vadd.f32 %v9936_v48, %v15788_v42  ;;  %v8008_v51 = vpop.f32.mrb[62].mxu0  ;;  %v9938_v52 = vpop.f32.mrb[62].mxu1  ;;  %10542 = vmatprep.mubr.bf16.mxu0 %v10128_v37  ;;  %10703 = vmatprep.mubr.bf16.mxu1 %v10130_v38 }
 0x6ad   : > { %v12178_v53 = vadd.f32 %v8008_v51, %v15782_v39  ;;  %v12242_v54 = vadd.f32 %v9938_v52, %v15784_v40  ;;  %v8010_v55 = vpop.f32.mrb[63].mxu0  ;;  %v9940_v56 = vpop.f32.mrb[63].mxu1  ;;  %10543 = vmatmul.mubr.bf16.gmra.mrb[120].mxu0 %v10127_v35  ;;  %10704 = vmatmul.mubr.bf16.gmra.mrb[120].mxu1 %v10129_v36  ;;  %v10063_v59 = vmax.f32 %v12176_v45, 0.0  ;;  %v10065_v60 = vmax.f32 %v12240_v46, 0.0 }
 0x6ae   : > { %v12179_v57 = vadd.f32 %v8010_v55, %v15786_v41  ;;  %v12243_v58 = vadd.f32 %v9940_v56, %v15788_v42  ;;  %v10064_v63 = vmax.f32 %v12177_v49, 0.0  ;;  %v10066_v0 = vmax.f32 %v12241_v50, 0.0  ;;  %v15918_v42 = vld [vmem:[#allocation10] ss:$0 sm:$0xff] }
 0x6af   : > { %v10067_v61 = vmax.f32 %v12178_v53, 0.0  ;;  %v10069_v62 = vmax.f32 %v12242_v54, 0.0 }
 0x6b0   : > { %v10068_v1 = vmax.f32 %v12179_v57, 0.0  ;;  %v10070_v2 = vmax.f32 %v12243_v58, 0.0 }
 0x6b1   : > { %v10131_v39 = vpack.c.bf16 %v10067_v61, %v10063_v59  ;;  %v10133_v3 = vpack.c.bf16 %v10069_v62, %v10065_v60 }
 0x6b2   : > { %v10132_v40 = vpack.c.bf16 %v10068_v1, %v10064_v63  ;;  %v10134_v4 = vpack.c.bf16 %v10070_v2, %v10066_v0 }
 0x6b4   : > { %10550 = vmatprep.mubr.bf16.mxu0 %v10132_v40  ;;  %10711 = vmatprep.mubr.bf16.mxu1 %v10134_v4 }
 0x6b5   : > { %10551 = vmatmul.mubr.bf16.gmra.mrb[124].mxu0 %v10131_v39  ;;  %10712 = vmatmul.mubr.bf16.gmra.mrb[124].mxu1 %v10133_v3 }
 0x710   : > { %v11908_v41 = vpop.f32.mrb[64].mxu0  ;;  %v12020_v5 = vpop.f32.mrb[64].mxu1 }
 0x711   : > { %v11909_v6 = vpop.f32.mrb[65].mxu0  ;;  %v12021_v7 = vpop.f32.mrb[65].mxu1 }
 0x712   : > { %v11910_v8 = vadd.f32 %v11909_v6, %v11908_v41  ;;  %v12022_v9 = vadd.f32 %v12021_v7, %v12020_v5  ;;  %v11911_v10 = vpop.f32.mrb[66].mxu0  ;;  %v12023_v11 = vpop.f32.mrb[66].mxu1 }
 0x713   : > { %v11912_v12 = vpop.f32.mrb[67].mxu0  ;;  %v12024_v13 = vpop.f32.mrb[67].mxu1 }
 0x714   : > { %v10433_v14 = vadd.f32 %v11910_v8, %v15918_v42  ;;  %v11913_v15 = vadd.f32 %v11912_v12, %v11911_v10  ;;  %v12025_v16 = vadd.f32 %v12024_v13, %v12023_v11 }
 0x716   : > { %v10594_v17 = vadd.f32 %v12022_v9, %v10433_v14  ;;  %v10436_v18 = vadd.f32 %v11913_v15, %v15918_v42 }
 0x718   : > { %10720 = vst [vmem:[%s15923_s26] sm:$0xff] %v10594_v17  ;;  %v10597_v19 = vadd.f32 %v12025_v16, %v10436_v18  ;;  %v11914_v20 = vpop.f32.mrb[68].mxu0  ;;  %v12026_v21 = vpop.f32.mrb[68].mxu1 }
 0x719   : > { %v11915_v22 = vpop.f32.mrb[69].mxu0  ;;  %v12027_v23 = vpop.f32.mrb[69].mxu1 }
 0x71a   : > { %10721 = vst [vmem:[%s15923_s26 + $0x8] sm:$0xff] %v10597_v19  ;;  %v11916_v24 = vadd.f32 %v11915_v22, %v11914_v20  ;;  %v12028_v25 = vadd.f32 %v12027_v23, %v12026_v21  ;;  %v11917_v26 = vpop.f32.mrb[70].mxu0  ;;  %v12029_v27 = vpop.f32.mrb[70].mxu1 }
 0x71b   : > { %v11918_v28 = vpop.f32.mrb[71].mxu0  ;;  %v12030_v29 = vpop.f32.mrb[71].mxu1 }
 0x71c   : > { %v10441_v30 = vadd.f32 %v11916_v24, %v15918_v42  ;;  %v11919_v31 = vadd.f32 %v11918_v28, %v11917_v26  ;;  %v12031_v32 = vadd.f32 %v12030_v29, %v12029_v27 }
 0x71e   : > { %v10602_v33 = vadd.f32 %v12028_v25, %v10441_v30  ;;  %v10444_v34 = vadd.f32 %v11919_v31, %v15918_v42 }
 0x720   : > { %10722 = vst [vmem:[%s15923_s26 + $0x10] sm:$0xff] %v10602_v33  ;;  %v10605_v35 = vadd.f32 %v12031_v32, %v10444_v34  ;;  %v11920_v36 = vpop.f32.mrb[72].mxu0  ;;  %v12032_v37 = vpop.f32.mrb[72].mxu1 }
 0x721   : > { %v11921_v38 = vpop.f32.mrb[73].mxu0  ;;  %v12033_v43 = vpop.f32.mrb[73].mxu1 }
 0x722   : > { %10723 = vst [vmem:[%s15923_s26 + $0x18] sm:$0xff] %v10605_v35  ;;  %v11922_v44 = vadd.f32 %v11921_v38, %v11920_v36  ;;  %v12034_v45 = vadd.f32 %v12033_v43, %v12032_v37  ;;  %v11923_v46 = vpop.f32.mrb[74].mxu0  ;;  %v12035_v47 = vpop.f32.mrb[74].mxu1 }
 0x723   : > { %v11924_v48 = vpop.f32.mrb[75].mxu0  ;;  %v12036_v49 = vpop.f32.mrb[75].mxu1 }
 0x724   : > { %v10449_v50 = vadd.f32 %v11922_v44, %v15918_v42  ;;  %v11925_v51 = vadd.f32 %v11924_v48, %v11923_v46  ;;  %v12037_v52 = vadd.f32 %v12036_v49, %v12035_v47 }
 0x726   : > { %v10610_v53 = vadd.f32 %v12034_v45, %v10449_v50  ;;  %v10452_v54 = vadd.f32 %v11925_v51, %v15918_v42 }
 0x728   : > { %10724 = vst [vmem:[%s15923_s26 + $0x20] sm:$0xff] %v10610_v53  ;;  %v10613_v55 = vadd.f32 %v12037_v52, %v10452_v54  ;;  %v11926_v56 = vpop.f32.mrb[76].mxu0  ;;  %v12038_v57 = vpop.f32.mrb[76].mxu1 }
 0x729   : > { %v11927_v58 = vpop.f32.mrb[77].mxu0  ;;  %v12039_v59 = vpop.f32.mrb[77].mxu1 }
 0x72a   : > { %10725 = vst [vmem:[%s15923_s26 + $0x28] sm:$0xff] %v10613_v55  ;;  %v11928_v60 = vadd.f32 %v11927_v58, %v11926_v56  ;;  %v12040_v61 = vadd.f32 %v12039_v59, %v12038_v57  ;;  %v11929_v62 = vpop.f32.mrb[78].mxu0  ;;  %v12041_v63 = vpop.f32.mrb[78].mxu1 }
 0x72b   : > { %v11930_v0 = vpop.f32.mrb[79].mxu0  ;;  %v12042_v1 = vpop.f32.mrb[79].mxu1 }
 0x72c   : > { %v10457_v2 = vadd.f32 %v11928_v60, %v15918_v42  ;;  %v11931_v39 = vadd.f32 %v11930_v0, %v11929_v62  ;;  %v12043_v3 = vadd.f32 %v12042_v1, %v12041_v63 }
 0x72e   : > { %v10618_v40 = vadd.f32 %v12040_v61, %v10457_v2  ;;  %v10460_v4 = vadd.f32 %v11931_v39, %v15918_v42 }
 0x730   : > { %10726 = vst [vmem:[%s15923_s26 + $0x30] sm:$0xff] %v10618_v40  ;;  %v10621_v41 = vadd.f32 %v12043_v3, %v10460_v4  ;;  %v11932_v5 = vpop.f32.mrb[80].mxu0  ;;  %v12044_v6 = vpop.f32.mrb[80].mxu1 }
 0x731   : > { %v11933_v7 = vpop.f32.mrb[81].mxu0  ;;  %v12045_v8 = vpop.f32.mrb[81].mxu1 }
 0x732   : > { %10727 = vst [vmem:[%s15923_s26 + $0x38] sm:$0xff] %v10621_v41  ;;  %v11934_v9 = vadd.f32 %v11933_v7, %v11932_v5  ;;  %v12046_v10 = vadd.f32 %v12045_v8, %v12044_v6  ;;  %v11935_v11 = vpop.f32.mrb[82].mxu0  ;;  %v12047_v12 = vpop.f32.mrb[82].mxu1 }
 0x733   : > { %v11936_v13 = vpop.f32.mrb[83].mxu0  ;;  %v12048_v14 = vpop.f32.mrb[83].mxu1 }
 0x734   : > { %v10465_v15 = vadd.f32 %v11934_v9, %v15918_v42  ;;  %v11937_v16 = vadd.f32 %v11936_v13, %v11935_v11  ;;  %v12049_v17 = vadd.f32 %v12048_v14, %v12047_v12 }
 0x736   : > { %v10626_v18 = vadd.f32 %v12046_v10, %v10465_v15  ;;  %v10468_v19 = vadd.f32 %v11937_v16, %v15918_v42 }
 0x738   : > { %10728 = vst [vmem:[%s15923_s26 + $0x40] sm:$0xff] %v10626_v18  ;;  %v10629_v20 = vadd.f32 %v12049_v17, %v10468_v19  ;;  %v11938_v21 = vpop.f32.mrb[84].mxu0  ;;  %v12050_v22 = vpop.f32.mrb[84].mxu1 }
 0x739   : > { %v11939_v23 = vpop.f32.mrb[85].mxu0  ;;  %v12051_v24 = vpop.f32.mrb[85].mxu1 }
 0x73a   : > { %10729 = vst [vmem:[%s15923_s26 + $0x48] sm:$0xff] %v10629_v20  ;;  %v11940_v25 = vadd.f32 %v11939_v23, %v11938_v21  ;;  %v12052_v26 = vadd.f32 %v12051_v24, %v12050_v22  ;;  %v11941_v27 = vpop.f32.mrb[86].mxu0  ;;  %v12053_v28 = vpop.f32.mrb[86].mxu1 }
 0x73b   : > { %v11942_v29 = vpop.f32.mrb[87].mxu0  ;;  %v12054_v30 = vpop.f32.mrb[87].mxu1 }
 0x73c   : > { %v10473_v31 = vadd.f32 %v11940_v25, %v15918_v42  ;;  %v11943_v32 = vadd.f32 %v11942_v29, %v11941_v27  ;;  %v12055_v33 = vadd.f32 %v12054_v30, %v12053_v28 }
 0x73e   : > { %v10634_v34 = vadd.f32 %v12052_v26, %v10473_v31  ;;  %v10476_v35 = vadd.f32 %v11943_v32, %v15918_v42 }
 0x740   : > { %10730 = vst [vmem:[%s15923_s26 + $0x50] sm:$0xff] %v10634_v34  ;;  %v10637_v36 = vadd.f32 %v12055_v33, %v10476_v35  ;;  %v11944_v37 = vpop.f32.mrb[88].mxu0  ;;  %v12056_v38 = vpop.f32.mrb[88].mxu1 }
 0x741   : > { %v11945_v43 = vpop.f32.mrb[89].mxu0  ;;  %v12057_v44 = vpop.f32.mrb[89].mxu1 }
 0x742   : > { %10731 = vst [vmem:[%s15923_s26 + $0x58] sm:$0xff] %v10637_v36  ;;  %v11946_v45 = vadd.f32 %v11945_v43, %v11944_v37  ;;  %v12058_v46 = vadd.f32 %v12057_v44, %v12056_v38  ;;  %v11947_v47 = vpop.f32.mrb[90].mxu0  ;;  %v12059_v48 = vpop.f32.mrb[90].mxu1 }
 0x743   : > { %v11948_v49 = vpop.f32.mrb[91].mxu0  ;;  %v12060_v50 = vpop.f32.mrb[91].mxu1 }
 0x744   : > { %v10481_v51 = vadd.f32 %v11946_v45, %v15918_v42  ;;  %v11949_v52 = vadd.f32 %v11948_v49, %v11947_v47  ;;  %v12061_v53 = vadd.f32 %v12060_v50, %v12059_v48 }
 0x746   : > { %v10642_v54 = vadd.f32 %v12058_v46, %v10481_v51  ;;  %v10484_v55 = vadd.f32 %v11949_v52, %v15918_v42 }
 0x748   : > { %10732 = vst [vmem:[%s15923_s26 + $0x60] sm:$0xff] %v10642_v54  ;;  %v10645_v56 = vadd.f32 %v12061_v53, %v10484_v55  ;;  %v11950_v57 = vpop.f32.mrb[92].mxu0  ;;  %v12062_v58 = vpop.f32.mrb[92].mxu1 }
 0x749   : > { %v11951_v59 = vpop.f32.mrb[93].mxu0  ;;  %v12063_v60 = vpop.f32.mrb[93].mxu1 }
 0x74a   : > { %10733 = vst [vmem:[%s15923_s26 + $0x68] sm:$0xff] %v10645_v56  ;;  %v11952_v61 = vadd.f32 %v11951_v59, %v11950_v57  ;;  %v12064_v62 = vadd.f32 %v12063_v60, %v12062_v58  ;;  %v11953_v63 = vpop.f32.mrb[94].mxu0  ;;  %v12065_v0 = vpop.f32.mrb[94].mxu1 }
 0x74b   : > { %v11954_v1 = vpop.f32.mrb[95].mxu0  ;;  %v12066_v2 = vpop.f32.mrb[95].mxu1 }
 0x74c   : > { %v10489_v39 = vadd.f32 %v11952_v61, %v15918_v42  ;;  %v11955_v3 = vadd.f32 %v11954_v1, %v11953_v63  ;;  %v12067_v40 = vadd.f32 %v12066_v2, %v12065_v0 }
 0x74e   : > { %v10650_v4 = vadd.f32 %v12064_v62, %v10489_v39  ;;  %v10492_v41 = vadd.f32 %v11955_v3, %v15918_v42 }
 0x750   : > { %10734 = vst [vmem:[%s15923_s26 + $0x70] sm:$0xff] %v10650_v4  ;;  %v10653_v5 = vadd.f32 %v12067_v40, %v10492_v41  ;;  %v11956_v6 = vpop.f32.mrb[96].mxu0  ;;  %v12068_v7 = vpop.f32.mrb[96].mxu1 }
 0x751   : > { %v11957_v8 = vpop.f32.mrb[97].mxu0  ;;  %v12069_v9 = vpop.f32.mrb[97].mxu1 }
 0x752   : > { %10735 = vst [vmem:[%s15923_s26 + $0x78] sm:$0xff] %v10653_v5  ;;  %v11958_v10 = vadd.f32 %v11957_v8, %v11956_v6  ;;  %v12070_v11 = vadd.f32 %v12069_v9, %v12068_v7  ;;  %v11959_v12 = vpop.f32.mrb[98].mxu0  ;;  %v12071_v13 = vpop.f32.mrb[98].mxu1 }
 0x753   : > { %v11960_v14 = vpop.f32.mrb[99].mxu0  ;;  %v12072_v15 = vpop.f32.mrb[99].mxu1 }
 0x754   : > { %v10497_v16 = vadd.f32 %v11958_v10, %v15918_v42  ;;  %v11961_v17 = vadd.f32 %v11960_v14, %v11959_v12  ;;  %v12073_v18 = vadd.f32 %v12072_v15, %v12071_v13 }
 0x756   : > { %v10658_v19 = vadd.f32 %v12070_v11, %v10497_v16  ;;  %v10500_v20 = vadd.f32 %v11961_v17, %v15918_v42 }
 0x758   : > { %10736 = vst [vmem:[%s15923_s26 + $0x80] sm:$0xff] %v10658_v19  ;;  %v10661_v21 = vadd.f32 %v12073_v18, %v10500_v20  ;;  %v11962_v22 = vpop.f32.mrb[100].mxu0  ;;  %v12074_v23 = vpop.f32.mrb[100].mxu1 }
 0x759   : > { %v11963_v24 = vpop.f32.mrb[101].mxu0  ;;  %v12075_v25 = vpop.f32.mrb[101].mxu1 }
 0x75a   : > { %10737 = vst [vmem:[%s15923_s26 + $0x88] sm:$0xff] %v10661_v21  ;;  %v11964_v26 = vadd.f32 %v11963_v24, %v11962_v22  ;;  %v12076_v27 = vadd.f32 %v12075_v25, %v12074_v23  ;;  %v11965_v28 = vpop.f32.mrb[102].mxu0  ;;  %v12077_v29 = vpop.f32.mrb[102].mxu1 }
 0x75b   : > { %v11966_v30 = vpop.f32.mrb[103].mxu0  ;;  %v12078_v31 = vpop.f32.mrb[103].mxu1 }
 0x75c   : > { %v10505_v32 = vadd.f32 %v11964_v26, %v15918_v42  ;;  %v11967_v33 = vadd.f32 %v11966_v30, %v11965_v28  ;;  %v12079_v34 = vadd.f32 %v12078_v31, %v12077_v29 }
 0x75e   : > { %v10666_v35 = vadd.f32 %v12076_v27, %v10505_v32  ;;  %v10508_v36 = vadd.f32 %v11967_v33, %v15918_v42 }
 0x760   : > { %10738 = vst [vmem:[%s15923_s26 + $0x90] sm:$0xff] %v10666_v35  ;;  %v10669_v37 = vadd.f32 %v12079_v34, %v10508_v36  ;;  %v11968_v38 = vpop.f32.mrb[104].mxu0  ;;  %v12080_v43 = vpop.f32.mrb[104].mxu1 }
 0x761   : > { %v11969_v44 = vpop.f32.mrb[105].mxu0  ;;  %v12081_v45 = vpop.f32.mrb[105].mxu1 }
 0x762   : > { %10739 = vst [vmem:[%s15923_s26 + $0x98] sm:$0xff] %v10669_v37  ;;  %v11970_v46 = vadd.f32 %v11969_v44, %v11968_v38  ;;  %v12082_v47 = vadd.f32 %v12081_v45, %v12080_v43  ;;  %v11971_v48 = vpop.f32.mrb[106].mxu0  ;;  %v12083_v49 = vpop.f32.mrb[106].mxu1 }
 0x763   : > { %v11972_v50 = vpop.f32.mrb[107].mxu0  ;;  %v12084_v51 = vpop.f32.mrb[107].mxu1 }
 0x764   : > { %v10513_v52 = vadd.f32 %v11970_v46, %v15918_v42  ;;  %v11973_v53 = vadd.f32 %v11972_v50, %v11971_v48  ;;  %v12085_v54 = vadd.f32 %v12084_v51, %v12083_v49 }
 0x766   : > { %v10674_v55 = vadd.f32 %v12082_v47, %v10513_v52  ;;  %v10516_v56 = vadd.f32 %v11973_v53, %v15918_v42 }
 0x768   : > { %10740 = vst [vmem:[%s15923_s26 + $0xa0] sm:$0xff] %v10674_v55  ;;  %v10677_v57 = vadd.f32 %v12085_v54, %v10516_v56  ;;  %v11974_v58 = vpop.f32.mrb[108].mxu0  ;;  %v12086_v59 = vpop.f32.mrb[108].mxu1 }
 0x769   : > { %v11975_v60 = vpop.f32.mrb[109].mxu0  ;;  %v12087_v61 = vpop.f32.mrb[109].mxu1 }
 0x76a   : > { %10741 = vst [vmem:[%s15923_s26 + $0xa8] sm:$0xff] %v10677_v57  ;;  %v11976_v62 = vadd.f32 %v11975_v60, %v11974_v58  ;;  %v12088_v63 = vadd.f32 %v12087_v61, %v12086_v59  ;;  %v11977_v0 = vpop.f32.mrb[110].mxu0  ;;  %v12089_v1 = vpop.f32.mrb[110].mxu1 }
 0x76b   : > { %v11978_v2 = vpop.f32.mrb[111].mxu0  ;;  %v12090_v39 = vpop.f32.mrb[111].mxu1 }
 0x76c   : > { %v10521_v3 = vadd.f32 %v11976_v62, %v15918_v42  ;;  %v11979_v40 = vadd.f32 %v11978_v2, %v11977_v0  ;;  %v12091_v4 = vadd.f32 %v12090_v39, %v12089_v1 }
 0x76e   : > { %v10682_v41 = vadd.f32 %v12088_v63, %v10521_v3  ;;  %v10524_v5 = vadd.f32 %v11979_v40, %v15918_v42 }
 0x770   : > { %10742 = vst [vmem:[%s15923_s26 + $0xb0] sm:$0xff] %v10682_v41  ;;  %v10685_v6 = vadd.f32 %v12091_v4, %v10524_v5  ;;  %v11980_v7 = vpop.f32.mrb[112].mxu0  ;;  %v12092_v8 = vpop.f32.mrb[112].mxu1 }
 0x771   : > { %v11981_v9 = vpop.f32.mrb[113].mxu0  ;;  %v12093_v10 = vpop.f32.mrb[113].mxu1 }
 0x772   : > { %10743 = vst [vmem:[%s15923_s26 + $0xb8] sm:$0xff] %v10685_v6  ;;  %v11982_v11 = vadd.f32 %v11981_v9, %v11980_v7  ;;  %v12094_v12 = vadd.f32 %v12093_v10, %v12092_v8  ;;  %v11983_v13 = vpop.f32.mrb[114].mxu0  ;;  %v12095_v14 = vpop.f32.mrb[114].mxu1 }
 0x773   : > { %v11984_v15 = vpop.f32.mrb[115].mxu0  ;;  %v12096_v16 = vpop.f32.mrb[115].mxu1 }
 0x774   : > { %v10529_v17 = vadd.f32 %v11982_v11, %v15918_v42  ;;  %v11985_v18 = vadd.f32 %v11984_v15, %v11983_v13  ;;  %v12097_v19 = vadd.f32 %v12096_v16, %v12095_v14 }
 0x776   : > { %v10690_v20 = vadd.f32 %v12094_v12, %v10529_v17  ;;  %v10532_v21 = vadd.f32 %v11985_v18, %v15918_v42 }
 0x778   : > { %10744 = vst [vmem:[%s15923_s26 + $0xc0] sm:$0xff] %v10690_v20  ;;  %v10693_v22 = vadd.f32 %v12097_v19, %v10532_v21  ;;  %v11986_v23 = vpop.f32.mrb[116].mxu0  ;;  %v12098_v24 = vpop.f32.mrb[116].mxu1 }
 0x779   : > { %v11987_v25 = vpop.f32.mrb[117].mxu0  ;;  %v12099_v26 = vpop.f32.mrb[117].mxu1 }
 0x77a   : > { %10745 = vst [vmem:[%s15923_s26 + $0xc8] sm:$0xff] %v10693_v22  ;;  %v11988_v27 = vadd.f32 %v11987_v25, %v11986_v23  ;;  %v12100_v28 = vadd.f32 %v12099_v26, %v12098_v24  ;;  %v11989_v29 = vpop.f32.mrb[118].mxu0  ;;  %v12101_v30 = vpop.f32.mrb[118].mxu1 }
 0x77b   : > { %v11990_v31 = vpop.f32.mrb[119].mxu0  ;;  %v12102_v32 = vpop.f32.mrb[119].mxu1 }
 0x77c   : > { %v10537_v33 = vadd.f32 %v11988_v27, %v15918_v42  ;;  %v11991_v34 = vadd.f32 %v11990_v31, %v11989_v29  ;;  %v12103_v35 = vadd.f32 %v12102_v32, %v12101_v30 }
 0x77e   : > { %v10698_v36 = vadd.f32 %v12100_v28, %v10537_v33  ;;  %v10540_v37 = vadd.f32 %v11991_v34, %v15918_v42 }
 0x780   : > { %10746 = vst [vmem:[%s15923_s26 + $0xd0] sm:$0xff] %v10698_v36  ;;  %v10701_v38 = vadd.f32 %v12103_v35, %v10540_v37  ;;  %v11992_v43 = vpop.f32.mrb[120].mxu0  ;;  %v12104_v44 = vpop.f32.mrb[120].mxu1 }
 0x781   : > { %v11993_v45 = vpop.f32.mrb[121].mxu0  ;;  %v12105_v46 = vpop.f32.mrb[121].mxu1 }
 0x782   : > { %10747 = vst [vmem:[%s15923_s26 + $0xd8] sm:$0xff] %v10701_v38  ;;  %v11994_v47 = vadd.f32 %v11993_v45, %v11992_v43  ;;  %v12106_v48 = vadd.f32 %v12105_v46, %v12104_v44  ;;  %v11995_v49 = vpop.f32.mrb[122].mxu0  ;;  %v12107_v50 = vpop.f32.mrb[122].mxu1 }
 0x783   : > { %v11996_v51 = vpop.f32.mrb[123].mxu0  ;;  %v12108_v52 = vpop.f32.mrb[123].mxu1 }
 0x784   : > { %v10545_v53 = vadd.f32 %v11994_v47, %v15918_v42  ;;  %v11997_v54 = vadd.f32 %v11996_v51, %v11995_v49  ;;  %v12109_v55 = vadd.f32 %v12108_v52, %v12107_v50 }
 0x786   : > { %v10706_v56 = vadd.f32 %v12106_v48, %v10545_v53  ;;  %v10548_v57 = vadd.f32 %v11997_v54, %v15918_v42 }
 0x788   : > { %10748 = vst [vmem:[%s15923_s26 + $0xe0] sm:$0xff] %v10706_v56  ;;  %v10709_v58 = vadd.f32 %v12109_v55, %v10548_v57  ;;  %v11998_v59 = vpop.f32.mrb[124].mxu0  ;;  %v12110_v60 = vpop.f32.mrb[124].mxu1 }
 0x789   : > { %v11999_v61 = vpop.f32.mrb[125].mxu0  ;;  %v12111_v62 = vpop.f32.mrb[125].mxu1 }
 0x78a   : > { %10749 = vst [vmem:[%s15923_s26 + $0xe8] sm:$0xff] %v10709_v58  ;;  %v12000_v63 = vadd.f32 %v11999_v61, %v11998_v59  ;;  %v12112_v0 = vadd.f32 %v12111_v62, %v12110_v60  ;;  %v12001_v1 = vpop.f32.mrb[126].mxu0  ;;  %v12113_v2 = vpop.f32.mrb[126].mxu1 }
 0x78b   : > { %v12002_v39 = vpop.f32.mrb[127].mxu0  ;;  %v12114_v3 = vpop.f32.mrb[127].mxu1 }
 0x78c   : > { %v10553_v40 = vadd.f32 %v12000_v63, %v15918_v42  ;;  %v12003_v4 = vadd.f32 %v12002_v39, %v12001_v1  ;;  %v12115_v41 = vadd.f32 %v12114_v3, %v12113_v2 }
 0x78e   : > { %v10714_v5 = vadd.f32 %v12112_v0, %v10553_v40  ;;  %v10556_v6 = vadd.f32 %v12003_v4, %v15918_v42 }
 0x790   : > { %10750 = vst [vmem:[%s15923_s26 + $0xf0] sm:$0xff] %v10714_v5  ;;  %v10717_v7 = vadd.f32 %v12115_v41, %v10556_v6 }
 0x792   : > { %10751 = vst [vmem:[%s15923_s26 + $0xf8] sm:$0xff] %v10717_v7 }
 0x793   : > { %15121 = shalt.err (!%p15118_p13)
}
 0x794   : > { %s15122_s6 = scalar_lea.hbm %s15990_s17, 4096  ;;  %s15126_s8 = scalar_lea.hbm %s16043_s5, 8192 }
 0x795   : > { %p15123_p9 = scmp.ne.s32.totalorder %s15990_s17, %s15122_s6  ;;  %p15127_p6 = scmp.lt.u32.totalorder %s15990_s17, %s16043_s5 }
 0x796   : > { %p15128_p10 = scmp.lt.u32.totalorder %s15126_s8, %s15122_s6  ;;  %p15130_p4 = scmp.lt.u32.totalorder %s15122_s6, %s15990_s17 }
 0x797   : > { %p15124_p0 = pnand %p15123_p9, %p15395_p8 }
 0x798   : > { %p15129_p3 = por %p15128_p10, %p15127_p6 }
 0x799   : > { %p15125_p11 = pneg %p15124_p0 }
 0x79a   : > { %p15131_p5 = por %p15130_p4, %p15129_p3 }
 0x79c   : > { %p15132_p7 = pnand %p15131_p5, %p15125_p11 }
 0x79e   : > { %15135 = shalt.err (!%p15132_p7)
}
 0x79f   : > { %s15196_s30 = smov 128   ;;  %s15197_s27 = smov 8  }
 0x7a0   : > { %13417 = dma.vmem_to_hbm [thread:$0]  (%p15395_p8), %s15992_s10, 4096, %s15990_s17, %s10753_s23, %s15196_s30, %s15196_s30, %s15197_s27  }
 0x7a1 PF: > { %s10781_s13 = sand.u32 1, %s15170_s18   ;;  %p16061_p12 = scmp.ne.s32.totalorder %s16048_s25, 0 }
 0x7a2   : > { %p16062_p2 = scmp.ge.s32.totalorder %s15182_s21, 2  ;;  %s10782_s9 = scalar_lea.sflag [#allocation4], %s10781_s13 }
 0x7a4   : > { %p13437_p1 = pnand %p16062_p2, %p16061_p12 }
 0x7a6   : > { %15165 = dma.done.wait (!%p13437_p1), %s10782_s9, 4096  }
 0x7a7   : > { %15167 = vsyncadd (!%p13437_p1), %s10782_s9, 4294963200  ;;  %p20_p13 = scmp.ge.s32.totalorder %s15382_s12, 4   ;;  %s16063_s18 = smov %s15174_s19 }
 0x7a8   : > { %s16064_s19 = smov %s15178_s20  ;;  %s16065_s20 = smov %s15391_s15 }
 0x7a9   : > { %s16066_s21 = smov %s15382_s12  ;;  %22 = sbr.rel (!%p20_p13) target bundleno = 7 (0x7), region = 101 }
 0x7b0   :  { %10787 = vsyncpa [#allocation3], 1 }
 0x7b1   :  { %10789 = vsyncpa [#allocation3 + $0x1], 1 }
 0x7b2   :  { %10790 = vsyncpa [#allocation6], 1 }
 0x7b3   :  { %10791 = vsyncpa [#allocation9], 1 }
 0x7b4   :  { %10792 = vsyncpa [#allocation4], 1 }
 0x7b5   :  { %10794 = vsyncpa [#allocation4 + $0x1], 1 }

</bundles_post_ra>
